<compile_context>
chip_gen: v6e
topology: v6e:2x2x1
jax: 0.10.0
libtpu: 0.0.40
codegen_flags: <defaults>
</compile_context>

<pallas_src>
import functools

import jax
import jax.numpy as jnp
from jax.experimental import pallas as pl
from jax.experimental.pallas import tpu as pltpu


_PARALLEL1 = pltpu.CompilerParams(dimension_semantics=("parallel",))


# ---------------------------------------------------------------------------
# In-kernel math helpers (f32 epilogues, one exp + approx reciprocal each)
# ---------------------------------------------------------------------------
def _mish_f32(x):
    """x * tanh(softplus(x)); exact single-exp formulation, overflow safe."""
    u = jnp.exp(-jnp.abs(x))
    pos = x >= 0.0
    n = jnp.where(pos, 1.0 + 2.0 * u, u * (u + 2.0))
    d = n + jnp.where(pos, 2.0 * u * u, 2.0)          # d >= 1 always
    return x * n * pl.reciprocal(d, approx=True)


def _sigmoid_f32(x):
    """Overflow-safe sigmoid with one exp + approx reciprocal."""
    u = jnp.exp(-jnp.abs(x))
    inv = pl.reciprocal(1.0 + u, approx=True)
    return jnp.where(x >= 0.0, inv, u * inv)


def _row_tile(m, max_rows):
    """Row-tile size: <= max_rows, multiple of 8 (or == m), >=2 grid blocks if possible."""
    if m <= 16:
        return m
    tm = min(max_rows, m)
    if tm == m:                                        # split for the 2 v7x TensorCores
        half = -(-m // 2)
        half = -(-half // 8) * 8
        if half < m:
            tm = half
    return tm


# ---------------------------------------------------------------------------
# Kernel 1: fused spectral block  y = mish(mish(x@W1+b1)@W2+b2)
# ---------------------------------------------------------------------------
def _spectral_kernel(x_ref, w1_ref, b1_ref, w2_ref, b2_ref, o_ref):
    h = jnp.dot(x_ref[...], w1_ref[...], preferred_element_type=jnp.float32)
    h = _mish_f32(h + b1_ref[...].astype(jnp.float32))
    h = jnp.dot(h.astype(w2_ref.dtype), w2_ref[...], preferred_element_type=jnp.float32)
    h = _mish_f32(h + b2_ref[...].astype(jnp.float32))
    o_ref[...] = h.astype(o_ref.dtype)


def spectral_pallas(x, w1, b1, w2, b2, *, max_rows=1024):
    M, K = x.shape
    H1 = w1.shape[1]
    H2 = w2.shape[1]
    tm = _row_tile(M, max_rows)
    return pl.pallas_call(
        _spectral_kernel,
        out_shape=jax.ShapeDtypeStruct((M, H2), x.dtype),
        grid_spec=pltpu.PrefetchScalarGridSpec(
            num_scalar_prefetch=0,
            grid=(pl.cdiv(M, tm),),
            in_specs=[
                pl.BlockSpec((tm, K), lambda i: (i, 0)),
                pl.BlockSpec((K, H1), lambda i: (0, 0)),
                pl.BlockSpec((1, H1), lambda i: (0, 0)),
                pl.BlockSpec((H1, H2), lambda i: (0, 0)),
                pl.BlockSpec((1, H2), lambda i: (0, 0)),
            ],
            out_specs=pl.BlockSpec((tm, H2), lambda i: (i, 0)),
        ),
        compiler_params=_PARALLEL1,
    )(x, w1, b1.reshape(1, H1), w2, b2.reshape(1, H2))


# ---------------------------------------------------------------------------
# Kernel 2: plain fused linear  y = x @ W + b   (used for QKV fusion and final fc)
# ---------------------------------------------------------------------------
def _linear_kernel(x_ref, w_ref, b_ref, o_ref):
    y = jnp.dot(x_ref[...], w_ref[...], preferred_element_type=jnp.float32)
    o_ref[...] = (y + b_ref[...].astype(jnp.float32)).astype(o_ref.dtype)


def linear_pallas(x, w, b, *, out_dtype=None, max_rows=1024):
    M, K = x.shape
    N = w.shape[1]
    out_dtype = x.dtype if out_dtype is None else out_dtype
    tm = _row_tile(M, max_rows)
    return pl.pallas_call(
        _linear_kernel,
        out_shape=jax.ShapeDtypeStruct((M, N), out_dtype),
        grid_spec=pltpu.PrefetchScalarGridSpec(
            num_scalar_prefetch=0,
            grid=(pl.cdiv(M, tm),),
            in_specs=[
                pl.BlockSpec((tm, K), lambda i: (i, 0)),
                pl.BlockSpec((K, N), lambda i: (0, 0)),
                pl.BlockSpec((1, N), lambda i: (0, 0)),
            ],
            out_specs=pl.BlockSpec((tm, N), lambda i: (i, 0)),
        ),
        compiler_params=_PARALLEL1,
    )(x, w, b.reshape(1, N))


# ---------------------------------------------------------------------------
# Kernel 3: Conv1dGLU (conv computed in-kernel: sum_k shifted matmuls + bias + GLU + res)
# ---------------------------------------------------------------------------
def _conv_glu_kernel(xp_ref, w_ref, b_ref, o_ref, *, ksize, c_out, t_len, pad):
    xp = xp_ref[0]                                              # (T + ksize - 1, C)
    acc = b_ref[...].astype(jnp.float32)                        # (1, 2C) -> broadcasts
    for kk in range(ksize):                                     # static unroll
        y = jnp.dot(xp, w_ref[kk], preferred_element_type=jnp.float32)   # (Tp, 2C)
        acc = acc + y[kk:kk + t_len, :]                         # f32 row shift (cheap)
    x1 = acc[:, :c_out]
    x2 = acc[:, c_out:]
    res = xp.astype(jnp.float32)[pad:pad + t_len, :]
    o_ref[0] = (res + x1 * _sigmoid_f32(x2)).astype(o_ref.dtype)


def conv1d_glu_pallas(x_btc, w_kio, b, *, kernel_size):
    """x_btc: (B, T, C); w_kio: (kernel, C, 2C); residual + GLU(conv1d(x))."""
    B, T, C = x_btc.shape
    pad = (kernel_size - 1) // 2
    xp = jnp.pad(x_btc, ((0, 0), (pad, pad), (0, 0)))
    Tp = T + 2 * pad
    N2 = w_kio.shape[-1]
    return pl.pallas_call(
        functools.partial(_conv_glu_kernel, ksize=kernel_size, c_out=C, t_len=T, pad=pad),
        out_shape=jax.ShapeDtypeStruct((B, T, C), x_btc.dtype),
        grid_spec=pltpu.PrefetchScalarGridSpec(
            num_scalar_prefetch=0,
            grid=(B,),
            in_specs=[
                pl.BlockSpec((1, Tp, C), lambda b: (b, 0, 0)),
                pl.BlockSpec((kernel_size, C, N2), lambda b: (0, 0, 0)),
                pl.BlockSpec((1, N2), lambda b: (0, 0)),
            ],
            out_specs=pl.BlockSpec((1, T, C), lambda b: (b, 0, 0)),
        ),
        compiler_params=_PARALLEL1,
    )(xp, w_kio, b.reshape(1, N2))


# ---------------------------------------------------------------------------
# Kernel 4: multi-head attention + output projection + residual, one batch per step
# ---------------------------------------------------------------------------
def _attn_out_kernel(qkv_ref, res_ref, wo_ref, bo_ref, o_ref, *, n_head, dk, inv_temp):
    qkv = qkv_ref[0]                                            # (T, 3C)
    c = n_head * dk
    heads = []
    for h in range(n_head):                                     # static unroll
        qh = qkv[:, h * dk:(h + 1) * dk]
        kh = qkv[:, c + h * dk:c + (h + 1) * dk]
        vh = qkv[:, 2 * c + h * dk:2 * c + (h + 1) * dk]
        qs = (qh.astype(jnp.float32) * inv_temp).astype(qh.dtype)
        s = jax.lax.dot_general(qs, kh, (((1,), (1,)), ((), ())),
                                preferred_element_type=jnp.float32)      # (T, T)
        s = s - jnp.max(s, axis=-1, keepdims=True)
        p = jnp.exp(s)
        p = p * pl.reciprocal(jnp.sum(p, axis=-1, keepdims=True), approx=True)
        heads.append(jnp.dot(p.astype(vh.dtype), vh,
                             preferred_element_type=jnp.float32))        # (T, dk)
    attn = jnp.concatenate(heads, axis=-1)                               # (T, C) f32
    o = jnp.dot(attn.astype(wo_ref.dtype), wo_ref[...],
                preferred_element_type=jnp.float32)
    o = o + bo_ref[...].astype(jnp.float32) + res_ref[0].astype(jnp.float32)
    o_ref[0] = o.astype(o_ref.dtype)


def attn_block_pallas(qkv_b3c, res_btc, w_o, b_o, *, n_head, temperature):
    B, T, C3 = qkv_b3c.shape
    C = res_btc.shape[-1]
    dk = C // n_head
    return pl.pallas_call(
        functools.partial(_attn_out_kernel, n_head=n_head, dk=dk,
                          inv_temp=1.0 / temperature),
        out_shape=jax.ShapeDtypeStruct((B, T, C), res_btc.dtype),
        grid_spec=pltpu.PrefetchScalarGridSpec(
            num_scalar_prefetch=0,
            grid=(B,),
            in_specs=[
                pl.BlockSpec((1, T, C3), lambda b: (b, 0, 0)),
                pl.BlockSpec((1, T, C), lambda b: (b, 0, 0)),
                pl.BlockSpec((C, C), lambda b: (0, 0)),
                pl.BlockSpec((1, C), lambda b: (0, 0)),
            ],
            out_specs=pl.BlockSpec((1, T, C), lambda b: (b, 0, 0)),
        ),
        compiler_params=_PARALLEL1,
    )(qkv_b3c, res_btc, w_o, b_o.reshape(1, C))


# ---------------------------------------------------------------------------
# Full MelStyleEncoder forward (Pallas path)
# ---------------------------------------------------------------------------
def mel_style_encoder_forward(p, x, *, hidden, out_dim, kernel_size, n_head,
                              compute_dtype=jnp.bfloat16):
    # TODO(synk): masked (padded-sequence) path not implemented; this covers mask=None.
    B, n_mel, T = x.shape
    C = hidden
    cd = compute_dtype
    wc = {k: (v.astype(cd) if k.startswith("w_") else v) for k, v in p.items()}

    h = jnp.transpose(x, (0, 2, 1)).reshape(B * T, n_mel).astype(cd)

    # spectral: Linear+Mish -> Linear+Mish, fused in one kernel (dropout = identity)
    h = spectral_pallas(h, wc["w_spec1"], p["b_spec1"], wc["w_spec2"], p["b_spec2"])
    h = h.reshape(B, T, C)

    # temporal: two Conv1dGLU blocks with residual (conv computed in-kernel)
    w_t1 = wc["w_t1"].reshape(kernel_size, C, 2 * C)
    w_t2 = wc["w_t2"].reshape(kernel_size, C, 2 * C)
    h = conv1d_glu_pallas(h, w_t1, p["b_t1"], kernel_size=kernel_size)
    h = conv1d_glu_pallas(h, w_t2, p["b_t2"], kernel_size=kernel_size)

    # multi-head self-attention: fused QKV projection (N=3C), then attention kernel that
    # also applies the output projection and residual add.
    w_qkv = jnp.concatenate([wc["w_q"], wc["w_k"], wc["w_v"]], axis=1)   # (C, 3C)
    b_qkv = jnp.concatenate([p["b_q"], p["b_k"], p["b_v"]], axis=0)
    qkv = linear_pallas(h.reshape(B * T, C), w_qkv, b_qkv).reshape(B, T, 3 * C)
    h = attn_block_pallas(qkv, h, wc["w_o"], p["b_o"], n_head=n_head,
                          temperature=float(C) ** 0.5)                   # temp = sqrt(d_model)

    # mean-pool over time BEFORE the final Linear (exact: mean and Linear commute)
    pooled = jnp.mean(h.astype(jnp.float32), axis=1)                     # (B, C)
    out = linear_pallas(pooled.astype(cd), wc["w_fc"], p["b_fc"], out_dtype=jnp.float32)
    return out[..., None]                                                # (B, out_dim, 1)


# ---------------------------------------------------------------------------
# Pure-JAX reference (independent f32 math path) for validation
# ---------------------------------------------------------------------------
def mel_style_encoder_ref(p, x, *, hidden, out_dim, kernel_size, n_head):
    P = jax.lax.Precision.HIGHEST
    B, n_mel, T = x.shape
    C = hidden
    dk = C // n_head

    def mish(z):
        return z * jnp.tanh(jax.nn.softplus(z))

    h = jnp.transpose(x, (0, 2, 1))
    h = mish(jnp.einsum("btk,kn->btn", h, p["w_spec1"], precision=P) + p["b_spec1"])
    h = mish(jnp.einsum("btk,kn->btn", h, p["w_spec2"], precision=P) + p["b_spec2"])

    for name in ("t1", "t2"):
        w = p[f"w_{name}"].reshape(kernel_size, C, 2 * C)
        y = jax.lax.conv_general_dilated(
            h, w, window_strides=(1,),
            padding=[(kernel_size // 2, kernel_size // 2)],
            dimension_numbers=("NWC", "WIO", "NWC"), precision=P)
        y = y + p[f"b_{name}"]
        h = h + y[..., :C] * jax.nn.sigmoid(y[..., C:])

    residual = h
    q = jnp.einsum("btk,kn->btn", h, p["w_q"], precision=P) + p["b_q"]
    k = jnp.einsum("btk,kn->btn", h, p["w_k"], precision=P) + p["b_k"]
    v = jnp.einsum("btk,kn->btn", h, p["w_v"], precision=P) + p["b_v"]

    def sh(t):
        return t.reshape(B, T, n_head, dk).transpose(2, 0, 1, 3).reshape(n_head * B, T, dk)

    attn = jnp.einsum("bqd,bkd->bqk", sh(q), sh(k), precision=P) / (float(C) ** 0.5)
    attn = jax.nn.softmax(attn, axis=-1)
    oh = jnp.einsum("bqk,bkd->bqd", attn, sh(v), precision=P)
    o = oh.reshape(n_head, B, T, dk).transpose(1, 2, 0, 3).reshape(B, T, C)
    o = jnp.einsum("btk,kn->btn", o, p["w_o"], precision=P) + p["b_o"]
    h = o + residual

    out = jnp.einsum("btk,kn->btn", h, p["w_fc"], precision=P) + p["b_fc"]
    return jnp.mean(out, axis=1)[..., None]


# ---------------------------------------------------------------------------
# Parameter init (deterministic) and test driver
# ---------------------------------------------------------------------------
def init_params(key, *, n_mel, hidden, out_dim, kernel_size):
    ks = jax.random.split(key, 20)

    def w(k, fan_in, shape):
        return jax.random.normal(k, shape, jnp.float32) * (1.0 / (fan_in ** 0.5))

    def b(k, shape):
        return jax.random.normal(k, shape, jnp.float32) * 0.02

    kc = kernel_size * hidden
    return {
        "w_spec1": w(ks[0], n_mel, (n_mel, hidden)),     "b_spec1": b(ks[1], (hidden,)),
        "w_spec2": w(ks[2], hidden, (hidden, hidden)),   "b_spec2": b(ks[3], (hidden,)),
        "w_t1":    w(ks[4], kc, (kc, 2 * hidden)),       "b_t1":    b(ks[5], (2 * hidden,)),
        "w_t2":    w(ks[6], kc, (kc, 2 * hidden)),       "b_t2":    b(ks[7], (2 * hidden,)),
        "w_q":     w(ks[8], hidden, (hidden, hidden)),   "b_q":     b(ks[9], (hidden,)),
        "w_k":     w(ks[10], hidden, (hidden, hidden)),  "b_k":     b(ks[11], (hidden,)),
        "w_v":     w(ks[12], hidden, (hidden, hidden)),  "b_v":     b(ks[13], (hidden,)),
        "w_o":     w(ks[14], hidden, (hidden, hidden)),  "b_o":     b(ks[15], (hidden,)),
        "w_fc":    w(ks[16], hidden, (hidden, out_dim)), "b_fc":    b(ks[17], (out_dim,)),
    }


if __name__ == "__main__":
    key = jax.random.PRNGKey(0)
    k_x, k_p = jax.random.split(key)

    # Small shapes consistent with the module defaults.
    B, n_mel, T = 2, 80, 32
    hidden, out_dim, ksz, n_head = 128, 256, 5, 2

    params = init_params(k_p, n_mel=n_mel, hidden=hidden, out_dim=out_dim, kernel_size=ksz)
    x = jax.random.normal(k_x, (B, n_mel, T), dtype=jnp.float32)

    common = dict(hidden=hidden, out_dim=out_dim, kernel_size=ksz, n_head=n_head)
    fwd_f32 = jax.jit(functools.partial(mel_style_encoder_forward,
                                        compute_dtype=jnp.float32, **common))
    fwd_bf16 = jax.jit(functools.partial(mel_style_encoder_forward,
                                         compute_dtype=jnp.bfloat16, **common))

    y_ref = mel_style_encoder_ref(params, x, **common)
    jax.block_until_ready(y_ref)

    # f32 kernel path: tight check against independent reference.
    y32 = fwd_f32(params, x)
    jax.block_until_ready(y32)
    assert y32.shape == (B, out_dim, 1), y32.shape
    assert bool(jnp.all(jnp.isfinite(y32)))
    err32 = float(jnp.max(jnp.abs(y32 - y_ref)))
    assert jnp.allclose(y32, y_ref, atol=3e-2, rtol=3e-2), f"f32 max abs err = {err32}"

    # bf16 (MXU-native) path: sanity check against the same reference.
    ybf = fwd_bf16(params, x)
    jax.block_until_ready(ybf)
    assert ybf.shape == (B, out_dim, 1), ybf.shape
    assert bool(jnp.all(jnp.isfinite(ybf)))
    errbf = float(jnp.max(jnp.abs(ybf - y_ref)))
    assert jnp.allclose(ybf, y_ref, atol=1e-1, rtol=1e-1), f"bf16 max abs err = {errbf}"

    print("KERNEL_OK")
</pallas_src>

<mosaic_0001>
module attributes {stable_mosaic.version = 11 : i64} {
  func.func @_conv_glu_kernel(%arg0: i32, %arg1: memref<1x36x128xf32, #tpu.memory_space<vmem>>, %arg2: memref<5x128x256xf32, #tpu.memory_space<vmem>>, %arg3: memref<1x256xf32, #tpu.memory_space<vmem>>, %arg4: memref<1x32x128xf32, #tpu.memory_space<vmem>>) attributes {dimension_semantics = [#tpu.dimension_semantics<parallel>], iteration_bounds = array<i64: 2>, scalar_prefetch = 0 : i64, scratch_operands = 0 : i64, tpu.core_type = #tpu.core_type<tc>, window_params = [{transform_indices = @transform_0, window_bounds = array<i64: 1, 36, 128>}, {pipeline_mode = #tpu.pipeline_mode<synchronous>, transform_indices = @transform_1, window_bounds = array<i64: 5, 128, 256>}, {pipeline_mode = #tpu.pipeline_mode<synchronous>, transform_indices = @transform_2, window_bounds = array<i64: 1, 256>}, {transform_indices = @transform_3, window_bounds = array<i64: 1, 32, 128>}]} {
    %c0 = arith.constant 0 : index
    %c0_0 = arith.constant 0 : index
    %c0_1 = arith.constant 0 : index
    %0 = vector.load %arg1[%c0, %c0_0, %c0_1] : memref<1x36x128xf32, #tpu.memory_space<vmem>>, vector<1x36x128xf32>
    %1 = vector.shape_cast %0 : vector<1x36x128xf32> to vector<36x128xf32>
    %c0_2 = arith.constant 0 : index
    %c0_3 = arith.constant 0 : index
    %2 = vector.load %arg3[%c0_2, %c0_3] : memref<1x256xf32, #tpu.memory_space<vmem>>, vector<1x256xf32>
    %c0_4 = arith.constant 0 : index
    %c0_5 = arith.constant 0 : index
    %c0_6 = arith.constant 0 : index
    %3 = vector.load %arg2[%c0_4, %c0_5, %c0_6] : memref<5x128x256xf32, #tpu.memory_space<vmem>>, vector<1x128x256xf32>
    %4 = vector.shape_cast %3 : vector<1x128x256xf32> to vector<128x256xf32>
    %cst = arith.constant dense<0.000000e+00> : vector<36x256xf32>
    %5 = tpu.matmul %1, %4, %cst {dimension_numbers = #tpu.dot_dimension_numbers<[1], [0], [0], [1], [0, 0, 1, 1], [], []>} : vector<36x128xf32>, vector<128x256xf32>, vector<36x256xf32> -> vector<36x256xf32>
    %6 = vector.extract_strided_slice %5 {offsets = [0, 0], sizes = [32, 256], strides = [1, 1]} : vector<36x256xf32> to vector<32x256xf32>
    %7 = vector.broadcast %2 : vector<1x256xf32> to vector<32x256xf32>
    %8 = arith.addf %7, %6 : vector<32x256xf32>
    %c1 = arith.constant 1 : index
    %c0_7 = arith.constant 0 : index
    %c0_8 = arith.constant 0 : index
    %9 = vector.load %arg2[%c1, %c0_7, %c0_8] : memref<5x128x256xf32, #tpu.memory_space<vmem>>, vector<1x128x256xf32>
    %10 = vector.shape_cast %9 : vector<1x128x256xf32> to vector<128x256xf32>
    %cst_9 = arith.constant dense<0.000000e+00> : vector<36x256xf32>
    %11 = tpu.matmul %1, %10, %cst_9 {dimension_numbers = #tpu.dot_dimension_numbers<[1], [0], [0], [1], [0, 0, 1, 1], [], []>} : vector<36x128xf32>, vector<128x256xf32>, vector<36x256xf32> -> vector<36x256xf32>
    %12 = vector.extract_strided_slice %11 {offsets = [1, 0], sizes = [32, 256], strides = [1, 1]} : vector<36x256xf32> to vector<32x256xf32>
    %13 = arith.addf %8, %12 : vector<32x256xf32>
    %c2 = arith.constant 2 : index
    %c0_10 = arith.constant 0 : index
    %c0_11 = arith.constant 0 : index
    %14 = vector.load %arg2[%c2, %c0_10, %c0_11] : memref<5x128x256xf32, #tpu.memory_space<vmem>>, vector<1x128x256xf32>
    %15 = vector.shape_cast %14 : vector<1x128x256xf32> to vector<128x256xf32>
    %cst_12 = arith.constant dense<0.000000e+00> : vector<36x256xf32>
    %16 = tpu.matmul %1, %15, %cst_12 {dimension_numbers = #tpu.dot_dimension_numbers<[1], [0], [0], [1], [0, 0, 1, 1], [], []>} : vector<36x128xf32>, vector<128x256xf32>, vector<36x256xf32> -> vector<36x256xf32>
    %17 = vector.extract_strided_slice %16 {offsets = [2, 0], sizes = [32, 256], strides = [1, 1]} : vector<36x256xf32> to vector<32x256xf32>
    %18 = arith.addf %13, %17 : vector<32x256xf32>
    %c3 = arith.constant 3 : index
    %c0_13 = arith.constant 0 : index
    %c0_14 = arith.constant 0 : index
    %19 = vector.load %arg2[%c3, %c0_13, %c0_14] : memref<5x128x256xf32, #tpu.memory_space<vmem>>, vector<1x128x256xf32>
    %20 = vector.shape_cast %19 : vector<1x128x256xf32> to vector<128x256xf32>
    %cst_15 = arith.constant dense<0.000000e+00> : vector<36x256xf32>
    %21 = tpu.matmul %1, %20, %cst_15 {dimension_numbers = #tpu.dot_dimension_numbers<[1], [0], [0], [1], [0, 0, 1, 1], [], []>} : vector<36x128xf32>, vector<128x256xf32>, vector<36x256xf32> -> vector<36x256xf32>
    %22 = vector.extract_strided_slice %21 {offsets = [3, 0], sizes = [32, 256], strides = [1, 1]} : vector<36x256xf32> to vector<32x256xf32>
    %23 = arith.addf %18, %22 : vector<32x256xf32>
    %c4 = arith.constant 4 : index
    %c0_16 = arith.constant 0 : index
    %c0_17 = arith.constant 0 : index
    %24 = vector.load %arg2[%c4, %c0_16, %c0_17] : memref<5x128x256xf32, #tpu.memory_space<vmem>>, vector<1x128x256xf32>
    %25 = vector.shape_cast %24 : vector<1x128x256xf32> to vector<128x256xf32>
    %cst_18 = arith.constant dense<0.000000e+00> : vector<36x256xf32>
    %26 = tpu.matmul %1, %25, %cst_18 {dimension_numbers = #tpu.dot_dimension_numbers<[1], [0], [0], [1], [0, 0, 1, 1], [], []>} : vector<36x128xf32>, vector<128x256xf32>, vector<36x256xf32> -> vector<36x256xf32>
    %27 = vector.extract_strided_slice %26 {offsets = [4, 0], sizes = [32, 256], strides = [1, 1]} : vector<36x256xf32> to vector<32x256xf32>
    %28 = arith.addf %23, %27 : vector<32x256xf32>
    %29 = vector.extract_strided_slice %28 {offsets = [0, 0], sizes = [32, 128], strides = [1, 1]} : vector<32x256xf32> to vector<32x128xf32>
    %30 = vector.extract_strided_slice %28 {offsets = [0, 128], sizes = [32, 128], strides = [1, 1]} : vector<32x256xf32> to vector<32x128xf32>
    %31 = vector.extract_strided_slice %1 {offsets = [2, 0], sizes = [32, 128], strides = [1, 1]} : vector<36x128xf32> to vector<32x128xf32>
    %32 = math.absf %30 : vector<32x128xf32>
    %cst_19 = arith.constant 0.000000e+00 : f32
    %33 = vector.broadcast %cst_19 : f32 to vector<32x128xf32>
    %34 = arith.subf %33, %32 : vector<32x128xf32>
    %35 = math.exp %34 : vector<32x128xf32>
    %cst_20 = arith.constant 1.000000e+00 : f32
    %36 = vector.broadcast %cst_20 : f32 to vector<32x128xf32>
    %37 = arith.addf %36, %35 : vector<32x128xf32>
    %38 = tpu.reciprocal %37 {approx = true} : vector<32x128xf32> -> vector<32x128xf32>
    %cst_21 = arith.constant 0.000000e+00 : f32
    %39 = vector.broadcast %cst_21 : f32 to vector<32x128xf32>
    %40 = arith.cmpf oge, %30, %39 : vector<32x128xf32>
    %41 = arith.mulf %35, %38 : vector<32x128xf32>
    %42 = arith.select %40, %38, %41 : vector<32x128xi1>, vector<32x128xf32>
    %43 = arith.mulf %29, %42 : vector<32x128xf32>
    %44 = arith.addf %31, %43 : vector<32x128xf32>
    %c0_22 = arith.constant 0 : index
    %c0_23 = arith.constant 0 : index
    %c0_24 = arith.constant 0 : index
    %45 = vector.load %arg4[%c0_22, %c0_23, %c0_24] : memref<1x32x128xf32, #tpu.memory_space<vmem>>, vector<1x32x128xf32>
    %46 = vector.shape_cast %45 : vector<1x32x128xf32> to vector<32x128xf32>
    %47 = vector.shape_cast %44 : vector<32x128xf32> to vector<1x32x128xf32>
    tpu.vector_store %arg4[%c0_22, %c0_23, %c0_24], %47 {strides = array<i32>} : memref<1x32x128xf32, #tpu.memory_space<vmem>>, vector<1x32x128xf32>,
    return
  }
  func.func @transform_0(%arg0: i32) -> (i32, i32, i32) {
    %c0_i32 = arith.constant 0 : i32
    %c0_i32_0 = arith.constant 0 : i32
    %c0_i32_1 = arith.constant 0 : i32
    return %arg0, %c0_i32, %c0_i32_0 : i32, i32, i32
  }
  func.func @transform_1(%arg0: i32) -> (i32, i32, i32) {
    %c0_i32 = arith.constant 0 : i32
    %c0_i32_0 = arith.constant 0 : i32
    %c0_i32_1 = arith.constant 0 : i32
    %c0_i32_2 = arith.constant 0 : i32
    return %c0_i32, %c0_i32_0, %c0_i32_1 : i32, i32, i32
  }
  func.func @transform_2(%arg0: i32) -> (i32, i32) {
    %c0_i32 = arith.constant 0 : i32
    %c0_i32_0 = arith.constant 0 : i32
    %c0_i32_1 = arith.constant 0 : i32
    return %c0_i32, %c0_i32_0 : i32, i32
  }
  func.func @transform_3(%arg0: i32) -> (i32, i32, i32) {
    %c0_i32 = arith.constant 0 : i32
    %c0_i32_0 = arith.constant 0 : i32
    %c0_i32_1 = arith.constant 0 : i32
    return %arg0, %c0_i32, %c0_i32_0 : i32, i32, i32
  }
}

module attributes {stable_mosaic.version = 11 : i64} {
  func.func @_spectral_kernel(%arg0: i32, %arg1: memref<32x80xf32, #tpu.memory_space<vmem>>, %arg2: memref<80x128xf32, #tpu.memory_space<vmem>>, %arg3: memref<1x128xf32, #tpu.memory_space<vmem>>, %arg4: memref<128x128xf32, #tpu.memory_space<vmem>>, %arg5: memref<1x128xf32, #tpu.memory_space<vmem>>, %arg6: memref<32x128xf32, #tpu.memory_space<vmem>>) attributes {dimension_semantics = [#tpu.dimension_semantics<parallel>], iteration_bounds = array<i64: 2>, scalar_prefetch = 0 : i64, scratch_operands = 0 : i64, tpu.core_type = #tpu.core_type<tc>, window_params = [{transform_indices = @transform_0, window_bounds = array<i64: 32, 80>}, {pipeline_mode = #tpu.pipeline_mode<synchronous>, transform_indices = @transform_1, window_bounds = array<i64: 80, 128>}, {pipeline_mode = #tpu.pipeline_mode<synchronous>, transform_indices = @transform_2, window_bounds = array<i64: 1, 128>}, {pipeline_mode = #tpu.pipeline_mode<synchronous>, transform_indices = @transform_3, window_bounds = array<i64: 128, 128>}, {pipeline_mode = #tpu.pipeline_mode<synchronous>, transform_indices = @transform_4, window_bounds = array<i64: 1, 128>}, {transform_indices = @transform_5, window_bounds = array<i64: 32, 128>}]} {
    %c0 = arith.constant 0 : index
    %c0_0 = arith.constant 0 : index
    %0 = vector.load %arg1[%c0, %c0_0] : memref<32x80xf32, #tpu.memory_space<vmem>>, vector<32x80xf32>
    %c0_1 = arith.constant 0 : index
    %c0_2 = arith.constant 0 : index
    %1 = vector.load %arg2[%c0_1, %c0_2] : memref<80x128xf32, #tpu.memory_space<vmem>>, vector<80x128xf32>
    %cst = arith.constant dense<0.000000e+00> : vector<32x128xf32>
    %2 = tpu.matmul %0, %1, %cst {dimension_numbers = #tpu.dot_dimension_numbers<[1], [0], [0], [1], [0, 0, 1, 1], [], []>} : vector<32x80xf32>, vector<80x128xf32>, vector<32x128xf32> -> vector<32x128xf32>
    %c0_3 = arith.constant 0 : index
    %c0_4 = arith.constant 0 : index
    %3 = vector.load %arg3[%c0_3, %c0_4] : memref<1x128xf32, #tpu.memory_space<vmem>>, vector<1x128xf32>
    %4 = vector.broadcast %3 : vector<1x128xf32> to vector<32x128xf32>
    %5 = arith.addf %2, %4 : vector<32x128xf32>
    %6 = math.absf %5 : vector<32x128xf32>
    %cst_5 = arith.constant 0.000000e+00 : f32
    %7 = vector.broadcast %cst_5 : f32 to vector<32x128xf32>
    %8 = arith.subf %7, %6 : vector<32x128xf32>
    %9 = math.exp %8 : vector<32x128xf32>
    %cst_6 = arith.constant 0.000000e+00 : f32
    %10 = vector.broadcast %cst_6 : f32 to vector<32x128xf32>
    %11 = arith.cmpf oge, %5, %10 : vector<32x128xf32>
    %cst_7 = arith.constant 2.000000e+00 : f32
    %12 = vector.broadcast %cst_7 : f32 to vector<32x128xf32>
    %13 = arith.mulf %12, %9 : vector<32x128xf32>
    %cst_8 = arith.constant 1.000000e+00 : f32
    %14 = vector.broadcast %cst_8 : f32 to vector<32x128xf32>
    %15 = arith.addf %14, %13 : vector<32x128xf32>
    %cst_9 = arith.constant 2.000000e+00 : f32
    %16 = vector.broadcast %cst_9 : f32 to vector<32x128xf32>
    %17 = arith.addf %9, %16 : vector<32x128xf32>
    %18 = arith.mulf %9, %17 : vector<32x128xf32>
    %19 = arith.select %11, %15, %18 : vector<32x128xi1>, vector<32x128xf32>
    %cst_10 = arith.constant 2.000000e+00 : f32
    %20 = vector.broadcast %cst_10 : f32 to vector<32x128xf32>
    %21 = arith.mulf %20, %9 : vector<32x128xf32>
    %22 = arith.mulf %21, %9 : vector<32x128xf32>
    %cst_11 = arith.constant 2.000000e+00 : f32
    %23 = vector.broadcast %cst_11 : f32 to vector<32x128xf32>
    %24 = arith.select %11, %22, %23 : vector<32x128xi1>, vector<32x128xf32>
    %25 = arith.addf %19, %24 : vector<32x128xf32>
    %26 = arith.mulf %5, %19 : vector<32x128xf32>
    %27 = tpu.reciprocal %25 {approx = true} : vector<32x128xf32> -> vector<32x128xf32>
    %28 = arith.mulf %26, %27 : vector<32x128xf32>
    %c0_12 = arith.constant 0 : index
    %c0_13 = arith.constant 0 : index
    %29 = vector.load %arg4[%c0_12, %c0_13] : memref<128x128xf32, #tpu.memory_space<vmem>>, vector<128x128xf32>
    %cst_14 = arith.constant dense<0.000000e+00> : vector<32x128xf32>
    %30 = tpu.matmul %28, %29, %cst_14 {dimension_numbers = #tpu.dot_dimension_numbers<[1], [0], [0], [1], [0, 0, 1, 1], [], []>} : vector<32x128xf32>, vector<128x128xf32>, vector<32x128xf32> -> vector<32x128xf32>
    %c0_15 = arith.constant 0 : index
    %c0_16 = arith.constant 0 : index
    %31 = vector.load %arg5[%c0_15, %c0_16] : memref<1x128xf32, #tpu.memory_space<vmem>>, vector<1x128xf32>
    %32 = vector.broadcast %31 : vector<1x128xf32> to vector<32x128xf32>
    %33 = arith.addf %30, %32 : vector<32x128xf32>
    %34 = math.absf %33 : vector<32x128xf32>
    %cst_17 = arith.constant 0.000000e+00 : f32
    %35 = vector.broadcast %cst_17 : f32 to vector<32x128xf32>
    %36 = arith.subf %35, %34 : vector<32x128xf32>
    %37 = math.exp %36 : vector<32x128xf32>
    %cst_18 = arith.constant 0.000000e+00 : f32
    %38 = vector.broadcast %cst_18 : f32 to vector<32x128xf32>
    %39 = arith.cmpf oge, %33, %38 : vector<32x128xf32>
    %cst_19 = arith.constant 2.000000e+00 : f32
    %40 = vector.broadcast %cst_19 : f32 to vector<32x128xf32>
    %41 = arith.mulf %40, %37 : vector<32x128xf32>
    %cst_20 = arith.constant 1.000000e+00 : f32
    %42 = vector.broadcast %cst_20 : f32 to vector<32x128xf32>
    %43 = arith.addf %42, %41 : vector<32x128xf32>
    %cst_21 = arith.constant 2.000000e+00 : f32
    %44 = vector.broadcast %cst_21 : f32 to vector<32x128xf32>
    %45 = arith.addf %37, %44 : vector<32x128xf32>
    %46 = arith.mulf %37, %45 : vector<32x128xf32>
    %47 = arith.select %39, %43, %46 : vector<32x128xi1>, vector<32x128xf32>
    %cst_22 = arith.constant 2.000000e+00 : f32
    %48 = vector.broadcast %cst_22 : f32 to vector<32x128xf32>
    %49 = arith.mulf %48, %37 : vector<32x128xf32>
    %50 = arith.mulf %49, %37 : vector<32x128xf32>
    %cst_23 = arith.constant 2.000000e+00 : f32
    %51 = vector.broadcast %cst_23 : f32 to vector<32x128xf32>
    %52 = arith.select %39, %50, %51 : vector<32x128xi1>, vector<32x128xf32>
    %53 = arith.addf %47, %52 : vector<32x128xf32>
    %54 = arith.mulf %33, %47 : vector<32x128xf32>
    %55 = tpu.reciprocal %53 {approx = true} : vector<32x128xf32> -> vector<32x128xf32>
    %56 = arith.mulf %54, %55 : vector<32x128xf32>
    %c0_24 = arith.constant 0 : index
    %c0_25 = arith.constant 0 : index
    %57 = vector.load %arg6[%c0_24, %c0_25] : memref<32x128xf32, #tpu.memory_space<vmem>>, vector<32x128xf32>
    tpu.vector_store %arg6[%c0_24, %c0_25], %56 {strides = array<i32>} : memref<32x128xf32, #tpu.memory_space<vmem>>, vector<32x128xf32>,
    return
  }
  func.func @transform_0(%arg0: i32) -> (i32, i32) {
    %c0_i32 = arith.constant 0 : i32
    %c0_i32_0 = arith.constant 0 : i32
    return %arg0, %c0_i32 : i32, i32
  }
  func.func @transform_1(%arg0: i32) -> (i32, i32) {
    %c0_i32 = arith.constant 0 : i32
    %c0_i32_0 = arith.constant 0 : i32
    %c0_i32_1 = arith.constant 0 : i32
    return %c0_i32, %c0_i32_0 : i32, i32
  }
  func.func @transform_2(%arg0: i32) -> (i32, i32) {
    %c0_i32 = arith.constant 0 : i32
    %c0_i32_0 = arith.constant 0 : i32
    %c0_i32_1 = arith.constant 0 : i32
    return %c0_i32, %c0_i32_0 : i32, i32
  }
  func.func @transform_3(%arg0: i32) -> (i32, i32) {
    %c0_i32 = arith.constant 0 : i32
    %c0_i32_0 = arith.constant 0 : i32
    %c0_i32_1 = arith.constant 0 : i32
    return %c0_i32, %c0_i32_0 : i32, i32
  }
  func.func @transform_4(%arg0: i32) -> (i32, i32) {
    %c0_i32 = arith.constant 0 : i32
    %c0_i32_0 = arith.constant 0 : i32
    %c0_i32_1 = arith.constant 0 : i32
    return %c0_i32, %c0_i32_0 : i32, i32
  }
  func.func @transform_5(%arg0: i32) -> (i32, i32) {
    %c0_i32 = arith.constant 0 : i32
    %c0_i32_0 = arith.constant 0 : i32
    return %arg0, %c0_i32 : i32, i32
  }
}

module attributes {stable_mosaic.version = 11 : i64} {
  func.func @_conv_glu_kernel(%arg0: i32, %arg1: memref<1x36x128xf32, #tpu.memory_space<vmem>>, %arg2: memref<5x128x256xf32, #tpu.memory_space<vmem>>, %arg3: memref<1x256xf32, #tpu.memory_space<vmem>>, %arg4: memref<1x32x128xf32, #tpu.memory_space<vmem>>) attributes {dimension_semantics = [#tpu.dimension_semantics<parallel>], iteration_bounds = array<i64: 2>, scalar_prefetch = 0 : i64, scratch_operands = 0 : i64, tpu.core_type = #tpu.core_type<tc>, window_params = [{transform_indices = @transform_0, window_bounds = array<i64: 1, 36, 128>}, {pipeline_mode = #tpu.pipeline_mode<synchronous>, transform_indices = @transform_1, window_bounds = array<i64: 5, 128, 256>}, {pipeline_mode = #tpu.pipeline_mode<synchronous>, transform_indices = @transform_2, window_bounds = array<i64: 1, 256>}, {transform_indices = @transform_3, window_bounds = array<i64: 1, 32, 128>}]} {
    %c0 = arith.constant 0 : index
    %c0_0 = arith.constant 0 : index
    %c0_1 = arith.constant 0 : index
    %0 = vector.load %arg1[%c0, %c0_0, %c0_1] : memref<1x36x128xf32, #tpu.memory_space<vmem>>, vector<1x36x128xf32>
    %1 = vector.shape_cast %0 : vector<1x36x128xf32> to vector<36x128xf32>
    %c0_2 = arith.constant 0 : index
    %c0_3 = arith.constant 0 : index
    %2 = vector.load %arg3[%c0_2, %c0_3] : memref<1x256xf32, #tpu.memory_space<vmem>>, vector<1x256xf32>
    %c0_4 = arith.constant 0 : index
    %c0_5 = arith.constant 0 : index
    %c0_6 = arith.constant 0 : index
    %3 = vector.load %arg2[%c0_4, %c0_5, %c0_6] : memref<5x128x256xf32, #tpu.memory_space<vmem>>, vector<1x128x256xf32>
    %4 = vector.shape_cast %3 : vector<1x128x256xf32> to vector<128x256xf32>
    %cst = arith.constant dense<0.000000e+00> : vector<36x256xf32>
    %5 = tpu.matmul %1, %4, %cst {dimension_numbers = #tpu.dot_dimension_numbers<[1], [0], [0], [1], [0, 0, 1, 1], [], []>} : vector<36x128xf32>, vector<128x256xf32>, vector<36x256xf32> -> vector<36x256xf32>
    %6 = vector.extract_strided_slice %5 {offsets = [0, 0], sizes = [32, 256], strides = [1, 1]} : vector<36x256xf32> to vector<32x256xf32>
    %7 = vector.broadcast %2 : vector<1x256xf32> to vector<32x256xf32>
    %8 = arith.addf %7, %6 : vector<32x256xf32>
    %c1 = arith.constant 1 : index
    %c0_7 = arith.constant 0 : index
    %c0_8 = arith.constant 0 : index
    %9 = vector.load %arg2[%c1, %c0_7, %c0_8] : memref<5x128x256xf32, #tpu.memory_space<vmem>>, vector<1x128x256xf32>
    %10 = vector.shape_cast %9 : vector<1x128x256xf32> to vector<128x256xf32>
    %cst_9 = arith.constant dense<0.000000e+00> : vector<36x256xf32>
    %11 = tpu.matmul %1, %10, %cst_9 {dimension_numbers = #tpu.dot_dimension_numbers<[1], [0], [0], [1], [0, 0, 1, 1], [], []>} : vector<36x128xf32>, vector<128x256xf32>, vector<36x256xf32> -> vector<36x256xf32>
    %12 = vector.extract_strided_slice %11 {offsets = [1, 0], sizes = [32, 256], strides = [1, 1]} : vector<36x256xf32> to vector<32x256xf32>
    %13 = arith.addf %8, %12 : vector<32x256xf32>
    %c2 = arith.constant 2 : index
    %c0_10 = arith.constant 0 : index
    %c0_11 = arith.constant 0 : index
    %14 = vector.load %arg2[%c2, %c0_10, %c0_11] : memref<5x128x256xf32, #tpu.memory_space<vmem>>, vector<1x128x256xf32>
    %15 = vector.shape_cast %14 : vector<1x128x256xf32> to vector<128x256xf32>
    %cst_12 = arith.constant dense<0.000000e+00> : vector<36x256xf32>
    %16 = tpu.matmul %1, %15, %cst_12 {dimension_numbers = #tpu.dot_dimension_numbers<[1], [0], [0], [1], [0, 0, 1, 1], [], []>} : vector<36x128xf32>, vector<128x256xf32>, vector<36x256xf32> -> vector<36x256xf32>
    %17 = vector.extract_strided_slice %16 {offsets = [2, 0], sizes = [32, 256], strides = [1, 1]} : vector<36x256xf32> to vector<32x256xf32>
    %18 = arith.addf %13, %17 : vector<32x256xf32>
    %c3 = arith.constant 3 : index
    %c0_13 = arith.constant 0 : index
    %c0_14 = arith.constant 0 : index
    %19 = vector.load %arg2[%c3, %c0_13, %c0_14] : memref<5x128x256xf32, #tpu.memory_space<vmem>>, vector<1x128x256xf32>
    %20 = vector.shape_cast %19 : vector<1x128x256xf32> to vector<128x256xf32>
    %cst_15 = arith.constant dense<0.000000e+00> : vector<36x256xf32>
    %21 = tpu.matmul %1, %20, %cst_15 {dimension_numbers = #tpu.dot_dimension_numbers<[1], [0], [0], [1], [0, 0, 1, 1], [], []>} : vector<36x128xf32>, vector<128x256xf32>, vector<36x256xf32> -> vector<36x256xf32>
    %22 = vector.extract_strided_slice %21 {offsets = [3, 0], sizes = [32, 256], strides = [1, 1]} : vector<36x256xf32> to vector<32x256xf32>
    %23 = arith.addf %18, %22 : vector<32x256xf32>
    %c4 = arith.constant 4 : index
    %c0_16 = arith.constant 0 : index
    %c0_17 = arith.constant 0 : index
    %24 = vector.load %arg2[%c4, %c0_16, %c0_17] : memref<5x128x256xf32, #tpu.memory_space<vmem>>, vector<1x128x256xf32>
    %25 = vector.shape_cast %24 : vector<1x128x256xf32> to vector<128x256xf32>
    %cst_18 = arith.constant dense<0.000000e+00> : vector<36x256xf32>
    %26 = tpu.matmul %1, %25, %cst_18 {dimension_numbers = #tpu.dot_dimension_numbers<[1], [0], [0], [1], [0, 0, 1, 1], [], []>} : vector<36x128xf32>, vector<128x256xf32>, vector<36x256xf32> -> vector<36x256xf32>
    %27 = vector.extract_strided_slice %26 {offsets = [4, 0], sizes = [32, 256], strides = [1, 1]} : vector<36x256xf32> to vector<32x256xf32>
    %28 = arith.addf %23, %27 : vector<32x256xf32>
    %29 = vector.extract_strided_slice %28 {offsets = [0, 0], sizes = [32, 128], strides = [1, 1]} : vector<32x256xf32> to vector<32x128xf32>
    %30 = vector.extract_strided_slice %28 {offsets = [0, 128], sizes = [32, 128], strides = [1, 1]} : vector<32x256xf32> to vector<32x128xf32>
    %31 = vector.extract_strided_slice %1 {offsets = [2, 0], sizes = [32, 128], strides = [1, 1]} : vector<36x128xf32> to vector<32x128xf32>
    %32 = math.absf %30 : vector<32x128xf32>
    %cst_19 = arith.constant 0.000000e+00 : f32
    %33 = vector.broadcast %cst_19 : f32 to vector<32x128xf32>
    %34 = arith.subf %33, %32 : vector<32x128xf32>
    %35 = math.exp %34 : vector<32x128xf32>
    %cst_20 = arith.constant 1.000000e+00 : f32
    %36 = vector.broadcast %cst_20 : f32 to vector<32x128xf32>
    %37 = arith.addf %36, %35 : vector<32x128xf32>
    %38 = tpu.reciprocal %37 {approx = true} : vector<32x128xf32> -> vector<32x128xf32>
    %cst_21 = arith.constant 0.000000e+00 : f32
    %39 = vector.broadcast %cst_21 : f32 to vector<32x128xf32>
    %40 = arith.cmpf oge, %30, %39 : vector<32x128xf32>
    %41 = arith.mulf %35, %38 : vector<32x128xf32>
    %42 = arith.select %40, %38, %41 : vector<32x128xi1>, vector<32x128xf32>
    %43 = arith.mulf %29, %42 : vector<32x128xf32>
    %44 = arith.addf %31, %43 : vector<32x128xf32>
    %c0_22 = arith.constant 0 : index
    %c0_23 = arith.constant 0 : index
    %c0_24 = arith.constant 0 : index
    %45 = vector.load %arg4[%c0_22, %c0_23, %c0_24] : memref<1x32x128xf32, #tpu.memory_space<vmem>>, vector<1x32x128xf32>
    %46 = vector.shape_cast %45 : vector<1x32x128xf32> to vector<32x128xf32>
    %47 = vector.shape_cast %44 : vector<32x128xf32> to vector<1x32x128xf32>
    tpu.vector_store %arg4[%c0_22, %c0_23, %c0_24], %47 {strides = array<i32>} : memref<1x32x128xf32, #tpu.memory_space<vmem>>, vector<1x32x128xf32>,
    return
  }
  func.func @transform_0(%arg0: i32) -> (i32, i32, i32) {
    %c0_i32 = arith.constant 0 : i32
    %c0_i32_0 = arith.constant 0 : i32
    %c0_i32_1 = arith.constant 0 : i32
    return %arg0, %c0_i32, %c0_i32_0 : i32, i32, i32
  }
  func.func @transform_1(%arg0: i32) -> (i32, i32, i32) {
    %c0_i32 = arith.constant 0 : i32
    %c0_i32_0 = arith.constant 0 : i32
    %c0_i32_1 = arith.constant 0 : i32
    %c0_i32_2 = arith.constant 0 : i32
    return %c0_i32, %c0_i32_0, %c0_i32_1 : i32, i32, i32
  }
  func.func @transform_2(%arg0: i32) -> (i32, i32) {
    %c0_i32 = arith.constant 0 : i32
    %c0_i32_0 = arith.constant 0 : i32
    %c0_i32_1 = arith.constant 0 : i32
    return %c0_i32, %c0_i32_0 : i32, i32
  }
  func.func @transform_3(%arg0: i32) -> (i32, i32, i32) {
    %c0_i32 = arith.constant 0 : i32
    %c0_i32_0 = arith.constant 0 : i32
    %c0_i32_1 = arith.constant 0 : i32
    return %arg0, %c0_i32, %c0_i32_0 : i32, i32, i32
  }
}

module attributes {stable_mosaic.version = 11 : i64} {
  func.func @_linear_kernel(%arg0: i32, %arg1: memref<32x128xf32, #tpu.memory_space<vmem>>, %arg2: memref<128x384xf32, #tpu.memory_space<vmem>>, %arg3: memref<1x384xf32, #tpu.memory_space<vmem>>, %arg4: memref<32x384xf32, #tpu.memory_space<vmem>>) attributes {dimension_semantics = [#tpu.dimension_semantics<parallel>], iteration_bounds = array<i64: 2>, scalar_prefetch = 0 : i64, scratch_operands = 0 : i64, tpu.core_type = #tpu.core_type<tc>, window_params = [{transform_indices = @transform_0, window_bounds = array<i64: 32, 128>}, {pipeline_mode = #tpu.pipeline_mode<synchronous>, transform_indices = @transform_1, window_bounds = array<i64: 128, 384>}, {pipeline_mode = #tpu.pipeline_mode<synchronous>, transform_indices = @transform_2, window_bounds = array<i64: 1, 384>}, {transform_indices = @transform_3, window_bounds = array<i64: 32, 384>}]} {
    %c0 = arith.constant 0 : index
    %c0_0 = arith.constant 0 : index
    %0 = vector.load %arg1[%c0, %c0_0] : memref<32x128xf32, #tpu.memory_space<vmem>>, vector<32x128xf32>
    %c0_1 = arith.constant 0 : index
    %c0_2 = arith.constant 0 : index
    %1 = vector.load %arg2[%c0_1, %c0_2] : memref<128x384xf32, #tpu.memory_space<vmem>>, vector<128x384xf32>
    %cst = arith.constant dense<0.000000e+00> : vector<32x384xf32>
    %2 = tpu.matmul %0, %1, %cst {dimension_numbers = #tpu.dot_dimension_numbers<[1], [0], [0], [1], [0, 0, 1, 1], [], []>} : vector<32x128xf32>, vector<128x384xf32>, vector<32x384xf32> -> vector<32x384xf32>
    %c0_3 = arith.constant 0 : index
    %c0_4 = arith.constant 0 : index
    %3 = vector.load %arg3[%c0_3, %c0_4] : memref<1x384xf32, #tpu.memory_space<vmem>>, vector<1x384xf32>
    %4 = vector.broadcast %3 : vector<1x384xf32> to vector<32x384xf32>
    %5 = arith.addf %2, %4 : vector<32x384xf32>
    %c0_5 = arith.constant 0 : index
    %c0_6 = arith.constant 0 : index
    %6 = vector.load %arg4[%c0_5, %c0_6] : memref<32x384xf32, #tpu.memory_space<vmem>>, vector<32x384xf32>
    tpu.vector_store %arg4[%c0_5, %c0_6], %5 {strides = array<i32>} : memref<32x384xf32, #tpu.memory_space<vmem>>, vector<32x384xf32>,
    return
  }
  func.func @transform_0(%arg0: i32) -> (i32, i32) {
    %c0_i32 = arith.constant 0 : i32
    %c0_i32_0 = arith.constant 0 : i32
    return %arg0, %c0_i32 : i32, i32
  }
  func.func @transform_1(%arg0: i32) -> (i32, i32) {
    %c0_i32 = arith.constant 0 : i32
    %c0_i32_0 = arith.constant 0 : i32
    %c0_i32_1 = arith.constant 0 : i32
    return %c0_i32, %c0_i32_0 : i32, i32
  }
  func.func @transform_2(%arg0: i32) -> (i32, i32) {
    %c0_i32 = arith.constant 0 : i32
    %c0_i32_0 = arith.constant 0 : i32
    %c0_i32_1 = arith.constant 0 : i32
    return %c0_i32, %c0_i32_0 : i32, i32
  }
  func.func @transform_3(%arg0: i32) -> (i32, i32) {
    %c0_i32 = arith.constant 0 : i32
    %c0_i32_0 = arith.constant 0 : i32
    return %arg0, %c0_i32 : i32, i32
  }
}

module attributes {stable_mosaic.version = 11 : i64} {
  func.func @_attn_out_kernel(%arg0: i32, %arg1: memref<1x32x384xf32, #tpu.memory_space<vmem>>, %arg2: memref<1x32x128xf32, #tpu.memory_space<vmem>>, %arg3: memref<128x128xf32, #tpu.memory_space<vmem>>, %arg4: memref<1x128xf32, #tpu.memory_space<vmem>>, %arg5: memref<1x32x128xf32, #tpu.memory_space<vmem>>) attributes {dimension_semantics = [#tpu.dimension_semantics<parallel>], iteration_bounds = array<i64: 2>, scalar_prefetch = 0 : i64, scratch_operands = 0 : i64, tpu.core_type = #tpu.core_type<tc>, window_params = [{transform_indices = @transform_0, window_bounds = array<i64: 1, 32, 384>}, {transform_indices = @transform_1, window_bounds = array<i64: 1, 32, 128>}, {pipeline_mode = #tpu.pipeline_mode<synchronous>, transform_indices = @transform_2, window_bounds = array<i64: 128, 128>}, {pipeline_mode = #tpu.pipeline_mode<synchronous>, transform_indices = @transform_3, window_bounds = array<i64: 1, 128>}, {transform_indices = @transform_4, window_bounds = array<i64: 1, 32, 128>}]} {
    %c0 = arith.constant 0 : index
    %c0_0 = arith.constant 0 : index
    %c0_1 = arith.constant 0 : index
    %0 = vector.load %arg1[%c0, %c0_0, %c0_1] : memref<1x32x384xf32, #tpu.memory_space<vmem>>, vector<1x32x384xf32>
    %1 = vector.shape_cast %0 : vector<1x32x384xf32> to vector<32x384xf32>
    %2 = vector.extract_strided_slice %1 {offsets = [0, 0], sizes = [32, 64], strides = [1, 1]} : vector<32x384xf32> to vector<32x64xf32>
    %3 = vector.extract_strided_slice %1 {offsets = [0, 128], sizes = [32, 64], strides = [1, 1]} : vector<32x384xf32> to vector<32x64xf32>
    %4 = vector.extract_strided_slice %1 {offsets = [0, 256], sizes = [32, 64], strides = [1, 1]} : vector<32x384xf32> to vector<32x64xf32>
    %cst = arith.constant 0.0883883461 : f32
    %5 = vector.broadcast %cst : f32 to vector<32x64xf32>
    %6 = arith.mulf %2, %5 : vector<32x64xf32>
    %cst_2 = arith.constant dense<0.000000e+00> : vector<32x32xf32>
    %7 = tpu.matmul %6, %3, %cst_2 {dimension_numbers = #tpu.dot_dimension_numbers<[1], [1], [0], [0], [0, 0, 1, 0], [], []>} : vector<32x64xf32>, vector<32x64xf32>, vector<32x32xf32> -> vector<32x32xf32>
    %cst_3 = arith.constant dense<0xFF800000> : vector<32xf32>
    %8 = vector.multi_reduction <maximumf>, %7, %cst_3 [1] : vector<32x32xf32> to vector<32xf32>
    %9 = vector.shape_cast %8 : vector<32xf32> to vector<32x1xf32>
    %10 = vector.broadcast %9 : vector<32x1xf32> to vector<32x32xf32>
    %11 = arith.subf %7, %10 : vector<32x32xf32>
    %12 = math.exp %11 : vector<32x32xf32>
    %cst_4 = arith.constant dense<0.000000e+00> : vector<32xf32>
    %13 = vector.multi_reduction <add>, %12, %cst_4 [1] : vector<32x32xf32> to vector<32xf32>
    %14 = vector.shape_cast %13 : vector<32xf32> to vector<32x1xf32>
    %15 = tpu.reciprocal %14 {approx = true} : vector<32x1xf32> -> vector<32x1xf32>
    %16 = vector.broadcast %15 : vector<32x1xf32> to vector<32x32xf32>
    %17 = arith.mulf %12, %16 : vector<32x32xf32>
    %cst_5 = arith.constant dense<0.000000e+00> : vector<32x64xf32>
    %18 = tpu.matmul %17, %4, %cst_5 {dimension_numbers = #tpu.dot_dimension_numbers<[1], [0], [0], [1], [0, 0, 1, 1], [], []>} : vector<32x32xf32>, vector<32x64xf32>, vector<32x64xf32> -> vector<32x64xf32>
    %19 = vector.extract_strided_slice %1 {offsets = [0, 64], sizes = [32, 64], strides = [1, 1]} : vector<32x384xf32> to vector<32x64xf32>
    %20 = vector.extract_strided_slice %1 {offsets = [0, 192], sizes = [32, 64], strides = [1, 1]} : vector<32x384xf32> to vector<32x64xf32>
    %21 = vector.extract_strided_slice %1 {offsets = [0, 320], sizes = [32, 64], strides = [1, 1]} : vector<32x384xf32> to vector<32x64xf32>
    %cst_6 = arith.constant 0.0883883461 : f32
    %22 = vector.broadcast %cst_6 : f32 to vector<32x64xf32>
    %23 = arith.mulf %19, %22 : vector<32x64xf32>
    %cst_7 = arith.constant dense<0.000000e+00> : vector<32x32xf32>
    %24 = tpu.matmul %23, %20, %cst_7 {dimension_numbers = #tpu.dot_dimension_numbers<[1], [1], [0], [0], [0, 0, 1, 0], [], []>} : vector<32x64xf32>, vector<32x64xf32>, vector<32x32xf32> -> vector<32x32xf32>
    %cst_8 = arith.constant dense<0xFF800000> : vector<32xf32>
    %25 = vector.multi_reduction <maximumf>, %24, %cst_8 [1] : vector<32x32xf32> to vector<32xf32>
    %26 = vector.shape_cast %25 : vector<32xf32> to vector<32x1xf32>
    %27 = vector.broadcast %26 : vector<32x1xf32> to vector<32x32xf32>
    %28 = arith.subf %24, %27 : vector<32x32xf32>
    %29 = math.exp %28 : vector<32x32xf32>
    %cst_9 = arith.constant dense<0.000000e+00> : vector<32xf32>
    %30 = vector.multi_reduction <add>, %29, %cst_9 [1] : vector<32x32xf32> to vector<32xf32>
    %31 = vector.shape_cast %30 : vector<32xf32> to vector<32x1xf32>
    %32 = tpu.reciprocal %31 {approx = true} : vector<32x1xf32> -> vector<32x1xf32>
    %33 = vector.broadcast %32 : vector<32x1xf32> to vector<32x32xf32>
    %34 = arith.mulf %29, %33 : vector<32x32xf32>
    %cst_10 = arith.constant dense<0.000000e+00> : vector<32x64xf32>
    %35 = tpu.matmul %34, %21, %cst_10 {dimension_numbers = #tpu.dot_dimension_numbers<[1], [0], [0], [1], [0, 0, 1, 1], [], []>} : vector<32x32xf32>, vector<32x64xf32>, vector<32x64xf32> -> vector<32x64xf32>
    %36 = tpu.concatenate %18, %35 in 1 : vector<32x64xf32>, vector<32x64xf32> -> vector<32x128xf32>
    %c0_11 = arith.constant 0 : index
    %c0_12 = arith.constant 0 : index
    %37 = vector.load %arg3[%c0_11, %c0_12] : memref<128x128xf32, #tpu.memory_space<vmem>>, vector<128x128xf32>
    %cst_13 = arith.constant dense<0.000000e+00> : vector<32x128xf32>
    %38 = tpu.matmul %36, %37, %cst_13 {dimension_numbers = #tpu.dot_dimension_numbers<[1], [0], [0], [1], [0, 0, 1, 1], [], []>} : vector<32x128xf32>, vector<128x128xf32>, vector<32x128xf32> -> vector<32x128xf32>
    %c0_14 = arith.constant 0 : index
    %c0_15 = arith.constant 0 : index
    %39 = vector.load %arg4[%c0_14, %c0_15] : memref<1x128xf32, #tpu.memory_space<vmem>>, vector<1x128xf32>
    %40 = vector.broadcast %39 : vector<1x128xf32> to vector<32x128xf32>
    %41 = arith.addf %38, %40 : vector<32x128xf32>
    %c0_16 = arith.constant 0 : index
    %c0_17 = arith.constant 0 : index
    %c0_18 = arith.constant 0 : index
    %42 = vector.load %arg2[%c0_16, %c0_17, %c0_18] : memref<1x32x128xf32, #tpu.memory_space<vmem>>, vector<1x32x128xf32>
    %43 = vector.shape_cast %42 : vector<1x32x128xf32> to vector<32x128xf32>
    %44 = arith.addf %41, %43 : vector<32x128xf32>
    %c0_19 = arith.constant 0 : index
    %c0_20 = arith.constant 0 : index
    %c0_21 = arith.constant 0 : index
    %45 = vector.load %arg5[%c0_19, %c0_20, %c0_21] : memref<1x32x128xf32, #tpu.memory_space<vmem>>, vector<1x32x128xf32>
    %46 = vector.shape_cast %45 : vector<1x32x128xf32> to vector<32x128xf32>
    %47 = vector.shape_cast %44 : vector<32x128xf32> to vector<1x32x128xf32>
    tpu.vector_store %arg5[%c0_19, %c0_20, %c0_21], %47 {strides = array<i32>} : memref<1x32x128xf32, #tpu.memory_space<vmem>>, vector<1x32x128xf32>,
    return
  }
  func.func @transform_0(%arg0: i32) -> (i32, i32, i32) {
    %c0_i32 = arith.constant 0 : i32
    %c0_i32_0 = arith.constant 0 : i32
    %c0_i32_1 = arith.constant 0 : i32
    return %arg0, %c0_i32, %c0_i32_0 : i32, i32, i32
  }
  func.func @transform_1(%arg0: i32) -> (i32, i32, i32) {
    %c0_i32 = arith.constant 0 : i32
    %c0_i32_0 = arith.constant 0 : i32
    %c0_i32_1 = arith.constant 0 : i32
    return %arg0, %c0_i32, %c0_i32_0 : i32, i32, i32
  }
  func.func @transform_2(%arg0: i32) -> (i32, i32) {
    %c0_i32 = arith.constant 0 : i32
    %c0_i32_0 = arith.constant 0 : i32
    %c0_i32_1 = arith.constant 0 : i32
    return %c0_i32, %c0_i32_0 : i32, i32
  }
  func.func @transform_3(%arg0: i32) -> (i32, i32) {
    %c0_i32 = arith.constant 0 : i32
    %c0_i32_0 = arith.constant 0 : i32
    %c0_i32_1 = arith.constant 0 : i32
    return %c0_i32, %c0_i32_0 : i32, i32
  }
  func.func @transform_4(%arg0: i32) -> (i32, i32, i32) {
    %c0_i32 = arith.constant 0 : i32
    %c0_i32_0 = arith.constant 0 : i32
    %c0_i32_1 = arith.constant 0 : i32
    return %arg0, %c0_i32, %c0_i32_0 : i32, i32, i32
  }
}

module attributes {stable_mosaic.version = 11 : i64} {
  func.func @_linear_kernel(%arg0: i32, %arg1: memref<2x128xf32, #tpu.memory_space<vmem>>, %arg2: memref<128x256xf32, #tpu.memory_space<vmem>>, %arg3: memref<1x256xf32, #tpu.memory_space<vmem>>, %arg4: memref<2x256xf32, #tpu.memory_space<vmem>>) attributes {dimension_semantics = [#tpu.dimension_semantics<parallel>], iteration_bounds = array<i64: 1>, scalar_prefetch = 0 : i64, scratch_operands = 0 : i64, tpu.core_type = #tpu.core_type<tc>, window_params = [{transform_indices = @transform_0, window_bounds = array<i64: 2, 128>}, {pipeline_mode = #tpu.pipeline_mode<synchronous>, transform_indices = @transform_1, window_bounds = array<i64: 128, 256>}, {pipeline_mode = #tpu.pipeline_mode<synchronous>, transform_indices = @transform_2, window_bounds = array<i64: 1, 256>}, {transform_indices = @transform_3, window_bounds = array<i64: 2, 256>}]} {
    %c0 = arith.constant 0 : index
    %c0_0 = arith.constant 0 : index
    %0 = vector.load %arg1[%c0, %c0_0] : memref<2x128xf32, #tpu.memory_space<vmem>>, vector<2x128xf32>
    %c0_1 = arith.constant 0 : index
    %c0_2 = arith.constant 0 : index
    %1 = vector.load %arg2[%c0_1, %c0_2] : memref<128x256xf32, #tpu.memory_space<vmem>>, vector<128x256xf32>
    %cst = arith.constant dense<0.000000e+00> : vector<2x256xf32>
    %2 = tpu.matmul %0, %1, %cst {dimension_numbers = #tpu.dot_dimension_numbers<[1], [0], [0], [1], [0, 0, 1, 1], [], []>} : vector<2x128xf32>, vector<128x256xf32>, vector<2x256xf32> -> vector<2x256xf32>
    %c0_3 = arith.constant 0 : index
    %c0_4 = arith.constant 0 : index
    %3 = vector.load %arg3[%c0_3, %c0_4] : memref<1x256xf32, #tpu.memory_space<vmem>>, vector<1x256xf32>
    %4 = vector.broadcast %3 : vector<1x256xf32> to vector<2x256xf32>
    %5 = arith.addf %2, %4 : vector<2x256xf32>
    %c0_5 = arith.constant 0 : index
    %c0_6 = arith.constant 0 : index
    %6 = vector.load %arg4[%c0_5, %c0_6] : memref<2x256xf32, #tpu.memory_space<vmem>>, vector<2x256xf32>
    tpu.vector_store %arg4[%c0_5, %c0_6], %5 {strides = array<i32>} : memref<2x256xf32, #tpu.memory_space<vmem>>, vector<2x256xf32>,
    return
  }
  func.func @transform_0(%arg0: i32) -> (i32, i32) {
    %c0_i32 = arith.constant 0 : i32
    %c0_i32_0 = arith.constant 0 : i32
    return %arg0, %c0_i32 : i32, i32
  }
  func.func @transform_1(%arg0: i32) -> (i32, i32) {
    %c0_i32 = arith.constant 0 : i32
    %c0_i32_0 = arith.constant 0 : i32
    %c0_i32_1 = arith.constant 0 : i32
    return %c0_i32, %c0_i32_0 : i32, i32
  }
  func.func @transform_2(%arg0: i32) -> (i32, i32) {
    %c0_i32 = arith.constant 0 : i32
    %c0_i32_0 = arith.constant 0 : i32
    %c0_i32_1 = arith.constant 0 : i32
    return %c0_i32, %c0_i32_0 : i32, i32
  }
  func.func @transform_3(%arg0: i32) -> (i32, i32) {
    %c0_i32 = arith.constant 0 : i32
    %c0_i32_0 = arith.constant 0 : i32
    return %arg0, %c0_i32 : i32, i32
  }
}

</mosaic_0001>

<bundles_post_ra>
// kernel: mel_style_encoder_forward.6
= control target key start
LH: loop header
LB: loop body
LE: loop exit
PB: predicated region body
PF: predicated region fallthrough
CT: control target
= control target key end

     0   :  { %10 = vsyncpa [#allocation3], 0  ;;  %s1432_s0 = inlined_call_operand.hbm [shape: f32[64,80], index: 0, kind: input, shape index: {}]   ;;  %s1433_s1 = inlined_call_operand.hbm [shape: f32[80,128], index: 1, kind: input, shape index: {}]   ;;  %s1434_s2 = inlined_call_operand.hbm [shape: f32[1,128], index: 2, kind: input, shape index: {}]   ;;  %s1435_s3 = inlined_call_operand.hbm [shape: f32[128,128], index: 3, kind: input, shape index: {}]   ;;  %s1436_s4 = inlined_call_operand.hbm [shape: f32[1,128], index: 4, kind: input, shape index: {}]   ;;  %s1437_s5 = inlined_call_operand.vmem [shape: f32[64,128], index: 5, kind: output, shape index: {}]  }
   0x1   :  { %12 = vsyncpa [#allocation3 + $0x1], 0 }
   0x2   :  { %13 = vsyncpa [#allocation5], 0 }
   0x3   :  { %14 = vsyncpa [#allocation8], 0  ;;  %s1218_s18 = smov 0   ;;  %s1220_s19 = smov 0  }
   0x4   :  { %s1222_s20 = smov 0   ;;  %s1224_s21 = smov 0  }
   0x5 LB: > { %s765_s22 = sadd.s32 4294967295, %s1179_s21   ;;  %p40_p0 = scmp.ne.s32.totalorder %s1171_s19, %s1167_s18  ;;  %s1179_s21 = sphi %s1224_s21, %s1453_s21   ;;  %s1175_s20 = sphi %s1222_s20, %s1452_s20   ;;  %s1171_s19 = sphi %s1220_s19, %s1451_s19   ;;  %s1167_s18 = sphi %s1218_s18, %s1450_s18  }
   0x6   : > { %p1240_p1 = scmp.eq.s32.totalorder %s765_s22, 0  ;;  %p767_p2 = scmp.ge.s32.totalorder %s1179_s21, 1 }
   0x7   : > { %p161_p3 = scmp.lt.s32.totalorder %s1179_s21, 3  ;;  %s1181_s26 = smov [#allocation4]  }
   0x8   : > { %s1442_s23 = scalar_select %p1240_p1, 1, 0 }
   0x9   : > { %p1248_p4 = por %p1240_p1, %p40_p0  ;;  %p1252_p5 = pnand %p767_p2, %p161_p3 }
   0xa   : > { %s173_s27 = sshll.u32 %s1181_s26, 4  ;;  %s1182_s29 = smov [#allocation7]   ;;  %s174_s27 = int_to_ptr.vmem [resolvable:$true] %s173_s27 }
   0xb   : > { %s1443_s24 = scalar_select %p1248_p4, 1, 0 }
   0xc   : > { %s1444_s25 = scalar_select %p1252_p5, 1, 0 }
   0xd   : > { %p909_p6 = pneg %p1252_p5  ;;  %s197_s30 = sshll.u32 %s1182_s29, 4  ;;  %s198_s30 = int_to_ptr.vmem [resolvable:$true] %s197_s30 }
   0xe   : > { %s1183_s6 = smov [#allocation6]   ;;  %s1016_s8 = scalar_lea.vmem %s174_s27, 1280 }
   0xf   : > { %p1260_p7 = pnand %p909_p6, %p1240_p1  ;;  %s187_s7 = sshll.u32 %s1183_s6, 4  ;;  %s188_s7 = int_to_ptr.vmem [resolvable:$true] %s187_s7 }
  0x10   : > { %p1017_p9 = scmp.ne.s32.totalorder %s174_s27, %s1016_s8  ;;  %p1024_p12 = scmp.lt.s32.totalorder %s174_s27, %s174_s27 }
  0x11   : > { %p1007_p8 = pneg %p1260_p7  ;;  %p1025_p13 = scmp.lt.s32.totalorder %s1016_s8, %s1016_s8 }
  0x13   : > { %p1019_p10 = pnand %p1017_p9, %p1007_p8  ;;  %p1026_p0 = por %p1025_p13, %p1024_p12 }
  0x15   : > { %p1020_p11 = pneg %p1019_p10 }
  0x17   : > { %p1027_p2 = pnand %p1026_p0, %p1020_p11 }
  0x19   : > { %1030 = shalt.err (!%p1027_p2)
}
  0x1a   : > { %s1184_s9 = smov 128   ;;  %s1185_s10 = smov 8  }
  0x1b   : > { %912 = dma.hbm_to_vmem [thread:$0]  (!%p1260_p7), %s1433_s1, 1280, %s174_s27, [#allocation5], %s1184_s9, %s1184_s9, %s1185_s10  }
  0x1c   : > { %s1042_s13 = scalar_lea.vmem %s198_s30, 2048  ;;  %p1050_p10 = scmp.lt.s32.totalorder %s198_s30, %s198_s30 }
  0x1d   : > { %p1043_p3 = scmp.ne.s32.totalorder %s198_s30, %s1042_s13  ;;  %p1051_p11 = scmp.lt.s32.totalorder %s1042_s13, %s1042_s13 }
  0x1f   : > { %p1045_p6 = pnand %p1043_p3, %p1007_p8  ;;  %p1052_p12 = por %p1051_p11, %p1050_p10 }
  0x21   : > { %p1046_p9 = pneg %p1045_p6 }
  0x23   : > { %p1053_p13 = pnand %p1052_p12, %p1046_p9 }
  0x25   : > { %1056 = shalt.err (!%p1053_p13)
}
  0x26   : > { %918 = dma.hbm_to_vmem [thread:$0]  (!%p1260_p7), %s1435_s3, 2048, %s198_s30, [#allocation8], %s1184_s9, %s1184_s9, %s1185_s10  }
  0x27   : > { %s1068_s16 = scalar_lea.vmem %s188_s7, 16  ;;  %s1075_s17 = scalar_lea.vmem %s188_s7, 32 }
  0x28   : > { %p1069_p0 = scmp.ne.s32.totalorder %s188_s7, %s1068_s16  ;;  %p1076_p6 = scmp.lt.s32.totalorder %s188_s7, %s188_s7 }
  0x29   : > { %p1077_p9 = scmp.lt.s32.totalorder %s1075_s17, %s1068_s16 }
  0x2a   : > { %p1071_p2 = pnand %p1069_p0, %p1007_p8 }
  0x2b   : > { %p1078_p10 = por %p1077_p9, %p1076_p6 }
  0x2c   : > { %p1072_p3 = pneg %p1071_p2 }
  0x2e   : > { %p1079_p11 = pnand %p1078_p10, %p1072_p3 }
  0x30   : > { %1082 = shalt.err (!%p1079_p11)
}
  0x31   : > { %915 = dma.hbm_to_vmem [thread:$0]  (!%p1260_p7), %s1434_s2, 16, %s188_s7, [#allocation5]  }
  0x32   : > { %s1186_s27 = smov [#allocation9]  }
  0x33   : > { %s211_s29 = sshll.u32 %s1186_s27, 4  ;;  %s212_s29 = int_to_ptr.vmem [resolvable:$true] %s211_s29 }
  0x34   : > { %s1094_s30 = scalar_lea.vmem %s212_s29, 16  ;;  %s1101_s6 = scalar_lea.vmem %s212_s29, 32 }
  0x35   : > { %p1095_p12 = scmp.ne.s32.totalorder %s212_s29, %s1094_s30  ;;  %p1102_p2 = scmp.lt.s32.totalorder %s212_s29, %s212_s29 }
  0x36   : > { %p1103_p3 = scmp.lt.s32.totalorder %s1101_s6, %s1094_s30 }
  0x37   : > { %p1097_p13 = pnand %p1095_p12, %p1007_p8 }
  0x38   : > { %p1104_p6 = por %p1103_p3, %p1102_p2 }
  0x39   : > { %p1098_p0 = pneg %p1097_p13 }
  0x3b   : > { %p1105_p9 = pnand %p1104_p6, %p1098_p0 }
  0x3d   : > { %1108 = shalt.err (!%p1105_p9)
}
  0x3e   : > { %921 = dma.hbm_to_vmem [thread:$0]  (!%p1260_p7), %s1436_s4, 16, %s212_s29, [#allocation8]  }
  0x3f   : > { %s1305_s7 = sadd.s32 1, %s1179_s21   ;;  %s27_s12 = sadd.s32 1, %s1175_s20 }
  0x40   : > { %s24_s13 = ssub.s32 %s1179_s21, %s1305_s7  ;;  %p34_p8 = scmp.ne.s32.totalorder %s1175_s20, %s1171_s19 }
  0x41   : > { %p25_p10 = scmp.eq.s32.totalorder %s24_s13, 0  ;;  %p35_p11 = scmp.eq.s32.totalorder %s1179_s21, 0 }
  0x42   : > { %p930_p12 = scmp.lt.s32.totalorder %s1179_s21, 2  ;;  %s222_s28 = sand.u32 1, %s1175_s20  }
  0x43   : > { %s1316_s14 = scalar_select %p25_p10, %s1175_s20, %s27_s12  }
  0x44   : > { %p36_p13 = por %p35_p11, %p34_p8  ;;  %s773_s15 = sshll.u32 %s222_s28, 5 }
  0x45   : > { %s792_s16 = sshll.u32 %s1179_s21, 9  ;;  %s226_s27 = scalar_lea.vmem [#allocation2], %s773_s15 }
  0x46   : > { %s1322_s26 = scalar_lea.hbm %s1432_s0, %s792_s16  ;;  %s233_s29 = sshll.u32 %s226_s27, 4  ;;  %s1328_s29 = int_to_ptr.vmem [resolvable:$true] %s233_s29 }
  0x47   : > { %p1324_p7 = pnand %p930_p12, %p36_p13  ;;  %s1330_s6 = scalar_lea.sflag [#allocation3], %s222_s28 }
  0x48   : > { %s1109_s8 = scalar_lea.hbm %s1322_s26, 512  ;;  %s1114_s13 = scalar_lea.hbm %s1432_s0, 1024 }
  0x49   : > { %p1110_p0 = scmp.ne.s32.totalorder %s1322_s26, %s1109_s8  ;;  %p1111_p2 = pneg %p1324_p7 }
  0x4a   : > { %p1115_p9 = scmp.lt.s32.totalorder %s1322_s26, %s1432_s0  ;;  %p1116_p8 = scmp.lt.s32.totalorder %s1114_s13, %s1109_s8 }
  0x4b   : > { %p1112_p3 = pnand %p1111_p2, %p1110_p0 }
  0x4c   : > { %p1117_p10 = por %p1116_p8, %p1115_p9 }
  0x4d   : > { %p1113_p6 = pneg %p1112_p3 }
  0x4f   : > { %p1118_p11 = pnand %p1117_p10, %p1113_p6 }
  0x51   : > { %1121 = shalt.err (!%p1118_p11)
}
  0x52   : > { %s1122_s28 = scalar_lea.vmem %s1328_s29, 512  ;;  %s1187_s17 = smov [#allocation2]  }
  0x53   : > { %p1123_p12 = scmp.ne.s32.totalorder %s1328_s29, %s1122_s28  ;;  %s1127_s18 = sshll.u32 %s1187_s17, 4  ;;  %s1128_s18 = int_to_ptr.vmem [resolvable:$false] %s1127_s18 }
  0x54   : > { %s1129_s27 = scalar_lea.vmem %s1128_s18, 1024  ;;  %p1130_p3 = scmp.lt.s32.totalorder %s1328_s29, %s1128_s18 }
  0x55   : > { %p1125_p13 = pnand %p1123_p12, %p1111_p2  ;;  %p1131_p1 = scmp.lt.s32.totalorder %s1129_s27, %s1122_s28 }
  0x57   : > { %p1126_p0 = pneg %p1125_p13  ;;  %p1132_p4 = por %p1131_p1, %p1130_p3 }
  0x59   : > { %p1133_p5 = pnand %p1132_p4, %p1126_p0 }
  0x5b   : > { %1136 = shalt.err (!%p1133_p5)
}
  0x5c   : > { %925 = dma.hbm_to_vmem [thread:$0]  (!%p1324_p7), %s1322_s26, 512, %s1328_s29, %s1330_s6, %s1184_s9, %s1184_s9, %s1185_s10  }
  0x5d   : > { %p1447_p2 = scmp.ne.s32.totalorder %s1444_s25, 0 }
  0x5e   : > { %s247_s8 = sand.u32 (!%p1447_p2), 1, %s1171_s19   ;;  %p1448_p1 = scmp.ne.s32.totalorder (!%p1447_p2), %s1443_s24, 0 }
  0x5f   : > { %245 = sbr.rel (%p1447_p2) target bundleno = 616 (0x268), region = 40  ;;  %s777_s11 = sshll.u32 (!%p1447_p2), %s247_s8, 5 }
  0x60   : > { %s248_s12 = scalar_lea.sflag (!%p1447_p2), [#allocation3], %s247_s8  ;;  %s1357_s13 = scalar_lea.vmem (!%p1447_p2), [#allocation2], %s777_s11 }
  0x64   : > { %1154 = dma.done.wait (%p1448_p1), %s248_s12, 512  }
  0x65   : > { %1156 = vsyncadd (%p1448_p1), %s248_s12, 4294966784  ;;  %p1449_p4 = scmp.ne.s32.totalorder %s1442_s23, 0 }
  0x67   : > { %1158 = dma.done.wait (%p1449_p4), [#allocation5], 1296  }
  0x68   : > { %1160 = vsyncadd (%p1449_p4), [#allocation5], 4294966000 }
  0x69   : > { %1162 = dma.done.wait (%p1449_p4), [#allocation8], 2064  }
  0x6a   : > { %1164 = vsyncadd (%p1449_p4), [#allocation8], 4294965232  ;;  %v314_v0 = vld [vmem:[#allocation4 + $0x48] sm:$0xff]  ;;  %v313_v1 = vld [vmem:[#allocation4 + $0x40] sm:$0xff]  ;;  %vm322_vm0 = vcmask 654336   ;;  %s782_s23 = sshll.u32 %s765_s22, 2 }
  0x6b   : > { %827 = vmatprep.subr.mxu0 %v314_v0  ;;  %v312_v2 = vld [vmem:[#allocation4 + $0x38] sm:$0xff]  ;;  %v301_v3 = vld [vmem:[%s1357_s13] sm:$0xff]  ;;  %v311_v4 = vld [vmem:[#allocation4 + $0x30] sm:$0xff]  ;;  %p296_p5 = scmp.lt.s32.totalorder %s782_s23, 7 }
  0x6c   : > { %828 = vmatpush3.msra.mxu0 %v314_v0  ;;  %847 = vmatprep.mubr.msk.f32.mxu0 %vm322_vm0, %v301_v3  ;;  %v310_v5 = vld [vmem:[#allocation4 + $0x28] sm:$0xff]  ;;  %v309_v6 = vld [vmem:[#allocation4 + $0x20] sm:$0xff]  ;;  %v308_v7 = vld [vmem:[#allocation4 + $0x18] sm:$0xff] }
  0x6d   : > { %829 = vmatprep.subr.mxu0 %v313_v1  ;;  %v307_v8 = vld [vmem:[#allocation4 + $0x10] sm:$0xff]  ;;  %v306_v9 = vld [vmem:[#allocation4 + $0x8] sm:$0xff]  ;;  %v305_v10 = vld [vmem:[#allocation4] sm:$0xff]  ;;  %s1455_s23 = smov (!%p296_p5, %s782_s23), 7 }
  0x6e   : > { %830 = vmatpush3.msra.mxu0 %v313_v1  ;;  %v302_v11 = vld [vmem:[%s1357_s13 + $0x8] sm:$0xff]  ;;  %v303_v12 = vld [vmem:[%s1357_s13 + $0x10] sm:$0xff]  ;;  %v304_v13 = vld [vmem:[%s1357_s13 + $0x18] sm:$0xff]  ;;  %s783_s24 = sshll.u32 %s1455_s23, 3 }
  0x6f   : > { %831 = vmatprep.subr.mxu0 %v312_v2  ;;  %v499_v14 = vld [vmem:[#allocation7 + $0x78] sm:$0xff]  ;;  %v498_v15 = vld [vmem:[#allocation7 + $0x70] sm:$0xff]  ;;  %v497_v16 = vld [vmem:[#allocation7 + $0x68] sm:$0xff]  ;;  %s299_s25 = scalar_lea.vmem %s1437_s5, %s783_s24 }
  0x70   : > { %832 = vmatpush3.msra.mxu0 %v312_v2  ;;  %853 = vmatprep.subr.mxu1 %v499_v14  ;;  %v496_v17 = vld [vmem:[#allocation7 + $0x60] sm:$0xff]  ;;  %v495_v18 = vld [vmem:[#allocation7 + $0x58] sm:$0xff]  ;;  %v494_v19 = vld [vmem:[#allocation7 + $0x50] sm:$0xff] }
  0x71   : > { %833 = vmatprep.subr.mxu0 %v311_v4  ;;  %854 = vmatpush3.msra.mxu1 %v499_v14  ;;  %v493_v20 = vld [vmem:[#allocation7 + $0x48] sm:$0xff]  ;;  %v492_v21 = vld [vmem:[#allocation7 + $0x40] sm:$0xff]  ;;  %v491_v22 = vld [vmem:[#allocation7 + $0x38] sm:$0xff] }
  0x72   : > { %834 = vmatpush3.msra.mxu0 %v311_v4  ;;  %855 = vmatprep.subr.mxu1 %v498_v15  ;;  %v490_v23 = vld [vmem:[#allocation7 + $0x30] sm:$0xff]  ;;  %v489_v24 = vld [vmem:[#allocation7 + $0x28] sm:$0xff]  ;;  %v488_v25 = vld [vmem:[#allocation7 + $0x20] sm:$0xff] }
  0x73   : > { %835 = vmatprep.subr.mxu0 %v310_v5  ;;  %856 = vmatpush3.msra.mxu1 %v498_v15  ;;  %v487_v26 = vld [vmem:[#allocation7 + $0x18] sm:$0xff]  ;;  %v486_v27 = vld [vmem:[#allocation7 + $0x10] sm:$0xff]  ;;  %v485_v28 = vld [vmem:[#allocation7 + $0x8] sm:$0xff] }
  0x74   : > { %836 = vmatpush3.msra.mxu0 %v310_v5  ;;  %857 = vmatprep.subr.mxu1 %v497_v16  ;;  %v484_v29 = vld [vmem:[#allocation7] sm:$0xff]  ;;  %v784_v30 = vld [vmem:[#allocation6] ss:$0 sm:$0xff] }
  0x75   : > { %837 = vmatprep.subr.mxu0 %v309_v6  ;;  %858 = vmatpush3.msra.mxu1 %v497_v16 }
  0x76   : > { %838 = vmatpush3.msra.mxu0 %v309_v6  ;;  %859 = vmatprep.subr.mxu1 %v496_v17 }
  0x77   : > { %839 = vmatprep.subr.mxu0 %v308_v7  ;;  %860 = vmatpush3.msra.mxu1 %v496_v17 }
  0x78   : > { %840 = vmatpush3.msra.mxu0 %v308_v7  ;;  %861 = vmatprep.subr.mxu1 %v495_v18 }
  0x79   : > { %841 = vmatprep.subr.mxu0 %v307_v8  ;;  %862 = vmatpush3.msra.mxu1 %v495_v18 }
  0x7a   : > { %842 = vmatpush3.msra.mxu0 %v307_v8  ;;  %863 = vmatprep.subr.mxu1 %v494_v19 }
  0x7b   : > { %843 = vmatprep.subr.mxu0 %v306_v9  ;;  %864 = vmatpush3.msra.mxu1 %v494_v19 }
  0x7c   : > { %844 = vmatpush3.msra.mxu0 %v306_v9  ;;  %865 = vmatprep.subr.mxu1 %v493_v20 }
  0x7d   : > { %845 = vmatprep.subr.mxu0 %v305_v10  ;;  %866 = vmatpush3.msra.mxu1 %v493_v20 }
  0x7e   : > { %846 = vmatpush3.msra.mxu0 %v305_v10  ;;  %867 = vmatprep.subr.mxu1 %v492_v21 }
  0x7f   : > { %848 = vmatmul.mubr.msk.f32.vlgmr.msra.gmra.mxu0 %vm322_vm0, %v302_v11  ;;  %868 = vmatpush3.msra.mxu1 %v492_v21 }
  0x80   : > { %850 = vmatprep.mubr.msk.f32.mxu0 %vm322_vm0, %v303_v12  ;;  %869 = vmatprep.subr.mxu1 %v491_v22 }
  0x81   : > { %870 = vmatpush3.msra.mxu1 %v491_v22 }
  0x82   : > { %871 = vmatprep.subr.mxu1 %v490_v23 }
  0x83   : > { %851 = vmatmul.mubr.msk.f32.gmra.mxu0 %vm322_vm0, %v304_v13  ;;  %872 = vmatpush3.msra.mxu1 %v490_v23 }
  0x84   : > { %873 = vmatprep.subr.mxu1 %v489_v24 }
  0x85   : > { %874 = vmatpush3.msra.mxu1 %v489_v24 }
  0x86   : > { %875 = vmatprep.subr.mxu1 %v488_v25 }
  0x87   : > { %876 = vmatpush3.msra.mxu1 %v488_v25 }
  0x88   : > { %877 = vmatprep.subr.mxu1 %v487_v26 }
  0x89   : > { %878 = vmatpush3.msra.mxu1 %v487_v26 }
  0x8a   : > { %879 = vmatprep.subr.mxu1 %v486_v27 }
  0x8b   : > { %880 = vmatpush3.msra.mxu1 %v486_v27 }
  0x8c   : > { %881 = vmatprep.subr.mxu1 %v485_v28 }
  0x8d   : > { %882 = vmatpush3.msra.mxu1 %v485_v28 }
  0x8e   : > { %883 = vmatprep.subr.mxu1 %v484_v29 }
  0x8f   : > { %884 = vmatpush3.msra.mxu1 %v484_v29 }
 0x13f   : > { %v849_v31 = vpop.f32.mrf.mxu0 }
 0x140   : > { %v1379_v32 = vadd.f32 %v849_v31, %v784_v30 }
 0x141   : > { %v401_v33 = vpop.f32.mrf.mxu0 }
 0x142   : > { %v421_v34 = vand.u32 2147483647, %v1379_v32  ;;  %v1382_v35 = vadd.f32 %v784_v30, %v401_v33  ;;  %vm437_vm1 = vcmp.ge.f32.partialorder %v1379_v32, 0.0 }
 0x143   : > { %v852_v36 = vpop.f32.mrf.mxu0 }
 0x144   : > { %v425_v37 = vsub.f32 0.0, %v421_v34  ;;  %v420_v38 = vand.u32 2147483647, %v1382_v35  ;;  %v1385_v39 = vadd.f32 %v852_v36, %v784_v30  ;;  %vm436_vm2 = vcmp.ge.f32.partialorder %v1382_v35, 0.0 }
 0x145   : > { %v411_v40 = vpop.f32.mrf.mxu0 }
 0x146   : > { %v430_v41 = vmul.f32 1.442695, %v425_v37  ;;  %v424_v42 = vsub.f32 0.0, %v420_v38  ;;  %v423_v43 = vand.u32 2147483647, %v1385_v39  ;;  %v412_v44 = vadd.f32 %v784_v30, %v411_v40 }
 0x147   : > { %vm439_vm3 = vcmp.ge.f32.partialorder %v1385_v39, 0.0  ;;  %v789_v37 = vld [vmem:[#allocation9] ss:$0 sm:$0xff] }
 0x148   : > { %973 = vpow2.f32 %v430_v41  ;;  %v428_v45 = vmul.f32 1.442695, %v424_v42  ;;  %v427_v46 = vsub.f32 0.0, %v423_v43  ;;  %v422_v47 = vand.u32 2147483647, %v412_v44 }
 0x149   : > { %vm438_vm4 = vcmp.ge.f32.partialorder %v412_v44, 0.0 }
 0x14a   : > { %975 = vpow2.f32 %v428_v45  ;;  %v434_v48 = vmul.f32 1.442695, %v427_v46  ;;  %v426_v49 = vsub.f32 0.0, %v422_v47 }
 0x14c   : > { %977 = vpow2.f32 %v434_v48  ;;  %v432_v50 = vmul.f32 1.442695, %v426_v49 }
 0x14e   : > { %979 = vpow2.f32 %v432_v50 }
 0x155   : > { %v974_v51 = vpop.eup %973 }
 0x156   : > { %v441_v52 = vmul.f32 2.0, %v974_v51  ;;  %v449_v53 = vadd.f32 2.0, %v974_v51 }
 0x157   : > { %v976_v54 = vpop.eup %975 }
 0x158   : > { %v445_v55 = vadd.f32 1.0, %v441_v52  ;;  %v453_v56 = vmul.f32 %v974_v51, %v449_v53  ;;  %v461_v57 = vmul.f32 %v974_v51, %v441_v52  ;;  %v440_v58 = vmul.f32 2.0, %v976_v54 }
 0x159   : > { %v978_v59 = vpop.eup %977  ;;  %v448_v60 = vadd.f32 2.0, %v976_v54 }
 0x15a   : > { %v457_v61 = vsel %vm437_vm1, %v445_v55, %v453_v56  ;;  %v465_v62 = vsel %vm437_vm1, %v461_v57, 2.0  ;;  %v443_v63 = vmul.f32 2.0, %v978_v59  ;;  %v451_v0 = vadd.f32 2.0, %v978_v59 }
 0x15b   : > { %v444_v1 = vadd.f32 1.0, %v440_v58  ;;  %v452_v2 = vmul.f32 %v976_v54, %v448_v60  ;;  %v980_v3 = vpop.eup %979  ;;  %v460_v7 = vmul.f32 %v976_v54, %v440_v58  ;;  %v469_v8 = vadd.f32 %v465_v62, %v457_v61 }
 0x15c   : > { %v447_v4 = vadd.f32 1.0, %v443_v63  ;;  %v455_v5 = vmul.f32 %v978_v59, %v451_v0  ;;  %v463_v6 = vmul.f32 %v978_v59, %v443_v63  ;;  %v442_v9 = vmul.f32 2.0, %v980_v3 }
 0x15d   : > { %v450_v10 = vadd.f32 2.0, %v980_v3  ;;  %v456_v11 = vsel %vm436_vm2, %v444_v1, %v452_v2  ;;  %v464_v14 = vsel %vm436_vm2, %v460_v7, 2.0  ;;  %981 = vrcp.f32 %v469_v8 }
 0x15e   : > { %v459_v12 = vsel %vm439_vm3, %v447_v4, %v455_v5  ;;  %v467_v13 = vsel %vm439_vm3, %v463_v6, 2.0  ;;  %v446_v15 = vadd.f32 1.0, %v442_v9  ;;  %v462_v18 = vmul.f32 %v980_v3, %v442_v9 }
 0x15f   : > { %v454_v16 = vmul.f32 %v980_v3, %v450_v10  ;;  %v471_v17 = vadd.f32 %v467_v13, %v459_v12  ;;  %v468_v19 = vadd.f32 %v464_v14, %v456_v11  ;;  %v472_v24 = vmul.f32 %v456_v11, %v1382_v35 }
 0x160   : > { %v466_v21 = vsel %vm438_vm4, %v462_v18, 2.0  ;;  %v473_v26 = vmul.f32 %v457_v61, %v1379_v32  ;;  %v475_v33 = vmul.f32 %v459_v12, %v1385_v39 }
 0x161   : > { %v458_v20 = vsel %vm438_vm4, %v446_v15, %v454_v16  ;;  %983 = vrcp.f32 %v468_v19 }
 0x162   : > { %v470_v22 = vadd.f32 %v466_v21, %v458_v20  ;;  %985 = vrcp.f32 %v471_v17  ;;  %v474_v29 = vmul.f32 %v458_v20, %v412_v44 }
 0x164   : > { %987 = vrcp.f32 %v470_v22 }
 0x16a   : > { %v982_v23 = vpop.eup %981 }
 0x16b   : > { %v481_v30 = vmul.f32 %v982_v23, %v473_v26 }
 0x16e   : > { %v984_v25 = vpop.eup %983 }
 0x16f   : > { %v480_v27 = vmul.f32 %v984_v25, %v472_v24  ;;  %v986_v28 = vpop.eup %985 }
 0x170   : > { %v483_v36 = vmul.f32 %v986_v28, %v475_v33 }
 0x171   : > { %v988_v31 = vpop.eup %987  ;;  %885 = vmatprep.mubr.f32.mxu1 %v480_v27 }
 0x172   : > { %886 = vmatmul.mubr.f32.vlgmr.msra.gmra.mxu1 %v481_v30  ;;  %v482_v34 = vmul.f32 %v988_v31, %v474_v29 }
 0x174   : > { %888 = vmatprep.mubr.f32.mxu1 %v482_v34 }
 0x176   : > { %889 = vmatmul.mubr.f32.gmra.mxu1 %v483_v36 }
 0x232   : > { %v887_v38 = vpop.f32.mrf.mxu1 }
 0x233   : > { %v1394_v40 = vadd.f32 %v887_v38, %v789_v37 }
 0x234   : > { %v573_v35 = vpop.f32.mrf.mxu1 }
 0x235   : > { %v593_v32 = vand.u32 2147483647, %v1394_v40  ;;  %v1397_v41 = vadd.f32 %v789_v37, %v573_v35  ;;  %vm609_vm5 = vcmp.ge.f32.partialorder %v1394_v40, 0.0 }
 0x236   : > { %v890_v42 = vpop.f32.mrf.mxu1 }
 0x237   : > { %v597_v43 = vsub.f32 0.0, %v593_v32  ;;  %v592_v44 = vand.u32 2147483647, %v1397_v41  ;;  %v1400_v45 = vadd.f32 %v890_v42, %v789_v37  ;;  %vm608_vm6 = vcmp.ge.f32.partialorder %v1397_v41, 0.0 }
 0x238   : > { %v583_v39 = vpop.f32.mrf.mxu1 }
 0x239   : > { %v602_v46 = vmul.f32 1.442695, %v597_v43  ;;  %v596_v47 = vsub.f32 0.0, %v592_v44  ;;  %v595_v48 = vand.u32 2147483647, %v1400_v45  ;;  %v1403_v49 = vadd.f32 %v789_v37, %v583_v39 }
 0x23a   : > { %vm611_vm7 = vcmp.ge.f32.partialorder %v1400_v45, 0.0 }
 0x23b   : > { %989 = vpow2.f32 %v602_v46  ;;  %v600_v50 = vmul.f32 1.442695, %v596_v47  ;;  %v599_v51 = vsub.f32 0.0, %v595_v48  ;;  %v594_v52 = vand.u32 2147483647, %v1403_v49 }
 0x23c   : > { %vm610_vm8 = vcmp.ge.f32.partialorder %v1403_v49, 0.0 }
 0x23d   : > { %991 = vpow2.f32 %v600_v50  ;;  %v606_v53 = vmul.f32 1.442695, %v599_v51  ;;  %v598_v54 = vsub.f32 0.0, %v594_v52 }
 0x23f   : > { %993 = vpow2.f32 %v606_v53  ;;  %v604_v55 = vmul.f32 1.442695, %v598_v54 }
 0x241   : > { %995 = vpow2.f32 %v604_v55 }
 0x248   : > { %v990_v56 = vpop.eup %989 }
 0x249   : > { %v613_v57 = vmul.f32 2.0, %v990_v56  ;;  %v621_v58 = vadd.f32 2.0, %v990_v56 }
 0x24a   : > { %v992_v59 = vpop.eup %991 }
 0x24b   : > { %v617_v60 = vadd.f32 1.0, %v613_v57  ;;  %v625_v61 = vmul.f32 %v990_v56, %v621_v58  ;;  %v633_v62 = vmul.f32 %v990_v56, %v613_v57  ;;  %v612_v63 = vmul.f32 2.0, %v992_v59 }
 0x24c   : > { %v994_v0 = vpop.eup %993  ;;  %v620_v1 = vadd.f32 2.0, %v992_v59 }
 0x24d   : > { %v629_v2 = vsel %vm609_vm5, %v617_v60, %v625_v61  ;;  %v637_v3 = vsel %vm609_vm5, %v633_v62, 2.0  ;;  %v616_v4 = vadd.f32 1.0, %v612_v63  ;;  %v632_v5 = vmul.f32 %v992_v59, %v612_v63 }
 0x24e   : > { %v641_v6 = vadd.f32 %v637_v3, %v629_v2  ;;  %v624_v7 = vmul.f32 %v992_v59, %v620_v1  ;;  %v615_v8 = vmul.f32 2.0, %v994_v0  ;;  %v996_v9 = vpop.eup %995  ;;  %v623_v11 = vadd.f32 2.0, %v994_v0 }
 0x24f   : > { %v636_v10 = vsel %vm608_vm6, %v632_v5, 2.0  ;;  %v614_v17 = vmul.f32 2.0, %v996_v9  ;;  %v622_v19 = vadd.f32 2.0, %v996_v9  ;;  %v645_v31 = vmul.f32 %v629_v2, %v1394_v40 }
 0x250   : > { %v628_v12 = vsel %vm608_vm6, %v616_v4, %v624_v7  ;;  %v619_v13 = vadd.f32 1.0, %v615_v8  ;;  %v635_v14 = vmul.f32 %v994_v0, %v615_v8  ;;  %v627_v16 = vmul.f32 %v994_v0, %v623_v11 }
 0x251   : > { %v640_v15 = vadd.f32 %v636_v10, %v628_v12  ;;  %997 = vrcp.f32 %v641_v6  ;;  %v618_v21 = vadd.f32 1.0, %v614_v17  ;;  %v634_v22 = vmul.f32 %v996_v9, %v614_v17 }
 0x252   : > { %v639_v18 = vsel %vm611_vm7, %v635_v14, 2.0  ;;  %v631_v20 = vsel %vm611_vm7, %v619_v13, %v627_v16  ;;  %v626_v24 = vmul.f32 %v996_v9, %v622_v19  ;;  %v644_v29 = vmul.f32 %v628_v12, %v1397_v41 }
 0x253   : > { %999 = vrcp.f32 %v640_v15  ;;  %v643_v23 = vadd.f32 %v639_v18, %v631_v20  ;;  %v638_v25 = vsel %vm610_vm8, %v634_v22, 2.0  ;;  %v647_v35 = vmul.f32 %v631_v20, %v1400_v45 }
 0x254   : > { %v630_v26 = vsel %vm610_vm8, %v618_v21, %v626_v24 }
 0x255   : > { %v642_v27 = vadd.f32 %v638_v25, %v630_v26  ;;  %1001 = vrcp.f32 %v643_v23  ;;  %v646_v37 = vmul.f32 %v630_v26, %v1403_v49 }
 0x257   : > { %1003 = vrcp.f32 %v642_v27 }
 0x25e   : > { %v998_v28 = vpop.eup %997 }
 0x25f   : > { %v653_v34 = vmul.f32 %v998_v28, %v645_v31 }
 0x260   : > { %v1000_v30 = vpop.eup %999 }
 0x261   : > { %v652_v33 = vmul.f32 %v1000_v30, %v644_v29  ;;  %657 = vst [vmem:[%s299_s25 + $0x8] sm:$0xff] %v653_v34 }
 0x262   : > { %v1002_v36 = vpop.eup %1001 }
 0x263   : > { %656 = vst [vmem:[%s299_s25] sm:$0xff] %v652_v33  ;;  %v655_v42 = vmul.f32 %v1002_v36, %v647_v35 }
 0x264   : > { %v1004_v38 = vpop.eup %1003 }
 0x265   : > { %v654_v32 = vmul.f32 %v1004_v38, %v646_v37  ;;  %659 = vst [vmem:[%s299_s25 + $0x18] sm:$0xff] %v655_v42 }
 0x267   : > { %658 = vst [vmem:[%s299_s25 + $0x10] sm:$0xff] %v654_v32 }
 0x268 PF: > { %p17_p7 = scmp.ge.s32.totalorder %s1305_s7, 4   ;;  %s1450_s18 = smov %s1171_s19 }
 0x269   : > { %s1451_s19 = smov %s1175_s20  ;;  %s1452_s20 = smov %s1316_s14 }
 0x26a   : > { %s1453_s21 = smov %s1305_s7  ;;  %19 = sbr.rel (!%p17_p7) target bundleno = 5 (0x5), region = 96 }
 0x26f   :  { %682 = vsyncpa [#allocation3], 1 }
 0x270   :  { %684 = vsyncpa [#allocation3 + $0x1], 1 }
 0x271   :  { %685 = vsyncpa [#allocation5], 1 }
 0x272   :  { %686 = vsyncpa [#allocation8], 1 }

// kernel: mel_style_encoder_forward.9
= control target key start
LH: loop header
LB: loop body
LE: loop exit
PB: predicated region body
PF: predicated region fallthrough
CT: control target
= control target key end

     0   :  { %s597_s12 = smov 0   ;;  %s786_s0 = inlined_call_operand.vmem [shape: f32[64,128], index: 0, kind: input, shape index: {}]   ;;  %s787_s1 = inlined_call_operand.vmem [shape: f32[128,384], index: 1, kind: input, shape index: {}]   ;;  %s788_s2 = inlined_call_operand.vmem [shape: f32[1,384], index: 2, kind: input, shape index: {}]   ;;  %s789_s3 = inlined_call_operand.vmem [shape: f32[64,384], index: 3, kind: output, shape index: {}]  }
   0x1 LB: > { %s489_s13 = sadd.s32 4294967295, %s574_s12   ;;  %p493_p0 = scmp.ge.s32.totalorder %s574_s12, 1  ;;  %s574_s12 = sphi %s597_s12, %s13_s12  }
   0x2   : > { %p138_p1 = scmp.lt.s32.totalorder %s574_s12, 3 }
   0x4   : > { %p139_p2 = pnand %p493_p0, %p138_p1 }
   0x5   : > { %s494_s10 = sshll.u32 (!%p139_p2), %s489_s13, 2 }
   0x6   : > { %142 = sbr.rel (%p139_p2) target bundleno = 254 (0xfe), region = 32  ;;  %p164_p3 = scmp.lt.s32.totalorder (!%p139_p2), %s494_s10, 7 }
   0xb   : > { %v226_v0 = vld [vmem:[%s787_s1 + $0x170] sm:$0xff]  ;;  %v225_v1 = vld [vmem:[%s787_s1 + $0x168] sm:$0xff]  ;;  %v223_v2 = vld [vmem:[%s787_s1 + $0x158] sm:$0xff]  ;;  %v576_v5 = vmov 0.0   ;;  %s791_s10 = smov (!%p164_p3, %s494_s10), 7  ;;  %v230_v53 = vlaneseq }
   0xc   : > { %245 = vmatprep.subr.mxu0 %v226_v0  ;;  %v222_v3 = vld [vmem:[%s787_s1 + $0x150] sm:$0xff]  ;;  %v227_v4 = vld [vmem:[%s787_s1 + $0x178] sm:$0xff]  ;;  %309 = vmatprep.mubr.f32.mxu0 %v576_v5  ;;  %v220_v6 = vld [vmem:[%s787_s1 + $0x140] sm:$0xff]  ;;  %s495_s20 = sshll.u32 %s791_s10, 3  ;;  %s558_s17 = smul.u32 24, %s791_s10 }
   0xd   : > { %246 = vmatpush1.msra.mxu0 %v225_v1  ;;  %520 = vmatprep.subr.mxu1 %v227_v4  ;;  %v224_v7 = vld [vmem:[%s787_s1 + $0x160] sm:$0xff]  ;;  %v219_v8 = vld [vmem:[%s787_s1 + $0x138] sm:$0xff]  ;;  %v221_v9 = vld [vmem:[%s787_s1 + $0x148] sm:$0xff]  ;;  %s167_s30 = scalar_lea.vmem %s786_s0, %s495_s20  ;;  %v231_v54 = vshrl.u32 %v230_v53, 7 }
   0xe   : > { %247 = vmatprep.subr.mxu0 %v223_v2  ;;  %521 = vmatpush3.msra.mxu1 %v227_v4  ;;  %v217_v10 = vld [vmem:[%s787_s1 + $0x128] sm:$0xff]  ;;  %v216_v11 = vld [vmem:[%s787_s1 + $0x120] sm:$0xff]  ;;  %v218_v12 = vld [vmem:[%s787_s1 + $0x130] sm:$0xff]  ;;  %s769_s20 = scalar_lea.vmem %s789_s3, %s558_s17 }
   0xf   : > { %248 = vmatpush1.msra.mxu0 %v222_v3  ;;  %522 = vmatprep.subr.mxu1 %v224_v7  ;;  %v214_v13 = vld [vmem:[%s787_s1 + $0x110] sm:$0xff]  ;;  %v213_v14 = vld [vmem:[%s787_s1 + $0x108] sm:$0xff]  ;;  %v215_v15 = vld [vmem:[%s787_s1 + $0x118] sm:$0xff]  ;;  %v232_v55 = vsub.s32 0, %v231_v54  ;;  %v236_v57 = vsub.s32 1, %v231_v54  ;;  %v240_v58 = vsub.s32 2, %v231_v54 }
  0x10   : > { %249 = vmatprep.subr.mxu0 %v220_v6  ;;  %523 = vmatpush3.msra.mxu1 %v224_v7  ;;  %v211_v16 = vld [vmem:[%s787_s1 + $0xf8] sm:$0xff]  ;;  %v210_v17 = vld [vmem:[%s787_s1 + $0xf0] sm:$0xff]  ;;  %v212_v18 = vld [vmem:[%s787_s1 + $0x100] sm:$0xff] }
  0x11   : > { %250 = vmatpush1.msra.mxu0 %v219_v8  ;;  %524 = vmatprep.subr.mxu1 %v221_v9  ;;  %v208_v19 = vld [vmem:[%s787_s1 + $0xe0] sm:$0xff]  ;;  %v207_v20 = vld [vmem:[%s787_s1 + $0xd8] sm:$0xff]  ;;  %v209_v21 = vld [vmem:[%s787_s1 + $0xe8] sm:$0xff] }
  0x12   : > { %251 = vmatprep.subr.mxu0 %v217_v10  ;;  %525 = vmatpush3.msra.mxu1 %v221_v9  ;;  %v205_v22 = vld [vmem:[%s787_s1 + $0xc8] sm:$0xff]  ;;  %v204_v23 = vld [vmem:[%s787_s1 + $0xc0] sm:$0xff]  ;;  %v206_v24 = vld [vmem:[%s787_s1 + $0xd0] sm:$0xff] }
  0x13   : > { %252 = vmatpush1.msra.mxu0 %v216_v11  ;;  %526 = vmatprep.subr.mxu1 %v218_v12  ;;  %v202_v25 = vld [vmem:[%s787_s1 + $0xb0] sm:$0xff]  ;;  %v201_v26 = vld [vmem:[%s787_s1 + $0xa8] sm:$0xff]  ;;  %v203_v27 = vld [vmem:[%s787_s1 + $0xb8] sm:$0xff] }
  0x14   : > { %253 = vmatprep.subr.mxu0 %v214_v13  ;;  %527 = vmatpush3.msra.mxu1 %v218_v12  ;;  %v199_v28 = vld [vmem:[%s787_s1 + $0x98] sm:$0xff]  ;;  %v198_v29 = vld [vmem:[%s787_s1 + $0x90] sm:$0xff]  ;;  %v200_v30 = vld [vmem:[%s787_s1 + $0xa0] sm:$0xff] }
  0x15   : > { %254 = vmatpush1.msra.mxu0 %v213_v14  ;;  %528 = vmatprep.subr.mxu1 %v215_v15  ;;  %v196_v31 = vld [vmem:[%s787_s1 + $0x80] sm:$0xff]  ;;  %v195_v32 = vld [vmem:[%s787_s1 + $0x78] sm:$0xff]  ;;  %v197_v33 = vld [vmem:[%s787_s1 + $0x88] sm:$0xff] }
  0x16   : > { %255 = vmatprep.subr.mxu0 %v211_v16  ;;  %529 = vmatpush3.msra.mxu1 %v215_v15  ;;  %v193_v34 = vld [vmem:[%s787_s1 + $0x68] sm:$0xff]  ;;  %v192_v35 = vld [vmem:[%s787_s1 + $0x60] sm:$0xff]  ;;  %v194_v36 = vld [vmem:[%s787_s1 + $0x70] sm:$0xff] }
  0x17   : > { %256 = vmatpush1.msra.mxu0 %v210_v17  ;;  %530 = vmatprep.subr.mxu1 %v212_v18  ;;  %v190_v37 = vld [vmem:[%s787_s1 + $0x50] sm:$0xff]  ;;  %v189_v38 = vld [vmem:[%s787_s1 + $0x48] sm:$0xff]  ;;  %v191_v39 = vld [vmem:[%s787_s1 + $0x58] sm:$0xff] }
  0x18   : > { %257 = vmatprep.subr.mxu0 %v208_v19  ;;  %531 = vmatpush3.msra.mxu1 %v212_v18  ;;  %v187_v40 = vld [vmem:[%s787_s1 + $0x38] sm:$0xff]  ;;  %v186_v41 = vld [vmem:[%s787_s1 + $0x30] sm:$0xff]  ;;  %v188_v42 = vld [vmem:[%s787_s1 + $0x40] sm:$0xff] }
  0x19   : > { %258 = vmatpush1.msra.mxu0 %v207_v20  ;;  %532 = vmatprep.subr.mxu1 %v209_v21  ;;  %v184_v43 = vld [vmem:[%s787_s1 + $0x20] sm:$0xff]  ;;  %v183_v44 = vld [vmem:[%s787_s1 + $0x18] sm:$0xff]  ;;  %v185_v45 = vld [vmem:[%s787_s1 + $0x28] sm:$0xff] }
  0x1a   : > { %259 = vmatprep.subr.mxu0 %v205_v22  ;;  %533 = vmatpush3.msra.mxu1 %v209_v21  ;;  %v181_v46 = vld [vmem:[%s787_s1 + $0x8] sm:$0xff]  ;;  %v180_v47 = vld [vmem:[%s787_s1] sm:$0xff]  ;;  %v182_v48 = vld [vmem:[%s787_s1 + $0x10] sm:$0xff] }
  0x1b   : > { %260 = vmatpush1.msra.mxu0 %v204_v23  ;;  %534 = vmatprep.subr.mxu1 %v206_v24  ;;  %v176_v49 = vld [vmem:[%s167_s30] sm:$0xff]  ;;  %v177_v50 = vld [vmem:[%s167_s30 + $0x8] sm:$0xff]  ;;  %v178_v51 = vld [vmem:[%s167_s30 + $0x10] sm:$0xff] }
  0x1c   : > { %261 = vmatprep.subr.mxu0 %v202_v25  ;;  %535 = vmatpush3.msra.mxu1 %v206_v24  ;;  %v179_v52 = vld [vmem:[%s167_s30 + $0x18] sm:$0xff]  ;;  %v228_v56 = vld [vmem:[%s788_s2] sm:$0x7] }
  0x1d   : > { %262 = vmatpush1.msra.mxu0 %v201_v26  ;;  %536 = vmatprep.subr.mxu1 %v203_v27  ;;  %v233_v59 = vrot.slane %v228_v56, %v232_v55  ;;  %v237_v60 = vrot.slane %v228_v56, %v236_v57  ;;  %v241_v62 = vrot.slane %v228_v56, %v240_v58 }
  0x1e   : > { %263 = vmatprep.subr.mxu0 %v199_v28  ;;  %537 = vmatpush3.msra.mxu1 %v203_v27 }
  0x1f   : > { %264 = vmatpush1.msra.mxu0 %v198_v29  ;;  %538 = vmatprep.subr.mxu1 %v200_v30 }
  0x20   : > { %265 = vmatprep.subr.mxu0 %v196_v31  ;;  %539 = vmatpush3.msra.mxu1 %v200_v30 }
  0x21   : > { %266 = vmatpush1.msra.mxu0 %v195_v32  ;;  %540 = vmatprep.subr.mxu1 %v197_v33 }
  0x22   : > { %267 = vmatprep.subr.mxu0 %v193_v34  ;;  %541 = vmatpush3.msra.mxu1 %v197_v33 }
  0x23   : > { %268 = vmatpush1.msra.mxu0 %v192_v35  ;;  %542 = vmatprep.subr.mxu1 %v194_v36 }
  0x24   : > { %269 = vmatprep.subr.mxu0 %v190_v37  ;;  %543 = vmatpush3.msra.mxu1 %v194_v36 }
  0x25   : > { %270 = vmatpush1.msra.mxu0 %v189_v38  ;;  %544 = vmatprep.subr.mxu1 %v191_v39 }
  0x26   : > { %271 = vmatprep.subr.mxu0 %v187_v40  ;;  %545 = vmatpush3.msra.mxu1 %v191_v39 }
  0x27   : > { %272 = vmatpush1.msra.mxu0 %v186_v41  ;;  %546 = vmatprep.subr.mxu1 %v188_v42 }
  0x28   : > { %273 = vmatprep.subr.mxu0 %v184_v43  ;;  %547 = vmatpush3.msra.mxu1 %v188_v42 }
  0x29   : > { %274 = vmatpush1.msra.mxu0 %v183_v44  ;;  %548 = vmatprep.subr.mxu1 %v185_v45 }
  0x2a   : > { %275 = vmatprep.subr.mxu0 %v181_v46  ;;  %549 = vmatpush3.msra.mxu1 %v185_v45 }
  0x2b   : > { %276 = vmatpush1.msra.mxu0 %v180_v47  ;;  %550 = vmatprep.subr.mxu1 %v182_v48 }
  0x2c   : > { %310 = vmatmul.mubr.f32.vlgmr.msra.gmra.mxu0 %v176_v49  ;;  %551 = vmatpush3.msra.mxu1 %v182_v48 }
  0x2d   : > { %315 = vmatprep.mubr.f32.mxu0 %v576_v5  ;;  %552 = vmatprep.mubr.f32.mxu1 %v176_v49 }
  0x2e   : > { %553 = vmatmul.mubr.f32.vlgmr.msra.gmra.mxu1 %v177_v50 }
  0x2f   : > { %555 = vmatprep.mubr.f32.mxu1 %v178_v51 }
  0x30   : > { %316 = vmatmul.mubr.f32.gmra.mxu0 %v177_v50 }
  0x31   : > { %321 = vmatprep.mubr.f32.mxu0 %v576_v5 }
  0x32   : > { %556 = vmatmul.mubr.f32.gmra.mxu1 %v179_v52 }
  0x34   : > { %322 = vmatmul.mubr.f32.gmra.mxu0 %v178_v51 }
  0x35   : > { %327 = vmatprep.mubr.f32.mxu0 %v576_v5 }
  0x38   : > { %328 = vmatmul.mubr.f32.gmra.mxu0 %v179_v52 }
  0xec   : > { %v311_v61 = vpop.f32.mrf.mxu0 }
  0xed   : > { %v312_v63 = vadd.f32 %v311_v61, %v233_v59 }
  0xee   : > { %v313_v0 = vpop.f32.mrf.mxu0  ;;  %v554_v1 = vpop.f32.mrf.mxu1 }
  0xef   : > { %419 = vst [vmem:[%s769_s20] sm:$0xff] %v312_v63  ;;  %v314_v2 = vadd.f32 %v313_v0, %v237_v60  ;;  %v406_v4 = vadd.f32 %v554_v1, %v241_v62 }
  0xf0   : > { %v317_v3 = vpop.f32.mrf.mxu0  ;;  %v400_v5 = vpop.f32.mrf.mxu1 }
  0xf1   : > { %420 = vst [vmem:[%s769_s20 + $0x8] sm:$0xff] %v314_v2  ;;  %v318_v6 = vadd.f32 %v317_v3, %v233_v59  ;;  %v401_v7 = vadd.f32 %v400_v5, %v241_v62  ;;  %424 = vst [vmem:[%s769_s20 + $0x28] sm:$0xff] %v406_v4 }
  0xf2   : > { %v319_v8 = vpop.f32.mrf.mxu0  ;;  %v557_v9 = vpop.f32.mrf.mxu1 }
  0xf3   : > { %422 = vst [vmem:[%s769_s20 + $0x18] sm:$0xff] %v318_v6  ;;  %v320_v10 = vadd.f32 %v319_v8, %v237_v60  ;;  %421 = vst [vmem:[%s769_s20 + $0x10] sm:$0xff] %v401_v7  ;;  %v416_v12 = vadd.f32 %v557_v9, %v241_v62 }
  0xf4   : > { %v323_v11 = vpop.f32.mrf.mxu0  ;;  %v410_v13 = vpop.f32.mrf.mxu1 }
  0xf5   : > { %423 = vst [vmem:[%s769_s20 + $0x20] sm:$0xff] %v320_v10  ;;  %v324_v14 = vadd.f32 %v323_v11, %v233_v59  ;;  %v411_v15 = vadd.f32 %v410_v13, %v241_v62  ;;  %430 = vst [vmem:[%s769_s20 + $0x58] sm:$0xff] %v416_v12 }
  0xf6   : > { %v325_v16 = vpop.f32.mrf.mxu0 }
  0xf7   : > { %425 = vst [vmem:[%s769_s20 + $0x30] sm:$0xff] %v324_v14  ;;  %v326_v17 = vadd.f32 %v325_v16, %v237_v60  ;;  %427 = vst [vmem:[%s769_s20 + $0x40] sm:$0xff] %v411_v15 }
  0xf8   : > { %v329_v18 = vpop.f32.mrf.mxu0 }
  0xf9   : > { %426 = vst [vmem:[%s769_s20 + $0x38] sm:$0xff] %v326_v17  ;;  %v330_v19 = vadd.f32 %v329_v18, %v233_v59 }
  0xfa   : > { %v331_v20 = vpop.f32.mrf.mxu0 }
  0xfb   : > { %428 = vst [vmem:[%s769_s20 + $0x48] sm:$0xff] %v330_v19  ;;  %v332_v21 = vadd.f32 %v331_v20, %v237_v60 }
  0xfd   : > { %429 = vst [vmem:[%s769_s20 + $0x50] sm:$0xff] %v332_v21 }
  0xfe PF: > { %s13_s12 = sadd.s32 1, %s574_s12  }
  0xff   : > { %p10_p4 = scmp.ge.s32.totalorder %s13_s12, 4  }
 0x101   :  { %12 = sbr.rel (!%p10_p4) target bundleno = 1 (0x1), region = 62 }

// kernel: mel_style_encoder_forward.8
= control target key start
LH: loop header
LB: loop body
LE: loop exit
PB: predicated region body
PF: predicated region fallthrough
CT: control target
= control target key end

     0   :  { %s1361_s12 = smov 0   ;;  %s2077_s0 = inlined_call_operand.vmem [shape: f32[2,36,128], index: 0, kind: input, shape index: {}]   ;;  %s2078_s1 = inlined_call_operand.vmem [shape: f32[5,128,256], index: 1, kind: input, shape index: {}]   ;;  %s2079_s2 = inlined_call_operand.vmem [shape: f32[1,256], index: 2, kind: input, shape index: {}]   ;;  %s2080_s3 = inlined_call_operand.vmem [shape: f32[2,32,128], index: 3, kind: output, shape index: {}]  }
   0x1 LB: > { %s1135_s13 = sadd.s32 4294967295, %s1338_s12   ;;  %p1139_p0 = scmp.ge.s32.totalorder %s1338_s12, 1  ;;  %s1338_s12 = sphi %s1361_s12, %s13_s12  }
   0x2   : > { %p137_p1 = scmp.lt.s32.totalorder %s1338_s12, 3 }
   0x4   : > { %p138_p2 = pnand %p1139_p0, %p137_p1 }
   0x5   : > { %p1485_p3 = scmp.lt.s32.totalorder (!%p138_p2), %s1135_s13, 1 }
   0x6   : > { %141 = sbr.rel (%p138_p2) target bundleno = 385 (0x181), region = 32 }
   0xb   : > { %v208_v0 = vld [vmem:[%s2078_s1 + $0xf8] sm:$0xff]  ;;  %v207_v2 = vld [vmem:[%s2078_s1 + $0xf0] sm:$0xff]  ;;  %v206_v4 = vld [vmem:[%s2078_s1 + $0xe8] sm:$0xff]  ;;  %s2083_s13 = smov (!%p1485_p3, %s1135_s13), 1  ;;  %vm459_vm0 = vcmask 1046528   ;;  %vm632_vm1 = vcmask 1045504  }
   0xc   : > { %v1174_v1 = vld [vmem:[%s2078_s1 + $0x1f8] sm:$0xff]  ;;  %209 = vmatprep.subr.mxu0 %v208_v0  ;;  %v1173_v3 = vld [vmem:[%s2078_s1 + $0x1f0] sm:$0xff]  ;;  %v1172_v5 = vld [vmem:[%s2078_s1 + $0x1e8] sm:$0xff]  ;;  %s1306_s23 = smul.u32 40, %s2083_s13  ;;  %vm805_vm2 = vcmask 1044480   ;;  %vm978_vm3 = vcmask 1043456  }
   0xd   : > { %354 = vmatprep.subr.mxu1 %v1174_v1  ;;  %210 = vmatpush1.msra.mxu0 %v207_v2  ;;  %v205_v6 = vld [vmem:[%s2078_s1 + $0xe0] sm:$0xff]  ;;  %v204_v8 = vld [vmem:[%s2078_s1 + $0xd8] sm:$0xff]  ;;  %v203_v10 = vld [vmem:[%s2078_s1 + $0xd0] sm:$0xff]  ;;  %v1340_v1 = vmov 0.0   ;;  %vm1057_vm8 = vcmask 1041408  }
   0xe   : > { %355 = vmatpush1.msra.mxu1 %v1173_v3  ;;  %v1171_v7 = vld [vmem:[%s2078_s1 + $0x1e0] sm:$0xff]  ;;  %211 = vmatprep.subr.mxu0 %v206_v4  ;;  %v1170_v9 = vld [vmem:[%s2078_s1 + $0x1d8] sm:$0xff]  ;;  %v1169_v11 = vld [vmem:[%s2078_s1 + $0x1d0] sm:$0xff]  ;;  %s1571_s17 = scalar_lea.vmem %s2077_s0, %s1306_s23 }
   0xf   : > { %356 = vmatprep.subr.mxu1 %v1172_v5  ;;  %212 = vmatpush1.msra.mxu0 %v205_v6  ;;  %v202_v12 = vld [vmem:[%s2078_s1 + $0xc8] sm:$0xff]  ;;  %v201_v14 = vld [vmem:[%s2078_s1 + $0xc0] sm:$0xff]  ;;  %v200_v16 = vld [vmem:[%s2078_s1 + $0xb8] sm:$0xff] }
  0x10   : > { %357 = vmatpush1.msra.mxu1 %v1171_v7  ;;  %v1168_v13 = vld [vmem:[%s2078_s1 + $0x1c8] sm:$0xff]  ;;  %213 = vmatprep.subr.mxu0 %v204_v8  ;;  %v1167_v15 = vld [vmem:[%s2078_s1 + $0x1c0] sm:$0xff]  ;;  %v1166_v17 = vld [vmem:[%s2078_s1 + $0x1b8] sm:$0xff] }
  0x11   : > { %358 = vmatprep.subr.mxu1 %v1170_v9  ;;  %214 = vmatpush1.msra.mxu0 %v203_v10  ;;  %v199_v18 = vld [vmem:[%s2078_s1 + $0xb0] sm:$0xff]  ;;  %v198_v20 = vld [vmem:[%s2078_s1 + $0xa8] sm:$0xff]  ;;  %v197_v22 = vld [vmem:[%s2078_s1 + $0xa0] sm:$0xff] }
  0x12   : > { %359 = vmatpush1.msra.mxu1 %v1169_v11  ;;  %215 = vmatprep.subr.mxu0 %v202_v12  ;;  %v1165_v19 = vld [vmem:[%s2078_s1 + $0x1b0] sm:$0xff]  ;;  %v1164_v21 = vld [vmem:[%s2078_s1 + $0x1a8] sm:$0xff]  ;;  %v1163_v23 = vld [vmem:[%s2078_s1 + $0x1a0] sm:$0xff] }
  0x13   : > { %360 = vmatprep.subr.mxu1 %v1168_v13  ;;  %216 = vmatpush1.msra.mxu0 %v201_v14  ;;  %v196_v24 = vld [vmem:[%s2078_s1 + $0x98] sm:$0xff]  ;;  %v195_v26 = vld [vmem:[%s2078_s1 + $0x90] sm:$0xff]  ;;  %v194_v28 = vld [vmem:[%s2078_s1 + $0x88] sm:$0xff] }
  0x14   : > { %361 = vmatpush1.msra.mxu1 %v1167_v15  ;;  %217 = vmatprep.subr.mxu0 %v200_v16  ;;  %v1162_v25 = vld [vmem:[%s2078_s1 + $0x198] sm:$0xff]  ;;  %v1161_v27 = vld [vmem:[%s2078_s1 + $0x190] sm:$0xff]  ;;  %v1160_v29 = vld [vmem:[%s2078_s1 + $0x188] sm:$0xff] }
  0x15   : > { %362 = vmatprep.subr.mxu1 %v1166_v17  ;;  %218 = vmatpush1.msra.mxu0 %v199_v18  ;;  %v193_v30 = vld [vmem:[%s2078_s1 + $0x80] sm:$0xff]  ;;  %v192_v32 = vld [vmem:[%s2078_s1 + $0x78] sm:$0xff]  ;;  %v191_v34 = vld [vmem:[%s2078_s1 + $0x70] sm:$0xff] }
  0x16   : > { %363 = vmatpush1.msra.mxu1 %v1165_v19  ;;  %219 = vmatprep.subr.mxu0 %v198_v20  ;;  %v1159_v31 = vld [vmem:[%s2078_s1 + $0x180] sm:$0xff]  ;;  %v1158_v33 = vld [vmem:[%s2078_s1 + $0x178] sm:$0xff]  ;;  %v1157_v35 = vld [vmem:[%s2078_s1 + $0x170] sm:$0xff] }
  0x17   : > { %364 = vmatprep.subr.mxu1 %v1164_v21  ;;  %220 = vmatpush1.msra.mxu0 %v197_v22  ;;  %v190_v36 = vld [vmem:[%s2078_s1 + $0x68] sm:$0xff]  ;;  %v189_v38 = vld [vmem:[%s2078_s1 + $0x60] sm:$0xff]  ;;  %v188_v40 = vld [vmem:[%s2078_s1 + $0x58] sm:$0xff] }
  0x18   : > { %365 = vmatpush1.msra.mxu1 %v1163_v23  ;;  %221 = vmatprep.subr.mxu0 %v196_v24  ;;  %v1156_v37 = vld [vmem:[%s2078_s1 + $0x168] sm:$0xff]  ;;  %v1155_v39 = vld [vmem:[%s2078_s1 + $0x160] sm:$0xff]  ;;  %v1154_v41 = vld [vmem:[%s2078_s1 + $0x158] sm:$0xff] }
  0x19   : > { %366 = vmatprep.subr.mxu1 %v1162_v25  ;;  %222 = vmatpush1.msra.mxu0 %v195_v26  ;;  %v187_v42 = vld [vmem:[%s2078_s1 + $0x50] sm:$0xff]  ;;  %v186_v44 = vld [vmem:[%s2078_s1 + $0x48] sm:$0xff]  ;;  %v185_v46 = vld [vmem:[%s2078_s1 + $0x40] sm:$0xff] }
  0x1a   : > { %367 = vmatpush1.msra.mxu1 %v1161_v27  ;;  %223 = vmatprep.subr.mxu0 %v194_v28  ;;  %v1153_v43 = vld [vmem:[%s2078_s1 + $0x150] sm:$0xff]  ;;  %v1152_v45 = vld [vmem:[%s2078_s1 + $0x148] sm:$0xff]  ;;  %v1151_v47 = vld [vmem:[%s2078_s1 + $0x140] sm:$0xff] }
  0x1b   : > { %368 = vmatprep.subr.mxu1 %v1160_v29  ;;  %224 = vmatpush1.msra.mxu0 %v193_v30  ;;  %v184_v48 = vld [vmem:[%s2078_s1 + $0x38] sm:$0xff]  ;;  %v183_v50 = vld [vmem:[%s2078_s1 + $0x30] sm:$0xff]  ;;  %v182_v52 = vld [vmem:[%s2078_s1 + $0x28] sm:$0xff] }
  0x1c   : > { %369 = vmatpush1.msra.mxu1 %v1159_v31  ;;  %225 = vmatprep.subr.mxu0 %v192_v32  ;;  %v1150_v49 = vld [vmem:[%s2078_s1 + $0x138] sm:$0xff]  ;;  %v1149_v51 = vld [vmem:[%s2078_s1 + $0x130] sm:$0xff]  ;;  %v1148_v53 = vld [vmem:[%s2078_s1 + $0x128] sm:$0xff] }
  0x1d   : > { %370 = vmatprep.subr.mxu1 %v1158_v33  ;;  %226 = vmatpush1.msra.mxu0 %v191_v34  ;;  %v181_v54 = vld [vmem:[%s2078_s1 + $0x20] sm:$0xff]  ;;  %v180_v56 = vld [vmem:[%s2078_s1 + $0x18] sm:$0xff]  ;;  %v179_v58 = vld [vmem:[%s2078_s1 + $0x10] sm:$0xff] }
  0x1e   : > { %371 = vmatpush1.msra.mxu1 %v1157_v35  ;;  %227 = vmatprep.subr.mxu0 %v190_v36  ;;  %v1147_v55 = vld [vmem:[%s2078_s1 + $0x120] sm:$0xff]  ;;  %v1146_v57 = vld [vmem:[%s2078_s1 + $0x118] sm:$0xff]  ;;  %v1145_v59 = vld [vmem:[%s2078_s1 + $0x110] sm:$0xff] }
  0x1f   : > { %372 = vmatprep.subr.mxu1 %v1156_v37  ;;  %228 = vmatpush1.msra.mxu0 %v189_v38  ;;  %v178_v60 = vld [vmem:[%s2078_s1 + $0x8] sm:$0xff]  ;;  %v177_v62 = vld [vmem:[%s2078_s1] sm:$0xff]  ;;  %v1206_v2 = vld [vmem:[%s2078_s1 + $0x2f8] sm:$0xff] }
  0x20   : > { %373 = vmatpush1.msra.mxu1 %v1155_v39  ;;  %229 = vmatprep.subr.mxu0 %v188_v40  ;;  %v1144_v61 = vld [vmem:[%s2078_s1 + $0x108] sm:$0xff]  ;;  %v1143_v63 = vld [vmem:[%s2078_s1 + $0x100] sm:$0xff]  ;;  %v1238_v3 = vld [vmem:[%s2078_s1 + $0x3f8] sm:$0xff] }
  0x21   : > { %374 = vmatprep.subr.mxu1 %v1154_v41  ;;  %230 = vmatpush1.msra.mxu0 %v187_v42  ;;  %v1580_v0 = vld [vmem:[%s1571_s17] sm:$0xff]  ;;  %v1205_v4 = vld [vmem:[%s2078_s1 + $0x2f0] sm:$0xff]  ;;  %v1204_v6 = vld [vmem:[%s2078_s1 + $0x2e8] sm:$0xff] }
  0x22   : > { %375 = vmatpush1.msra.mxu1 %v1153_v43  ;;  %231 = vmatprep.subr.mxu0 %v186_v44  ;;  %v1237_v5 = vld [vmem:[%s2078_s1 + $0x3f0] sm:$0xff]  ;;  %v1236_v7 = vld [vmem:[%s2078_s1 + $0x3e8] sm:$0xff]  ;;  %v1203_v8 = vld [vmem:[%s2078_s1 + $0x2e0] sm:$0xff] }
  0x23   : > { %376 = vmatprep.subr.mxu1 %v1152_v45  ;;  %232 = vmatpush1.msra.mxu0 %v185_v46  ;;  %v1235_v9 = vld [vmem:[%s2078_s1 + $0x3e0] sm:$0xff]  ;;  %v1202_v10 = vld [vmem:[%s2078_s1 + $0x2d8] sm:$0xff]  ;;  %v1614_v11 = vld [vmem:[%s1571_s17 + $0x8] sm:$0xff] }
  0x24   : > { %377 = vmatpush1.msra.mxu1 %v1151_v47  ;;  %233 = vmatprep.subr.mxu0 %v184_v48  ;;  %v1234_v12 = vld [vmem:[%s2078_s1 + $0x3d8] sm:$0xff]  ;;  %v1201_v13 = vld [vmem:[%s2078_s1 + $0x2d0] sm:$0xff]  ;;  %v1200_v15 = vld [vmem:[%s2078_s1 + $0x2c8] sm:$0xff] }
  0x25   : > { %378 = vmatprep.subr.mxu1 %v1150_v49  ;;  %234 = vmatpush1.msra.mxu0 %v183_v50  ;;  %v1233_v14 = vld [vmem:[%s2078_s1 + $0x3d0] sm:$0xff]  ;;  %v1232_v16 = vld [vmem:[%s2078_s1 + $0x3c8] sm:$0xff]  ;;  %v1199_v17 = vld [vmem:[%s2078_s1 + $0x2c0] sm:$0xff] }
  0x26   : > { %379 = vmatpush1.msra.mxu1 %v1149_v51  ;;  %235 = vmatprep.subr.mxu0 %v182_v52  ;;  %v1231_v18 = vld [vmem:[%s2078_s1 + $0x3c0] sm:$0xff]  ;;  %v1198_v19 = vld [vmem:[%s2078_s1 + $0x2b8] sm:$0xff]  ;;  %v1197_v21 = vld [vmem:[%s2078_s1 + $0x2b0] sm:$0xff] }
  0x27   : > { %380 = vmatprep.subr.mxu1 %v1148_v53  ;;  %236 = vmatpush1.msra.mxu0 %v181_v54  ;;  %v1230_v20 = vld [vmem:[%s2078_s1 + $0x3b8] sm:$0xff]  ;;  %v1229_v22 = vld [vmem:[%s2078_s1 + $0x3b0] sm:$0xff]  ;;  %v1196_v23 = vld [vmem:[%s2078_s1 + $0x2a8] sm:$0xff] }
  0x28   : > { %381 = vmatpush1.msra.mxu1 %v1147_v55  ;;  %237 = vmatprep.subr.mxu0 %v180_v56  ;;  %v1228_v24 = vld [vmem:[%s2078_s1 + $0x3a8] sm:$0xff]  ;;  %v1195_v25 = vld [vmem:[%s2078_s1 + $0x2a0] sm:$0xff]  ;;  %v1194_v27 = vld [vmem:[%s2078_s1 + $0x298] sm:$0xff] }
  0x29   : > { %382 = vmatprep.subr.mxu1 %v1146_v57  ;;  %238 = vmatpush1.msra.mxu0 %v179_v58  ;;  %v1227_v26 = vld [vmem:[%s2078_s1 + $0x3a0] sm:$0xff]  ;;  %v1226_v28 = vld [vmem:[%s2078_s1 + $0x398] sm:$0xff]  ;;  %v1193_v29 = vld [vmem:[%s2078_s1 + $0x290] sm:$0xff] }
  0x2a   : > { %383 = vmatpush1.msra.mxu1 %v1145_v59  ;;  %239 = vmatprep.subr.mxu0 %v178_v60  ;;  %v1225_v30 = vld [vmem:[%s2078_s1 + $0x390] sm:$0xff]  ;;  %v1192_v32 = vld [vmem:[%s2078_s1 + $0x288] sm:$0xff]  ;;  %v1191_v34 = vld [vmem:[%s2078_s1 + $0x280] sm:$0xff] }
  0x2b   : > { %384 = vmatprep.subr.mxu1 %v1144_v61  ;;  %240 = vmatpush1.msra.mxu0 %v177_v62  ;;  %v1676_v31 = vld [vmem:[%s1571_s17 + $0x10] sm:$0xff]  ;;  %v1224_v33 = vld [vmem:[%s2078_s1 + $0x388] sm:$0xff]  ;;  %v1223_v35 = vld [vmem:[%s2078_s1 + $0x380] sm:$0xff] }
  0x2c   : > { %273 = vmatprep.mubr.f32.mxu0 %v1340_v1  ;;  %385 = vmatpush1.msra.mxu1 %v1143_v63  ;;  %v1190_v36 = vld [vmem:[%s2078_s1 + $0x278] sm:$0xff]  ;;  %v1189_v38 = vld [vmem:[%s2078_s1 + $0x270] sm:$0xff]  ;;  %v1188_v41 = vld [vmem:[%s2078_s1 + $0x268] sm:$0xff] }
  0x2d   : > { %418 = vmatprep.mubr.f32.mxu1 %v1340_v1  ;;  %274 = vmatmul.mubr.f32.vlgmr.msra.gmra.mxu0 %v1580_v0  ;;  %v1222_v37 = vld [vmem:[%s2078_s1 + $0x378] sm:$0xff]  ;;  %v1221_v39 = vld [vmem:[%s2078_s1 + $0x370] sm:$0xff]  ;;  %v1220_v42 = vld [vmem:[%s2078_s1 + $0x368] sm:$0xff] }
  0x2e   : > { %419 = vmatmul.mubr.f32.vlgmr.msra.gmra.mxu1 %v1580_v0  ;;  %527 = vmatprep.subr.mxu0 %v1206_v2  ;;  %v1707_v40 = vld [vmem:[%s1571_s17 + $0x18] sm:$0xff]  ;;  %v1187_v43 = vld [vmem:[%s2078_s1 + $0x260] sm:$0xff]  ;;  %v1185_v47 = vld [vmem:[%s2078_s1 + $0x250] sm:$0xff] }
  0x2f   : > { %700 = vmatprep.subr.mxu1 %v1238_v3  ;;  %528 = vmatpush1.msra.mxu0 %v1205_v4  ;;  %v1219_v44 = vld [vmem:[%s2078_s1 + $0x360] sm:$0xff]  ;;  %v1186_v45 = vld [vmem:[%s2078_s1 + $0x258] sm:$0xff]  ;;  %v1217_v48 = vld [vmem:[%s2078_s1 + $0x350] sm:$0xff] }
  0x30   : > { %701 = vmatpush1.msra.mxu1 %v1237_v5  ;;  %529 = vmatprep.subr.mxu0 %v1204_v6  ;;  %v1218_v46 = vld [vmem:[%s2078_s1 + $0x358] sm:$0xff]  ;;  %v1738_v49 = vld [vmem:[%s1571_s17 + $0x20] sm:$0xf]  ;;  %v1184_v50 = vld [vmem:[%s2078_s1 + $0x248] sm:$0xff]  ;;  %s1273_s17 = sshll.u32 %s2083_s13, 5 }
  0x31   : > { %702 = vmatprep.subr.mxu1 %v1236_v7  ;;  %424 = vmatprep.mubr.f32.mxu1 %v1340_v1  ;;  %v1216_v51 = vld [vmem:[%s2078_s1 + $0x348] sm:$0xff]  ;;  %v1183_v52 = vld [vmem:[%s2078_s1 + $0x240] sm:$0xff]  ;;  %v1182_v54 = vld [vmem:[%s2078_s1 + $0x238] sm:$0xff]  ;;  %s170_s22 = scalar_lea.vmem %s2080_s3, %s1273_s17 }
  0x32   : > { %530 = vmatpush1.msra.mxu0 %v1203_v8  ;;  %703 = vmatpush1.msra.mxu1 %v1235_v9  ;;  %v1215_v53 = vld [vmem:[%s2078_s1 + $0x340] sm:$0xff]  ;;  %v1214_v55 = vld [vmem:[%s2078_s1 + $0x338] sm:$0xff]  ;;  %v1181_v56 = vld [vmem:[%s2078_s1 + $0x230] sm:$0xff] }
  0x33   : > { %531 = vmatprep.subr.mxu0 %v1202_v10  ;;  %425 = vmatmul.mubr.f32.gmra.mxu1 %v1614_v11  ;;  %v1213_v57 = vld [vmem:[%s2078_s1 + $0x330] sm:$0xff]  ;;  %v1180_v58 = vld [vmem:[%s2078_s1 + $0x228] sm:$0xff]  ;;  %v1179_v60 = vld [vmem:[%s2078_s1 + $0x220] sm:$0xff] }
  0x34   : > { %704 = vmatprep.subr.mxu1 %v1234_v12  ;;  %532 = vmatpush1.msra.mxu0 %v1201_v13  ;;  %v1212_v59 = vld [vmem:[%s2078_s1 + $0x328] sm:$0xff]  ;;  %v1211_v61 = vld [vmem:[%s2078_s1 + $0x320] sm:$0xff]  ;;  %v1178_v62 = vld [vmem:[%s2078_s1 + $0x218] sm:$0xff] }
  0x35   : > { %705 = vmatpush1.msra.mxu1 %v1233_v14  ;;  %533 = vmatprep.subr.mxu0 %v1200_v15  ;;  %v1210_v63 = vld [vmem:[%s2078_s1 + $0x318] sm:$0xff]  ;;  %v1177_v2 = vld [vmem:[%s2078_s1 + $0x210] sm:$0xff]  ;;  %v1176_v4 = vld [vmem:[%s2078_s1 + $0x208] sm:$0xff] }
  0x36   : > { %706 = vmatprep.subr.mxu1 %v1232_v16  ;;  %534 = vmatpush1.msra.mxu0 %v1199_v17  ;;  %v1209_v3 = vld [vmem:[%s2078_s1 + $0x310] sm:$0xff]  ;;  %v1208_v5 = vld [vmem:[%s2078_s1 + $0x308] sm:$0xff]  ;;  %v1175_v6 = vld [vmem:[%s2078_s1 + $0x200] sm:$0xff] }
  0x37   : > { %707 = vmatpush1.msra.mxu1 %v1231_v18  ;;  %535 = vmatprep.subr.mxu0 %v1198_v19  ;;  %v1207_v7 = vld [vmem:[%s2078_s1 + $0x300] sm:$0xff]  ;;  %v1270_v8 = vld [vmem:[%s2078_s1 + $0x4f8] sm:$0xff]  ;;  %v1269_v9 = vld [vmem:[%s2078_s1 + $0x4f0] sm:$0xff] }
  0x38   : > { %708 = vmatprep.subr.mxu1 %v1230_v20  ;;  %536 = vmatpush1.msra.mxu0 %v1197_v21  ;;  %v1268_v10 = vld [vmem:[%s2078_s1 + $0x4e8] sm:$0xff]  ;;  %v1267_v12 = vld [vmem:[%s2078_s1 + $0x4e0] sm:$0xff]  ;;  %v1266_v13 = vld [vmem:[%s2078_s1 + $0x4d8] sm:$0xff] }
  0x39   : > { %709 = vmatpush1.msra.mxu1 %v1229_v22  ;;  %537 = vmatprep.subr.mxu0 %v1196_v23  ;;  %v1265_v14 = vld [vmem:[%s2078_s1 + $0x4d0] sm:$0xff]  ;;  %v1264_v15 = vld [vmem:[%s2078_s1 + $0x4c8] sm:$0xff]  ;;  %v1263_v16 = vld [vmem:[%s2078_s1 + $0x4c0] sm:$0xff] }
  0x3a   : > { %710 = vmatprep.subr.mxu1 %v1228_v24  ;;  %538 = vmatpush1.msra.mxu0 %v1195_v25  ;;  %v1262_v17 = vld [vmem:[%s2078_s1 + $0x4b8] sm:$0xff]  ;;  %v1261_v18 = vld [vmem:[%s2078_s1 + $0x4b0] sm:$0xff]  ;;  %v1260_v19 = vld [vmem:[%s2078_s1 + $0x4a8] sm:$0xff] }
  0x3b   : > { %711 = vmatpush1.msra.mxu1 %v1227_v26  ;;  %539 = vmatprep.subr.mxu0 %v1194_v27  ;;  %v1259_v20 = vld [vmem:[%s2078_s1 + $0x4a0] sm:$0xff]  ;;  %v1258_v21 = vld [vmem:[%s2078_s1 + $0x498] sm:$0xff]  ;;  %v1257_v22 = vld [vmem:[%s2078_s1 + $0x490] sm:$0xff] }
  0x3c   : > { %712 = vmatprep.subr.mxu1 %v1226_v28  ;;  %430 = vmatprep.mubr.f32.mxu1 %v1340_v1  ;;  %v1256_v23 = vld [vmem:[%s2078_s1 + $0x488] sm:$0xff]  ;;  %v1255_v24 = vld [vmem:[%s2078_s1 + $0x480] sm:$0xff]  ;;  %v1254_v25 = vld [vmem:[%s2078_s1 + $0x478] sm:$0xff] }
  0x3d   : > { %540 = vmatpush1.msra.mxu0 %v1193_v29  ;;  %713 = vmatpush1.msra.mxu1 %v1225_v30  ;;  %v1253_v26 = vld [vmem:[%s2078_s1 + $0x470] sm:$0xff]  ;;  %v1252_v27 = vld [vmem:[%s2078_s1 + $0x468] sm:$0xff]  ;;  %v1251_v28 = vld [vmem:[%s2078_s1 + $0x460] sm:$0xff] }
  0x3e   : > { %279 = vmatprep.mubr.f32.mxu0 %v1340_v1  ;;  %431 = vmatmul.mubr.f32.gmra.mxu1 %v1676_v31  ;;  %v1250_v29 = vld [vmem:[%s2078_s1 + $0x458] sm:$0xff]  ;;  %v1249_v30 = vld [vmem:[%s2078_s1 + $0x450] sm:$0xff] }
  0x3f   : > { %541 = vmatprep.subr.mxu0 %v1192_v32  ;;  %714 = vmatprep.subr.mxu1 %v1224_v33  ;;  %v1248_v32 = vld [vmem:[%s2078_s1 + $0x448] sm:$0xff]  ;;  %v1247_v33 = vld [vmem:[%s2078_s1 + $0x440] sm:$0xff] }
  0x40   : > { %280 = vmatmul.mubr.f32.gmra.mxu0 %v1614_v11  ;;  %715 = vmatpush1.msra.mxu1 %v1223_v35  ;;  %v1245_v35 = vld [vmem:[%s2078_s1 + $0x430] sm:$0xff] }
  0x41   : > { %542 = vmatpush1.msra.mxu0 %v1191_v34  ;;  %716 = vmatprep.subr.mxu1 %v1222_v37  ;;  %v1246_v34 = vld [vmem:[%s2078_s1 + $0x438] sm:$0xff]  ;;  %v1243_v37 = vld [vmem:[%s2078_s1 + $0x420] sm:$0xff] }
  0x42   : > { %543 = vmatprep.subr.mxu0 %v1190_v36  ;;  %436 = vmatprep.mubr.f32.mxu1 %v1340_v1  ;;  %v1244_v36 = vld [vmem:[%s2078_s1 + $0x428] sm:$0xff] }
  0x43   : > { %544 = vmatpush1.msra.mxu0 %v1189_v38  ;;  %717 = vmatpush1.msra.mxu1 %v1221_v39  ;;  %v1242_v38 = vld [vmem:[%s2078_s1 + $0x418] sm:$0xff]  ;;  %v1241_v39 = vld [vmem:[%s2078_s1 + $0x410] sm:$0xff] }
  0x44   : > { %285 = vmatprep.mubr.f32.mxu0 %v1340_v1  ;;  %437 = vmatmul.mubr.f32.gmra.mxu1 %v1707_v40 }
  0x45   : > { %545 = vmatprep.subr.mxu0 %v1188_v41  ;;  %718 = vmatprep.subr.mxu1 %v1220_v42  ;;  %v1240_v41 = vld [vmem:[%s2078_s1 + $0x408] sm:$0xff]  ;;  %v1239_v42 = vld [vmem:[%s2078_s1 + $0x400] sm:$0xff] }
  0x46   : > { %286 = vmatmul.mubr.f32.gmra.mxu0 %v1676_v31  ;;  %719 = vmatpush1.msra.mxu1 %v1219_v44 }
  0x47   : > { %546 = vmatpush1.msra.mxu0 %v1187_v43  ;;  %720 = vmatprep.subr.mxu1 %v1218_v46  ;;  %v303_v43 = vlaneseq }
  0x48   : > { %547 = vmatprep.subr.mxu0 %v1186_v45  ;;  %442 = vmatprep.mubr.f32.mxu1 %v1340_v1 }
  0x49   : > { %548 = vmatpush1.msra.mxu0 %v1185_v47  ;;  %721 = vmatpush1.msra.mxu1 %v1217_v48  ;;  %v1932_v44 = vshrl.u32 %v303_v43, 7  ;;  %v176_v47 = vld [vmem:[%s2079_s2] sm:$0x3] }
  0x4a   : > { %291 = vmatprep.mubr.f32.mxu0 %v1340_v1  ;;  %443 = vmatmul.mubr.f32.gmra.mxu1 %v1738_v49 }
  0x4b   : > { %549 = vmatprep.subr.mxu0 %v1184_v50  ;;  %722 = vmatprep.subr.mxu1 %v1216_v51  ;;  %v305_v45 = vsub.s32 0, %v1932_v44 }
  0x4c   : > { %292 = vmatmul.mubr.f32.gmra.mxu0 %v1707_v40  ;;  %723 = vmatpush1.msra.mxu1 %v1215_v53 }
  0x4d   : > { %550 = vmatpush1.msra.mxu0 %v1183_v52  ;;  %724 = vmatprep.subr.mxu1 %v1214_v55  ;;  %v306_v50 = vrot.slane %v176_v47, %v305_v45 }
  0x4e   : > { %551 = vmatprep.subr.mxu0 %v1182_v54  ;;  %725 = vmatpush1.msra.mxu1 %v1213_v57 }
  0x4f   : > { %552 = vmatpush1.msra.mxu0 %v1181_v56  ;;  %297 = vmatprep.mubr.f32.mxu0 %v1340_v1 }
  0x50   : > { %553 = vmatprep.subr.mxu0 %v1180_v58  ;;  %726 = vmatprep.subr.mxu1 %v1212_v59 }
  0x51   : > { %298 = vmatmul.mubr.f32.gmra.mxu0 %v1738_v49  ;;  %727 = vmatpush1.msra.mxu1 %v1211_v61 }
  0x52   : > { %554 = vmatpush1.msra.mxu0 %v1179_v60  ;;  %728 = vmatprep.subr.mxu1 %v1210_v63 }
  0x53   : > { %555 = vmatprep.subr.mxu0 %v1178_v62  ;;  %729 = vmatpush1.msra.mxu1 %v1209_v3 }
  0x54   : > { %556 = vmatpush1.msra.mxu0 %v1177_v2  ;;  %730 = vmatprep.subr.mxu1 %v1208_v5 }
  0x55   : > { %557 = vmatprep.subr.mxu0 %v1176_v4  ;;  %591 = vmatprep.mubr.f32.mxu0 %v1340_v1 }
  0x56   : > { %558 = vmatpush1.msra.mxu0 %v1175_v6  ;;  %731 = vmatpush1.msra.mxu1 %v1207_v7 }
  0x57   : > { %764 = vmatprep.mubr.f32.mxu1 %v1340_v1  ;;  %592 = vmatmul.mubr.f32.vlgmr.msra.gmra.mxu0 %v1580_v0 }
  0x58   : > { %765 = vmatmul.mubr.f32.vlgmr.msra.gmra.mxu1 %v1580_v0  ;;  %873 = vmatprep.subr.mxu0 %v1270_v8 }
  0x59   : > { %1274 = vmatprep.subr.mxu1 %v1270_v8  ;;  %874 = vmatpush1.msra.mxu0 %v1269_v9 }
  0x5a   : > { %1290 = vmatpush1.msra.mxu1 %v1269_v9  ;;  %875 = vmatprep.subr.mxu0 %v1268_v10 }
  0x5b   : > { %1275 = vmatprep.subr.mxu1 %v1268_v10  ;;  %597 = vmatprep.mubr.f32.mxu0 %v1340_v1 }
  0x5c   : > { %770 = vmatprep.mubr.f32.mxu1 %v1340_v1  ;;  %876 = vmatpush1.msra.mxu0 %v1267_v12 }
  0x5d   : > { %1291 = vmatpush1.msra.mxu1 %v1267_v12  ;;  %598 = vmatmul.mubr.f32.gmra.mxu0 %v1614_v11 }
  0x5e   : > { %771 = vmatmul.mubr.f32.gmra.mxu1 %v1614_v11  ;;  %877 = vmatprep.subr.mxu0 %v1266_v13 }
  0x5f   : > { %1276 = vmatprep.subr.mxu1 %v1266_v13  ;;  %878 = vmatpush1.msra.mxu0 %v1265_v14 }
  0x60   : > { %1292 = vmatpush1.msra.mxu1 %v1265_v14  ;;  %879 = vmatprep.subr.mxu0 %v1264_v15 }
  0x61   : > { %1277 = vmatprep.subr.mxu1 %v1264_v15  ;;  %603 = vmatprep.mubr.f32.mxu0 %v1340_v1 }
  0x62   : > { %880 = vmatpush1.msra.mxu0 %v1263_v16  ;;  %1293 = vmatpush1.msra.mxu1 %v1263_v16 }
  0x63   : > { %604 = vmatmul.mubr.f32.gmra.mxu0 %v1676_v31  ;;  %881 = vmatprep.subr.mxu0 %v1262_v17 }
  0x64   : > { %1278 = vmatprep.subr.mxu1 %v1262_v17  ;;  %776 = vmatprep.mubr.f32.mxu1 %v1340_v1 }
  0x65   : > { %882 = vmatpush1.msra.mxu0 %v1261_v18  ;;  %1294 = vmatpush1.msra.mxu1 %v1261_v18 }
  0x66   : > { %883 = vmatprep.subr.mxu0 %v1260_v19  ;;  %777 = vmatmul.mubr.f32.gmra.mxu1 %v1676_v31 }
  0x67   : > { %1279 = vmatprep.subr.mxu1 %v1260_v19  ;;  %609 = vmatprep.mubr.f32.mxu0 %v1340_v1 }
  0x68   : > { %884 = vmatpush1.msra.mxu0 %v1259_v20  ;;  %1295 = vmatpush1.msra.mxu1 %v1259_v20 }
  0x69   : > { %610 = vmatmul.mubr.f32.gmra.mxu0 %v1707_v40  ;;  %885 = vmatprep.subr.mxu0 %v1258_v21 }
  0x6a   : > { %1280 = vmatprep.subr.mxu1 %v1258_v21  ;;  %782 = vmatprep.mubr.f32.mxu1 %v1340_v1 }
  0x6b   : > { %886 = vmatpush1.msra.mxu0 %v1257_v22  ;;  %1296 = vmatpush1.msra.mxu1 %v1257_v22 }
  0x6c   : > { %887 = vmatprep.subr.mxu0 %v1256_v23  ;;  %783 = vmatmul.mubr.f32.gmra.mxu1 %v1707_v40 }
  0x6d   : > { %1281 = vmatprep.subr.mxu1 %v1256_v23  ;;  %615 = vmatprep.mubr.f32.mxu0 %v1340_v1 }
  0x6e   : > { %888 = vmatpush1.msra.mxu0 %v1255_v24  ;;  %1297 = vmatpush1.msra.mxu1 %v1255_v24 }
  0x6f   : > { %616 = vmatmul.mubr.f32.gmra.mxu0 %v1738_v49  ;;  %889 = vmatprep.subr.mxu0 %v1254_v25 }
  0x70   : > { %1282 = vmatprep.subr.mxu1 %v1254_v25  ;;  %788 = vmatprep.mubr.f32.mxu1 %v1340_v1 }
  0x71   : > { %890 = vmatpush1.msra.mxu0 %v1253_v26  ;;  %1298 = vmatpush1.msra.mxu1 %v1253_v26 }
  0x72   : > { %891 = vmatprep.subr.mxu0 %v1252_v27  ;;  %789 = vmatmul.mubr.f32.gmra.mxu1 %v1738_v49 }
  0x73   : > { %1283 = vmatprep.subr.mxu1 %v1252_v27  ;;  %892 = vmatpush1.msra.mxu0 %v1251_v28 }
  0x74   : > { %1299 = vmatpush1.msra.mxu1 %v1251_v28  ;;  %893 = vmatprep.subr.mxu0 %v1250_v29 }
  0x75   : > { %1284 = vmatprep.subr.mxu1 %v1250_v29  ;;  %894 = vmatpush1.msra.mxu0 %v1249_v30 }
  0x76   : > { %1300 = vmatpush1.msra.mxu1 %v1249_v30  ;;  %895 = vmatprep.subr.mxu0 %v1248_v32 }
  0x77   : > { %1285 = vmatprep.subr.mxu1 %v1248_v32  ;;  %896 = vmatpush1.msra.mxu0 %v1247_v33 }
  0x78   : > { %1301 = vmatpush1.msra.mxu1 %v1247_v33  ;;  %897 = vmatprep.subr.mxu0 %v1246_v34 }
  0x79   : > { %1286 = vmatprep.subr.mxu1 %v1246_v34  ;;  %898 = vmatpush1.msra.mxu0 %v1245_v35 }
  0x7a   : > { %1302 = vmatpush1.msra.mxu1 %v1245_v35  ;;  %899 = vmatprep.subr.mxu0 %v1244_v36 }
  0x7b   : > { %1287 = vmatprep.subr.mxu1 %v1244_v36  ;;  %900 = vmatpush1.msra.mxu0 %v1243_v37 }
  0x7c   : > { %1303 = vmatpush1.msra.mxu1 %v1243_v37  ;;  %901 = vmatprep.subr.mxu0 %v1242_v38 }
  0x7d   : > { %1288 = vmatprep.subr.mxu1 %v1242_v38  ;;  %902 = vmatpush1.msra.mxu0 %v1241_v39 }
  0x7e   : > { %1304 = vmatpush1.msra.mxu1 %v1241_v39  ;;  %903 = vmatprep.subr.mxu0 %v1240_v41 }
  0x7f   : > { %1289 = vmatprep.subr.mxu1 %v1240_v41  ;;  %904 = vmatpush1.msra.mxu0 %v1239_v42  ;;  %v309_v41 = vsub.s32 1, %v1932_v44 }
  0x80   : > { %1305 = vmatpush1.msra.mxu1 %v1239_v42  ;;  %937 = vmatprep.mubr.f32.mxu0 %v1340_v1 }
  0x81   : > { %955 = vmatprep.mubr.f32.mxu1 %v1340_v1  ;;  %938 = vmatmul.mubr.f32.vlgmr.msra.gmra.mxu0 %v1580_v0 }
  0x82   : > { %956 = vmatmul.mubr.f32.vlgmr.msra.gmra.mxu1 %v1707_v40  ;;  %943 = vmatprep.mubr.f32.mxu0 %v1340_v1 }
  0x83   : > { %961 = vmatprep.mubr.f32.mxu1 %v1340_v1 }
  0x85   : > { %944 = vmatmul.mubr.f32.gmra.mxu0 %v1614_v11 }
  0x86   : > { %962 = vmatmul.mubr.f32.gmra.mxu1 %v1738_v49  ;;  %949 = vmatprep.mubr.f32.mxu0 %v1340_v1 }
  0x89   : > { %950 = vmatmul.mubr.f32.gmra.mxu0 %v1676_v31 }
  0xed   : > { %v275_v51 = vpop.f32.mrf.mxu0 }
  0xee   : > { %v420_v46 = vpop.f32.mrf.mxu1  ;;  %v313_v54 = vadd.f32 %v306_v50, %v275_v51 }
  0xef   : > { %v460_v52 = vrot.slane %v420_v46, 1  ;;  %v277_v58 = vpop.f32.mrf.mxu0 }
  0xf0   : > { %v1938_v48 = vpop.f32.mrf.mxu1 }
  0xf1   : > { %v463_v45 = vrot.slane %v1938_v48, 1 }
  0xf3   : > { %v426_v53 = vpop.f32.mrf.mxu1 }
  0xf4   : > { %v461_v1 = vrot.slane %v426_v53, 1 }
  0xf5   : > { %v1943_v57 = vpop.f32.mrf.mxu1 }
  0xf6   : > { %v462_v55 = vsel %vm459_vm0, %v460_v52, %v461_v1  ;;  %v464_v46 = vrot.slane %v1943_v57, 1 }
  0xf7   : > { %v1941_v56 = vadd.f32 %v462_v55, %v313_v54 }
  0xfe   : > { %v432_v59 = vpop.f32.mrf.mxu1 }
  0xff   : > { %v466_v60 = vrot.slane %v432_v59, 1 }
 0x100   : > { %v281_v61 = vpop.f32.mrf.mxu0  ;;  %v1945_v63 = vpop.f32.mrf.mxu1 }
 0x101   : > { %v315_v62 = vadd.f32 %v306_v50, %v281_v61  ;;  %v467_v2 = vsel %vm459_vm0, %v461_v1, %v466_v60  ;;  %v465_v1 = vsel %vm459_vm0, %v463_v45, %v464_v46 }
 0x102   : > { %v283_v3 = vpop.f32.mrf.mxu0 }
 0x103   : > { %v1948_v4 = vadd.f32 %v467_v2, %v315_v62  ;;  %v468_v62 = vrot.slane %v1945_v63, 1 }
 0x104   : > { %v438_v5 = vpop.f32.mrf.mxu1 }
 0x105   : > { %v470_v6 = vrot.slane %v438_v5, 1 }
 0x106   : > { %v287_v7 = vpop.f32.mrf.mxu0  ;;  %v1950_v9 = vpop.f32.mrf.mxu1 }
 0x107   : > { %v317_v8 = vadd.f32 %v306_v50, %v287_v7  ;;  %v471_v10 = vsel %vm459_vm0, %v466_v60, %v470_v6  ;;  %v472_v54 = vrot.slane %v1950_v9, 1 }
 0x108   : > { %v289_v12 = vpop.f32.mrf.mxu0 }
 0x109   : > { %v1953_v13 = vadd.f32 %v471_v10, %v317_v8 }
 0x10a   : > { %v444_v14 = vpop.f32.mrf.mxu1 }
 0x10b   : > { %v474_v15 = vrot.slane %v444_v14, 1 }
 0x10c   : > { %v293_v16 = vpop.f32.mrf.mxu0  ;;  %v446_v24 = vpop.f32.mrf.mxu1 }
 0x10d   : > { %v319_v17 = vadd.f32 %v306_v50, %v293_v16  ;;  %v475_v18 = vsel %vm459_vm0, %v470_v6, %v474_v15  ;;  %v310_v50 = vrot.slane %v176_v47, %v309_v41  ;;  %v476_v53 = vrot.slane %v446_v24, 1 }
 0x10e   : > { %v295_v19 = vpop.f32.mrf.mxu0 }
 0x10f   : > { %v1956_v20 = vadd.f32 %v475_v18, %v319_v17  ;;  %v314_v44 = vadd.f32 %v310_v50, %v277_v58  ;;  %v320_v60 = vadd.f32 %v310_v50, %v295_v19  ;;  %v477_v48 = vsel %vm459_vm0, %v472_v54, %v476_v53 }
 0x110   : > { %v316_v5 = vadd.f32 %v310_v50, %v283_v3  ;;  %v318_v14 = vadd.f32 %v310_v50, %v289_v12  ;;  %v469_v3 = vsel %vm459_vm0, %v464_v46, %v468_v62  ;;  %v473_v19 = vsel %vm459_vm0, %v468_v62, %v472_v54 }
 0x111   : > { %v299_v21 = vpop.f32.mrf.mxu0  ;;  %v487_v47 = vadd.f32 %v465_v1, %v314_v44  ;;  %v493_v15 = vadd.f32 %v477_v48, %v320_v60 }
 0x112   : > { %v491_v41 = vadd.f32 %v473_v19, %v318_v14 }
 0x113   : > { %v300_v22 = vpop.f32.mrf.mxu0 }
 0x117   : > { %v1958_v23 = vpop.f32.mrf.mxu0 }
 0x118   : > { %v1960_v26 = vpop.f32.mrf.mxu1 }
 0x119   : > { %v595_v25 = vpop.f32.mrf.mxu0 }
 0x11a   : > { %v768_v28 = vpop.f32.mrf.mxu1  ;;  %v636_v2 = vrot.slane %v595_v25, 2 }
 0x11b   : > { %v809_v63 = vrot.slane %v768_v28, 3 }
 0x11d   : > { %v1962_v27 = vpop.f32.mrf.mxu0 }
 0x11e   : > { %v1964_v30 = vpop.f32.mrf.mxu1 }
 0x11f   : > { %v601_v29 = vpop.f32.mrf.mxu0 }
 0x120   : > { %v1968_v33 = vpop.f32.mrf.mxu1  ;;  %v637_v55 = vrot.slane %v601_v29, 2 }
 0x121   : > { %v810_v16 = vrot.slane %v1968_v33, 3 }
 0x122   : > { %v638_v8 = vsel %vm632_vm1, %v636_v2, %v637_v55 }
 0x123   : > { %v1966_v32 = vpop.f32.mrf.mxu0  ;;  %v660_v22 = vadd.f32 %v638_v8, %v487_v47  ;;  %v811_v45 = vsel %vm805_vm2, %v809_v63, %v810_v16 }
 0x125   : > { %v607_v34 = vpop.f32.mrf.mxu0  ;;  %v833_v54 = vadd.f32 %v811_v45, %v660_v22 }
 0x126   : > { %v1970_v35 = vpop.f32.mrf.mxu1  ;;  %v641_v9 = vrot.slane %v607_v34, 2 }
 0x128   : > { %v1974_v37 = vpop.f32.mrf.mxu1  ;;  %v642_v12 = vsel %vm632_vm1, %v637_v55, %v641_v9 }
 0x129   : > { %v1972_v36 = vpop.f32.mrf.mxu0  ;;  %v814_v28 = vrot.slane %v1974_v37, 3 }
 0x12b   : > { %v613_v38 = vpop.f32.mrf.mxu0  ;;  %v815_v60 = vsel %vm805_vm2, %v810_v16, %v814_v28 }
 0x12c   : > { %v1976_v39 = vpop.f32.mrf.mxu1  ;;  %v645_v57 = vrot.slane %v613_v38, 2  ;;  %v489_v38 = vadd.f32 %v469_v3, %v316_v5 }
 0x12e   : > { %v1981_v43 = vpop.f32.mrf.mxu1  ;;  %v646_v33 = vsel %vm632_vm1, %v641_v9, %v645_v57 }
 0x12f   : > { %v1979_v42 = vpop.f32.mrf.mxu0  ;;  %v818_v21 = vrot.slane %v1981_v43, 3  ;;  %v664_v55 = vadd.f32 %v646_v33, %v491_v41 }
 0x131   : > { %v619_v51 = vpop.f32.mrf.mxu0 }
 0x132   : > { %v1985_v52 = vpop.f32.mrf.mxu1  ;;  %v649_v59 = vrot.slane %v619_v51, 2 }
 0x134   : > { %v792_v61 = vpop.f32.mrf.mxu1  ;;  %v650_v58 = vsel %vm632_vm1, %v645_v57, %v649_v59  ;;  %v662_v59 = vadd.f32 %v642_v12, %v489_v38 }
 0x135   : > { %v822_v10 = vrot.slane %v792_v61, 3  ;;  %v666_v24 = vadd.f32 %v650_v58, %v493_v15  ;;  %v819_v61 = vsel %vm805_vm2, %v814_v28, %v818_v21 }
 0x136   : > { %v835_v8 = vadd.f32 %v815_v60, %v662_v59  ;;  %v837_v9 = vadd.f32 %v819_v61, %v664_v55  ;;  %v806_v59 = vrot.slane %v1960_v26, 3  ;;  %v807_v55 = vrot.slane %v1964_v30, 3 }
 0x137   : > { %v823_v34 = vsel %vm805_vm2, %v818_v21, %v822_v10  ;;  %v639_v61 = vrot.slane %v1966_v32, 2  ;;  %v816_v30 = vrot.slane %v1976_v39, 3  ;;  %v812_v32 = vrot.slane %v1970_v35, 3 }
 0x138   : > { %v839_v44 = vadd.f32 %v823_v34, %v666_v24 }
 0x141   : > { %v1991_v6 = vpop.f32.mrf.mxu0 }
 0x142   : > { %v1993_v7 = vpop.f32.mrf.mxu1 }
 0x143   : > { %v941_v17 = vpop.f32.mrf.mxu0 }
 0x144   : > { %v959_v18 = vpop.f32.mrf.mxu1  ;;  %v982_v50 = vrot.slane %v941_v17, 4 }
 0x145   : > { %v2001_v25 = vpop.f32.mrf.mxu0  ;;  %v991_v51 = vrot.slane %v959_v18, 4 }
 0x146   : > { %v2003_v29 = vpop.f32.mrf.mxu1 }
 0x147   : > { %v947_v43 = vpop.f32.mrf.mxu0 }
 0x148   : > { %v965_v46 = vpop.f32.mrf.mxu1  ;;  %v983_v53 = vrot.slane %v947_v43, 4 }
 0x149   : > { %v995_v1 = vrot.slane %v965_v46, 4  ;;  %v2010_v37 = vpop.f32.mrf.mxu0 }
 0x14a   : > { %v984_v62 = vsel %vm978_vm3, %v982_v50, %v983_v53  ;;  %v634_v50 = vrot.slane %v1962_v27, 2  ;;  %v985_v39 = vrot.slane %v2010_v37, 4 }
 0x14b   : > { %v996_v48 = vsel %vm978_vm3, %v991_v51, %v995_v1  ;;  %v2016_v2 = vadd.f32 %v984_v62, %v833_v54  ;;  %v953_v47 = vpop.f32.mrf.mxu0  ;;  %v633_v54 = vrot.slane %v1958_v23, 2  ;;  %v820_v62 = vrot.slane %v1985_v52, 3 }
 0x14c   : > { %v2018_v57 = vadd.f32 %v996_v48, %v839_v44  ;;  %v987_v5 = vrot.slane %v953_v47, 4  ;;  %v643_v44 = vrot.slane %v1972_v36, 2  ;;  %v980_v23 = vrot.slane %v2001_v25, 4 }
 0x14d   : > { %v1013_v58 = vand.u32 2147483647, %v2016_v2  ;;  %v635_v60 = vsel %vm632_vm1, %v633_v54, %v634_v50  ;;  %v989_v48 = vrot.slane %v1993_v7, 4  ;;  %v993_v36 = vrot.slane %v2003_v29, 4 }
 0x14e   : > { %v1016_v10 = vand.u32 2147483647, %v2018_v57  ;;  %v988_v14 = vsel %vm978_vm3, %v983_v53, %v987_v5  ;;  %v992_v15 = vsel %vm978_vm3, %v987_v5, %v991_v51  ;;  %v647_v53 = vrot.slane %v1979_v42, 2 }
 0x14f   : > { %v1017_v63 = vsub.f32 0.0, %v1013_v58  ;;  %v2024_v17 = vadd.f32 %v988_v14, %v835_v8  ;;  %v2026_v18 = vadd.f32 %v992_v15, %v837_v9  ;;  %v808_v42 = vsel %vm805_vm2, %v806_v59, %v807_v55 }
 0x150   : > { %v1020_v16 = vsub.f32 0.0, %v1016_v10  ;;  %v648_v27 = vsel %vm632_vm1, %v643_v44, %v647_v53  ;;  %v659_v26 = vadd.f32 %v635_v60, %v1941_v56  ;;  %v640_v47 = vsel %vm632_vm1, %v634_v50, %v639_v61 }
 0x151   : > { %v1021_v3 = vmul.f32 1.442695, %v1017_v63  ;;  %v1014_v21 = vand.u32 2147483647, %v2024_v17  ;;  %v1015_v22 = vand.u32 2147483647, %v2026_v18  ;;  %v665_v5 = vadd.f32 %v648_v27, %v1956_v20 }
 0x152   : > { %v1027_v19 = vmul.f32 1.442695, %v1020_v16  ;;  %v979_v52 = vrot.slane %v1991_v6, 4  ;;  %v644_v8 = vsel %vm632_vm1, %v639_v61, %v643_v44  ;;  %v821_v25 = vsel %vm805_vm2, %v816_v30, %v820_v62 }
 0x153   : > { %1316 = vpow2.f32 %v1021_v3  ;;  %v1018_v24 = vsub.f32 0.0, %v1014_v21  ;;  %v1019_v12 = vsub.f32 0.0, %v1015_v22  ;;  %v832_v7 = vadd.f32 %v808_v42, %v659_v26 }
 0x154   : > { %1318 = vpow2.f32 %v1027_v19  ;;  %v981_v56 = vsel %vm978_vm3, %v979_v52, %v980_v23  ;;  %v661_v29 = vadd.f32 %v640_v47, %v1948_v4  ;;  %v994_v58 = vsel %vm978_vm3, %v989_v48, %v993_v36 }
 0x155   : > { %v1023_v28 = vmul.f32 1.442695, %v1018_v24  ;;  %v1025_v33 = vmul.f32 1.442695, %v1019_v12  ;;  %v813_v20 = vsel %vm805_vm2, %v807_v55, %v812_v32  ;;  %v663_v6 = vadd.f32 %v644_v8, %v1953_v13 }
 0x156   : > { %v838_v10 = vadd.f32 %v821_v25, %v665_v5  ;;  %v817_v15 = vsel %vm805_vm2, %v812_v32, %v816_v30  ;;  %v1005_v63 = vadd.f32 %v981_v56, %v832_v7  ;;  %vm1037_vm4 = vcmp.ge.f32.partialorder %v2016_v2, 0.0 }
 0x157   : > { %1320 = vpow2.f32 %v1023_v28  ;;  %vm1040_vm5 = vcmp.ge.f32.partialorder %v2018_v57, 0.0  ;;  %v986_v4 = vsel %vm978_vm3, %v980_v23, %v985_v39  ;;  %v834_v21 = vadd.f32 %v813_v20, %v661_v29 }
 0x158   : > { %1322 = vpow2.f32 %v1025_v33  ;;  %v1011_v16 = vadd.f32 %v994_v58, %v838_v10  ;;  %v990_v13 = vsel %vm978_vm3, %v985_v39, %v989_v48  ;;  %v836_v28 = vadd.f32 %v817_v15, %v663_v6 }
 0x159   : > { %v1007_v2 = vadd.f32 %v986_v4, %v834_v21  ;;  %vm1038_vm6 = vcmp.ge.f32.partialorder %v2024_v17, 0.0  ;;  %vm1039_vm7 = vcmp.ge.f32.partialorder %v2026_v18, 0.0 }
 0x160   : > { %v1317_v34 = vpop.eup %1316 }
 0x161   : > { %v1319_v38 = vpop.eup %1318  ;;  %v1029_v41 = vadd.f32 1.0, %v1317_v34 }
 0x162   : > { %v1032_v45 = vadd.f32 1.0, %v1319_v38 }
 0x163   : > { %1324 = vrcp.f32 %v1029_v41 }
 0x164   : > { %v1321_v43 = vpop.eup %1320  ;;  %1326 = vrcp.f32 %v1032_v45  ;;  %v1009_v45 = vadd.f32 %v990_v13, %v836_v28 }
 0x165   : > { %v1323_v46 = vpop.eup %1322  ;;  %v1030_v51 = vadd.f32 1.0, %v1321_v43 }
 0x166   : > { %v1031_v1 = vadd.f32 1.0, %v1323_v46 }
 0x167   : > { %1328 = vrcp.f32 %v1030_v51 }
 0x168   : > { %1330 = vrcp.f32 %v1031_v1 }
 0x170   : > { %v1325_v9 = vpop.eup %1324 }
 0x171   : > { %v1327_v35 = vpop.eup %1326  ;;  %v1041_v14 = vmul.f32 %v1325_v9, %v1317_v34 }
 0x172   : > { %v1044_v37 = vmul.f32 %v1327_v35, %v1319_v38 }
 0x173   : > { %v1045_v3 = vsel %vm1037_vm4, %v1325_v9, %v1041_v14 }
 0x174   : > { %v1329_v19 = vpop.eup %1328  ;;  %v1049_v22 = vmul.f32 %v1045_v3, %v1005_v63  ;;  %v1048_v24 = vsel %vm1040_vm5, %v1327_v35, %v1044_v37 }
 0x175   : > { %v1331_v12 = vpop.eup %1330  ;;  %v1052_v33 = vmul.f32 %v1048_v24, %v1011_v16  ;;  %v1042_v34 = vmul.f32 %v1329_v19, %v1321_v43 }
 0x176   : > { %v1058_v41 = vrot.slane %v1049_v22, 6  ;;  %v1043_v38 = vmul.f32 %v1331_v12, %v1323_v46 }
 0x177   : > { %v1063_v57 = vrot.slane %v1052_v33, 6  ;;  %v1046_v50 = vsel %vm1038_vm6, %v1329_v19, %v1042_v34 }
 0x178   : > { %v1070_v51 = vadd.f32 %v1058_v41, %v1580_v0  ;;  %v1047_v53 = vsel %vm1039_vm7, %v1331_v12, %v1043_v38  ;;  %v1050_v1 = vmul.f32 %v1046_v50, %v1007_v2 }
 0x179   : > { %v1074_v43 = vadd.f32 %v1063_v57, %v1738_v49  ;;  %v1051_v54 = vmul.f32 %v1047_v53, %v1009_v45 }
 0x17a   : > { %1075 = vst [vmem:[%s170_s22 - $0x2] sm:$0xfc] %v1070_v51  ;;  %v1059_v17 = vrot.slane %v1050_v1, 6 }
 0x17b   : > { %1079 = vst [vmem:[%s170_s22 + $0x1e] sm:$0x3] %v1074_v43  ;;  %v1061_v46 = vrot.slane %v1051_v54, 6 }
 0x17c   : > { %v1060_v59 = vsel %vm1057_vm8, %v1058_v41, %v1059_v17 }
 0x17d   : > { %v1062_v55 = vsel %vm1057_vm8, %v1059_v17, %v1061_v46  ;;  %v1064_v44 = vsel %vm1057_vm8, %v1061_v46, %v1063_v57  ;;  %v1071_v60 = vadd.f32 %v1060_v59, %v1614_v11 }
 0x17e   : > { %v1072_v18 = vadd.f32 %v1062_v55, %v1676_v31  ;;  %v1073_v61 = vadd.f32 %v1064_v44, %v1707_v40 }
 0x17f   : > { %1076 = vst [vmem:[%s170_s22 + $0x6] sm:$0xff] %v1071_v60 }
 0x180   : > { %1077 = vst [vmem:[%s170_s22 + $0xe] sm:$0xff] %v1072_v18  ;;  %1078 = vst [vmem:[%s170_s22 + $0x16] sm:$0xff] %v1073_v61 }
 0x181 PF: > { %s13_s12 = sadd.s32 1, %s1338_s12  }
 0x182   : > { %p10_p4 = scmp.ge.s32.totalorder %s13_s12, 4  }
 0x184   :  { %12 = sbr.rel (!%p10_p4) target bundleno = 1 (0x1), region = 66 }

// kernel: mel_style_encoder_forward.7
= control target key start
LH: loop header
LB: loop body
LE: loop exit
PB: predicated region body
PF: predicated region fallthrough
CT: control target
= control target key end

     0   :  { %8 = vsyncpa [#allocation3], 0  ;;  %s1644_s0 = inlined_call_operand.vmem [shape: f32[2,36,128], index: 0, kind: input, shape index: {}]   ;;  %s1645_s1 = inlined_call_operand.hbm [shape: f32[5,128,256], index: 1, kind: input, shape index: {}]   ;;  %s1646_s2 = inlined_call_operand.hbm [shape: f32[1,256], index: 2, kind: input, shape index: {}]   ;;  %s1647_s3 = inlined_call_operand.vmem [shape: f32[2,32,128], index: 3, kind: output, shape index: {}]  }
   0x1   :  { %9 = vsyncpa [#allocation5], 0  ;;  %s1374_s12 = smov 0  }
   0x2 LB: > { %s1380_s13 = sadd.s32 4294967295, %s1347_s12   ;;  %p1187_p0 = scmp.ge.s32.totalorder %s1347_s12, 1  ;;  %s1347_s12 = sphi %s1374_s12, %s15_s12  }
   0x3   : > { %p114_p1 = scmp.lt.s32.totalorder %s1347_s12, 3  ;;  %s1349_s14 = smov [#allocation2]  }
   0x4   : > { %s126_s15 = sshll.u32 %s1349_s14, 4  ;;  %p1248_p3 = scmp.eq.s32.totalorder %s1380_s13, 0  ;;  %s127_s15 = int_to_ptr.vmem [resolvable:$true] %s126_s15 }
   0x5   : > { %p1384_p2 = pnand %p1187_p0, %p114_p1  ;;  %s1350_s17 = smov [#allocation4]  }
   0x6   : > { %s140_s18 = sshll.u32 %s1350_s17, 4  ;;  %s1292_s20 = scalar_lea.vmem %s127_s15, 20480  ;;  %s141_s18 = int_to_ptr.vmem [resolvable:$true] %s140_s18 }
   0x7   : > { %p1241_p4 = pneg %p1384_p2  ;;  %p1293_p7 = scmp.ne.s32.totalorder %s127_s15, %s1292_s20 }
   0x8   : > { %p1300_p10 = scmp.lt.s32.totalorder %s127_s15, %s127_s15  ;;  %p1301_p11 = scmp.lt.s32.totalorder %s1292_s20, %s1292_s20 }
   0x9   : > { %p1393_p5 = pnand %p1248_p3, %p1241_p4 }
   0xa   : > { %p1302_p12 = por %p1301_p11, %p1300_p10 }
   0xb   : > { %p1283_p6 = pneg %p1393_p5 }
   0xd   : > { %p1295_p8 = pnand %p1293_p7, %p1283_p6 }
   0xf   : > { %p1296_p9 = pneg %p1295_p8 }
  0x11   : > { %p1303_p13 = pnand %p1302_p12, %p1296_p9 }
  0x13   : > { %1306 = shalt.err (!%p1303_p13)
}
  0x14   : > { %s1351_s21 = smov 256   ;;  %s1352_s22 = smov 16  }
  0x15   : > { %1244 = dma.hbm_to_vmem [thread:$0]  (!%p1393_p5), %s1645_s1, 20480, %s127_s15, [#allocation3], %s1351_s21, %s1351_s21, %s1352_s22  }
  0x16   : > { %s1318_s25 = scalar_lea.vmem %s141_s18, 32  ;;  %p1326_p7 = scmp.lt.s32.totalorder %s141_s18, %s141_s18 }
  0x17   : > { %p1319_p0 = scmp.ne.s32.totalorder %s141_s18, %s1318_s25  ;;  %p1327_p8 = scmp.lt.s32.totalorder %s1318_s25, %s1318_s25 }
  0x19   : > { %p1321_p1 = pnand %p1319_p0, %p1283_p6  ;;  %p1328_p10 = por %p1327_p8, %p1326_p7 }
  0x1b   : > { %p1322_p4 = pneg %p1321_p1 }
  0x1d   : > { %p1329_p9 = pnand %p1328_p10, %p1322_p4 }
  0x1f   : > { %1332 = shalt.err (!%p1329_p9)
}
  0x20   : > { %1247 = dma.hbm_to_vmem [thread:$0]  (!%p1393_p5), %s1646_s2, 32, %s141_s18, [#allocation5]  }
  0x21   : > { %161 = sbr.rel (%p1384_p2) target bundleno = 415 (0x19f), region = 32 }
  0x26   : > { %1338 = dma.done.wait (%p1248_p3), [#allocation3], 20480  }
  0x27   : > { %1340 = vsyncadd (%p1248_p3), [#allocation3], 4294946816 }
  0x28   : > { %1342 = dma.done.wait (%p1248_p3), [#allocation5], 32  }
  0x29   : > { %1344 = vsyncadd (%p1248_p3), [#allocation5], 4294967264  ;;  %v1353_v0 = vmov 0.0   ;;  %v236_v1 = vld [vmem:[#allocation2 + $0xf8] sm:$0xff]  ;;  %v235_v3 = vld [vmem:[#allocation2 + $0xf0] sm:$0xff]  ;;  %p189_p2 = scmp.lt.s32.totalorder %s1380_s13, 1 }
  0x2a   : > { %301 = vmatprep.mubr.f32.mxu0 %v1353_v0  ;;  %446 = vmatprep.mubr.f32.mxu1 %v1353_v0  ;;  %v381_v2 = vld [vmem:[#allocation2 + $0x1f8] sm:$0xff]  ;;  %v380_v4 = vld [vmem:[#allocation2 + $0x1f0] sm:$0xff]  ;;  %v234_v5 = vld [vmem:[#allocation2 + $0xe8] sm:$0xff]  ;;  %vm487_vm0 = vcmask 1046528   ;;  %vm660_vm1 = vcmask 1045504   ;;  %vm833_vm2 = vcmask 1044480  }
  0x2b   : > { %237 = vmatprep.subr.mxu0 %v236_v1  ;;  %382 = vmatprep.subr.mxu1 %v381_v2  ;;  %v379_v6 = vld [vmem:[#allocation2 + $0x1e8] sm:$0xff]  ;;  %v233_v7 = vld [vmem:[#allocation2 + $0xe0] sm:$0xff]  ;;  %v232_v9 = vld [vmem:[#allocation2 + $0xd8] sm:$0xff]  ;;  %s1651_s13 = smov (!%p189_p2, %s1380_s13), 1  ;;  %vm1006_vm3 = vcmask 1043456   ;;  %vm1085_vm8 = vcmask 1041408  }
  0x2c   : > { %238 = vmatpush1.msra.mxu0 %v235_v3  ;;  %383 = vmatpush1.msra.mxu1 %v380_v4  ;;  %v378_v8 = vld [vmem:[#allocation2 + $0x1e0] sm:$0xff]  ;;  %v377_v10 = vld [vmem:[#allocation2 + $0x1d8] sm:$0xff]  ;;  %v231_v11 = vld [vmem:[#allocation2 + $0xd0] sm:$0xff]  ;;  %s1232_s28 = smul.u32 40, %s1651_s13  ;;  %s1199_s5 = sshll.u32 %s1651_s13, 5 }
  0x2d   : > { %239 = vmatprep.subr.mxu0 %v234_v5  ;;  %384 = vmatprep.subr.mxu1 %v379_v6  ;;  %v376_v12 = vld [vmem:[#allocation2 + $0x1d0] sm:$0xff]  ;;  %v230_v13 = vld [vmem:[#allocation2 + $0xc8] sm:$0xff]  ;;  %v229_v15 = vld [vmem:[#allocation2 + $0xc0] sm:$0xff]  ;;  %s198_s8 = scalar_lea.vmem %s1647_s3, %s1199_s5 }
  0x2e   : > { %240 = vmatpush1.msra.mxu0 %v233_v7  ;;  %385 = vmatpush1.msra.mxu1 %v378_v8  ;;  %v375_v14 = vld [vmem:[#allocation2 + $0x1c8] sm:$0xff]  ;;  %v374_v16 = vld [vmem:[#allocation2 + $0x1c0] sm:$0xff]  ;;  %v228_v17 = vld [vmem:[#allocation2 + $0xb8] sm:$0xff]  ;;  %s1437_s4 = scalar_lea.vmem %s1644_s0, %s1232_s28 }
  0x2f   : > { %241 = vmatprep.subr.mxu0 %v232_v9  ;;  %386 = vmatprep.subr.mxu1 %v377_v10  ;;  %v373_v18 = vld [vmem:[#allocation2 + $0x1b8] sm:$0xff]  ;;  %v227_v19 = vld [vmem:[#allocation2 + $0xb0] sm:$0xff]  ;;  %v226_v21 = vld [vmem:[#allocation2 + $0xa8] sm:$0xff] }
  0x30   : > { %242 = vmatpush1.msra.mxu0 %v231_v11  ;;  %387 = vmatpush1.msra.mxu1 %v376_v12  ;;  %v372_v20 = vld [vmem:[#allocation2 + $0x1b0] sm:$0xff]  ;;  %v371_v22 = vld [vmem:[#allocation2 + $0x1a8] sm:$0xff]  ;;  %v225_v23 = vld [vmem:[#allocation2 + $0xa0] sm:$0xff] }
  0x31   : > { %243 = vmatprep.subr.mxu0 %v230_v13  ;;  %388 = vmatprep.subr.mxu1 %v375_v14  ;;  %v370_v24 = vld [vmem:[#allocation2 + $0x1a0] sm:$0xff]  ;;  %v224_v25 = vld [vmem:[#allocation2 + $0x98] sm:$0xff]  ;;  %v223_v27 = vld [vmem:[#allocation2 + $0x90] sm:$0xff] }
  0x32   : > { %244 = vmatpush1.msra.mxu0 %v229_v15  ;;  %389 = vmatpush1.msra.mxu1 %v374_v16  ;;  %v369_v26 = vld [vmem:[#allocation2 + $0x198] sm:$0xff]  ;;  %v368_v28 = vld [vmem:[#allocation2 + $0x190] sm:$0xff]  ;;  %v222_v29 = vld [vmem:[#allocation2 + $0x88] sm:$0xff] }
  0x33   : > { %245 = vmatprep.subr.mxu0 %v228_v17  ;;  %390 = vmatprep.subr.mxu1 %v373_v18  ;;  %v367_v30 = vld [vmem:[#allocation2 + $0x188] sm:$0xff]  ;;  %v221_v31 = vld [vmem:[#allocation2 + $0x80] sm:$0xff]  ;;  %v220_v33 = vld [vmem:[#allocation2 + $0x78] sm:$0xff] }
  0x34   : > { %246 = vmatpush1.msra.mxu0 %v227_v19  ;;  %391 = vmatpush1.msra.mxu1 %v372_v20  ;;  %v366_v32 = vld [vmem:[#allocation2 + $0x180] sm:$0xff]  ;;  %v365_v34 = vld [vmem:[#allocation2 + $0x178] sm:$0xff]  ;;  %v219_v35 = vld [vmem:[#allocation2 + $0x70] sm:$0xff] }
  0x35   : > { %247 = vmatprep.subr.mxu0 %v226_v21  ;;  %392 = vmatprep.subr.mxu1 %v371_v22  ;;  %v364_v36 = vld [vmem:[#allocation2 + $0x170] sm:$0xff]  ;;  %v218_v37 = vld [vmem:[#allocation2 + $0x68] sm:$0xff]  ;;  %v217_v39 = vld [vmem:[#allocation2 + $0x60] sm:$0xff] }
  0x36   : > { %248 = vmatpush1.msra.mxu0 %v225_v23  ;;  %393 = vmatpush1.msra.mxu1 %v370_v24  ;;  %v363_v38 = vld [vmem:[#allocation2 + $0x168] sm:$0xff]  ;;  %v362_v40 = vld [vmem:[#allocation2 + $0x160] sm:$0xff]  ;;  %v216_v41 = vld [vmem:[#allocation2 + $0x58] sm:$0xff] }
  0x37   : > { %249 = vmatprep.subr.mxu0 %v224_v25  ;;  %394 = vmatprep.subr.mxu1 %v369_v26  ;;  %v361_v42 = vld [vmem:[#allocation2 + $0x158] sm:$0xff]  ;;  %v215_v43 = vld [vmem:[#allocation2 + $0x50] sm:$0xff]  ;;  %v214_v45 = vld [vmem:[#allocation2 + $0x48] sm:$0xff] }
  0x38   : > { %250 = vmatpush1.msra.mxu0 %v223_v27  ;;  %395 = vmatpush1.msra.mxu1 %v368_v28  ;;  %v360_v44 = vld [vmem:[#allocation2 + $0x150] sm:$0xff]  ;;  %v359_v46 = vld [vmem:[#allocation2 + $0x148] sm:$0xff]  ;;  %v213_v47 = vld [vmem:[#allocation2 + $0x40] sm:$0xff] }
  0x39   : > { %251 = vmatprep.subr.mxu0 %v222_v29  ;;  %396 = vmatprep.subr.mxu1 %v367_v30  ;;  %v358_v48 = vld [vmem:[#allocation2 + $0x140] sm:$0xff]  ;;  %v212_v49 = vld [vmem:[#allocation2 + $0x38] sm:$0xff]  ;;  %v211_v51 = vld [vmem:[#allocation2 + $0x30] sm:$0xff] }
  0x3a   : > { %252 = vmatpush1.msra.mxu0 %v221_v31  ;;  %397 = vmatpush1.msra.mxu1 %v366_v32  ;;  %v357_v50 = vld [vmem:[#allocation2 + $0x138] sm:$0xff]  ;;  %v356_v52 = vld [vmem:[#allocation2 + $0x130] sm:$0xff]  ;;  %v210_v53 = vld [vmem:[#allocation2 + $0x28] sm:$0xff] }
  0x3b   : > { %253 = vmatprep.subr.mxu0 %v220_v33  ;;  %398 = vmatprep.subr.mxu1 %v365_v34  ;;  %v355_v54 = vld [vmem:[#allocation2 + $0x128] sm:$0xff]  ;;  %v209_v55 = vld [vmem:[#allocation2 + $0x20] sm:$0xff]  ;;  %v208_v57 = vld [vmem:[#allocation2 + $0x18] sm:$0xff] }
  0x3c   : > { %254 = vmatpush1.msra.mxu0 %v219_v35  ;;  %399 = vmatpush1.msra.mxu1 %v364_v36  ;;  %v354_v56 = vld [vmem:[#allocation2 + $0x120] sm:$0xff]  ;;  %v353_v58 = vld [vmem:[#allocation2 + $0x118] sm:$0xff]  ;;  %v207_v59 = vld [vmem:[#allocation2 + $0x10] sm:$0xff] }
  0x3d   : > { %255 = vmatprep.subr.mxu0 %v218_v37  ;;  %400 = vmatprep.subr.mxu1 %v363_v38  ;;  %v352_v60 = vld [vmem:[#allocation2 + $0x110] sm:$0xff]  ;;  %v206_v61 = vld [vmem:[#allocation2 + $0x8] sm:$0xff]  ;;  %v205_v63 = vld [vmem:[#allocation2] sm:$0xff] }
  0x3e   : > { %256 = vmatpush1.msra.mxu0 %v217_v39  ;;  %401 = vmatpush1.msra.mxu1 %v362_v40  ;;  %v351_v62 = vld [vmem:[#allocation2 + $0x108] sm:$0xff]  ;;  %v350_v1 = vld [vmem:[#allocation2 + $0x100] sm:$0xff]  ;;  %v554_v3 = vld [vmem:[#allocation2 + $0x2f8] sm:$0xff] }
  0x3f   : > { %257 = vmatprep.subr.mxu0 %v216_v41  ;;  %402 = vmatprep.subr.mxu1 %v361_v42  ;;  %v1440_v2 = vld [vmem:[%s1437_s4] sm:$0xff]  ;;  %v727_v4 = vld [vmem:[#allocation2 + $0x3f8] sm:$0xff]  ;;  %v553_v5 = vld [vmem:[#allocation2 + $0x2f0] sm:$0xff] }
  0x40   : > { %258 = vmatpush1.msra.mxu0 %v215_v43  ;;  %403 = vmatpush1.msra.mxu1 %v360_v44  ;;  %v726_v6 = vld [vmem:[#allocation2 + $0x3f0] sm:$0xff]  ;;  %v552_v7 = vld [vmem:[#allocation2 + $0x2e8] sm:$0xff]  ;;  %v551_v9 = vld [vmem:[#allocation2 + $0x2e0] sm:$0xff] }
  0x41   : > { %259 = vmatprep.subr.mxu0 %v214_v45  ;;  %404 = vmatprep.subr.mxu1 %v359_v46  ;;  %v725_v8 = vld [vmem:[#allocation2 + $0x3e8] sm:$0xff]  ;;  %v724_v10 = vld [vmem:[#allocation2 + $0x3e0] sm:$0xff]  ;;  %v550_v11 = vld [vmem:[#allocation2 + $0x2d8] sm:$0xff] }
  0x42   : > { %260 = vmatpush1.msra.mxu0 %v213_v47  ;;  %405 = vmatpush1.msra.mxu1 %v358_v48  ;;  %v1445_v12 = vld [vmem:[%s1437_s4 + $0x8] sm:$0xff]  ;;  %v723_v13 = vld [vmem:[#allocation2 + $0x3d8] sm:$0xff]  ;;  %v549_v14 = vld [vmem:[#allocation2 + $0x2d0] sm:$0xff] }
  0x43   : > { %261 = vmatprep.subr.mxu0 %v212_v49  ;;  %406 = vmatprep.subr.mxu1 %v357_v50  ;;  %v722_v15 = vld [vmem:[#allocation2 + $0x3d0] sm:$0xff]  ;;  %v548_v16 = vld [vmem:[#allocation2 + $0x2c8] sm:$0xff]  ;;  %v547_v18 = vld [vmem:[#allocation2 + $0x2c0] sm:$0xff] }
  0x44   : > { %262 = vmatpush1.msra.mxu0 %v211_v51  ;;  %407 = vmatpush1.msra.mxu1 %v356_v52  ;;  %v721_v17 = vld [vmem:[#allocation2 + $0x3c8] sm:$0xff]  ;;  %v720_v19 = vld [vmem:[#allocation2 + $0x3c0] sm:$0xff]  ;;  %v546_v20 = vld [vmem:[#allocation2 + $0x2b8] sm:$0xff] }
  0x45   : > { %263 = vmatprep.subr.mxu0 %v210_v53  ;;  %408 = vmatprep.subr.mxu1 %v355_v54  ;;  %v719_v21 = vld [vmem:[#allocation2 + $0x3b8] sm:$0xff]  ;;  %v545_v22 = vld [vmem:[#allocation2 + $0x2b0] sm:$0xff]  ;;  %v544_v24 = vld [vmem:[#allocation2 + $0x2a8] sm:$0xff] }
  0x46   : > { %264 = vmatpush1.msra.mxu0 %v209_v55  ;;  %409 = vmatpush1.msra.mxu1 %v354_v56  ;;  %v718_v23 = vld [vmem:[#allocation2 + $0x3b0] sm:$0xff]  ;;  %v717_v25 = vld [vmem:[#allocation2 + $0x3a8] sm:$0xff]  ;;  %v543_v26 = vld [vmem:[#allocation2 + $0x2a0] sm:$0xff] }
  0x47   : > { %265 = vmatprep.subr.mxu0 %v208_v57  ;;  %410 = vmatprep.subr.mxu1 %v353_v58  ;;  %v716_v27 = vld [vmem:[#allocation2 + $0x3a0] sm:$0xff]  ;;  %v542_v28 = vld [vmem:[#allocation2 + $0x298] sm:$0xff]  ;;  %v541_v30 = vld [vmem:[#allocation2 + $0x290] sm:$0xff] }
  0x48   : > { %266 = vmatpush1.msra.mxu0 %v207_v59  ;;  %411 = vmatpush1.msra.mxu1 %v352_v60  ;;  %v715_v29 = vld [vmem:[#allocation2 + $0x398] sm:$0xff]  ;;  %v714_v31 = vld [vmem:[#allocation2 + $0x390] sm:$0xff]  ;;  %v540_v33 = vld [vmem:[#allocation2 + $0x288] sm:$0xff] }
  0x49   : > { %267 = vmatprep.subr.mxu0 %v206_v61  ;;  %412 = vmatprep.subr.mxu1 %v351_v62  ;;  %v1450_v32 = vld [vmem:[%s1437_s4 + $0x10] sm:$0xff]  ;;  %v713_v34 = vld [vmem:[#allocation2 + $0x388] sm:$0xff]  ;;  %v539_v35 = vld [vmem:[#allocation2 + $0x280] sm:$0xff] }
  0x4a   : > { %268 = vmatpush1.msra.mxu0 %v205_v63  ;;  %413 = vmatpush1.msra.mxu1 %v350_v1  ;;  %v712_v36 = vld [vmem:[#allocation2 + $0x380] sm:$0xff]  ;;  %v538_v37 = vld [vmem:[#allocation2 + $0x278] sm:$0xff]  ;;  %v537_v39 = vld [vmem:[#allocation2 + $0x270] sm:$0xff] }
  0x4b   : > { %302 = vmatmul.mubr.f32.vlgmr.msra.gmra.mxu0 %v1440_v2  ;;  %447 = vmatmul.mubr.f32.vlgmr.msra.gmra.mxu1 %v1440_v2  ;;  %v711_v38 = vld [vmem:[#allocation2 + $0x378] sm:$0xff]  ;;  %v710_v40 = vld [vmem:[#allocation2 + $0x370] sm:$0xff]  ;;  %v536_v42 = vld [vmem:[#allocation2 + $0x268] sm:$0xff] }
  0x4c   : > { %555 = vmatprep.subr.mxu0 %v554_v3  ;;  %728 = vmatprep.subr.mxu1 %v727_v4  ;;  %v1457_v41 = vld [vmem:[%s1437_s4 + $0x18] sm:$0xff]  ;;  %v709_v43 = vld [vmem:[#allocation2 + $0x368] sm:$0xff]  ;;  %v535_v44 = vld [vmem:[#allocation2 + $0x260] sm:$0xff] }
  0x4d   : > { %556 = vmatpush1.msra.mxu0 %v553_v5  ;;  %729 = vmatpush1.msra.mxu1 %v726_v6  ;;  %v708_v45 = vld [vmem:[#allocation2 + $0x360] sm:$0xff]  ;;  %v534_v46 = vld [vmem:[#allocation2 + $0x258] sm:$0xff]  ;;  %v533_v48 = vld [vmem:[#allocation2 + $0x250] sm:$0xff] }
  0x4e   : > { %557 = vmatprep.subr.mxu0 %v552_v7  ;;  %730 = vmatprep.subr.mxu1 %v725_v8  ;;  %v707_v47 = vld [vmem:[#allocation2 + $0x358] sm:$0xff]  ;;  %v706_v49 = vld [vmem:[#allocation2 + $0x350] sm:$0xff]  ;;  %v1464_v50 = vld [vmem:[%s1437_s4 + $0x20] sm:$0xf] }
  0x4f   : > { %452 = vmatprep.mubr.f32.mxu1 %v1353_v0  ;;  %558 = vmatpush1.msra.mxu0 %v551_v9  ;;  %v532_v51 = vld [vmem:[#allocation2 + $0x248] sm:$0xff]  ;;  %v531_v53 = vld [vmem:[#allocation2 + $0x240] sm:$0xff]  ;;  %v530_v55 = vld [vmem:[#allocation2 + $0x238] sm:$0xff] }
  0x50   : > { %731 = vmatpush1.msra.mxu1 %v724_v10  ;;  %559 = vmatprep.subr.mxu0 %v550_v11  ;;  %v705_v52 = vld [vmem:[#allocation2 + $0x348] sm:$0xff]  ;;  %v704_v54 = vld [vmem:[#allocation2 + $0x340] sm:$0xff]  ;;  %v703_v56 = vld [vmem:[#allocation2 + $0x338] sm:$0xff] }
  0x51   : > { %453 = vmatmul.mubr.f32.gmra.mxu1 %v1445_v12  ;;  %732 = vmatprep.subr.mxu1 %v723_v13  ;;  %v529_v57 = vld [vmem:[#allocation2 + $0x230] sm:$0xff]  ;;  %v528_v59 = vld [vmem:[#allocation2 + $0x228] sm:$0xff]  ;;  %v527_v61 = vld [vmem:[#allocation2 + $0x220] sm:$0xff] }
  0x52   : > { %560 = vmatpush1.msra.mxu0 %v549_v14  ;;  %733 = vmatpush1.msra.mxu1 %v722_v15  ;;  %v702_v58 = vld [vmem:[#allocation2 + $0x330] sm:$0xff]  ;;  %v701_v60 = vld [vmem:[#allocation2 + $0x328] sm:$0xff]  ;;  %v700_v62 = vld [vmem:[#allocation2 + $0x320] sm:$0xff] }
  0x53   : > { %561 = vmatprep.subr.mxu0 %v548_v16  ;;  %734 = vmatprep.subr.mxu1 %v721_v17  ;;  %v526_v63 = vld [vmem:[#allocation2 + $0x218] sm:$0xff]  ;;  %v525_v3 = vld [vmem:[#allocation2 + $0x210] sm:$0xff]  ;;  %v524_v5 = vld [vmem:[#allocation2 + $0x208] sm:$0xff] }
  0x54   : > { %562 = vmatpush1.msra.mxu0 %v547_v18  ;;  %735 = vmatpush1.msra.mxu1 %v720_v19  ;;  %v699_v1 = vld [vmem:[#allocation2 + $0x318] sm:$0xff]  ;;  %v698_v4 = vld [vmem:[#allocation2 + $0x310] sm:$0xff]  ;;  %v697_v6 = vld [vmem:[#allocation2 + $0x308] sm:$0xff] }
  0x55   : > { %563 = vmatprep.subr.mxu0 %v546_v20  ;;  %736 = vmatprep.subr.mxu1 %v719_v21  ;;  %v523_v7 = vld [vmem:[#allocation2 + $0x200] sm:$0xff]  ;;  %v900_v9 = vld [vmem:[#allocation2 + $0x4f8] sm:$0xff]  ;;  %v899_v10 = vld [vmem:[#allocation2 + $0x4f0] sm:$0xff] }
  0x56   : > { %564 = vmatpush1.msra.mxu0 %v545_v22  ;;  %737 = vmatpush1.msra.mxu1 %v718_v23  ;;  %v696_v8 = vld [vmem:[#allocation2 + $0x300] sm:$0xff]  ;;  %v898_v11 = vld [vmem:[#allocation2 + $0x4e8] sm:$0xff]  ;;  %v896_v14 = vld [vmem:[#allocation2 + $0x4d8] sm:$0xff] }
  0x57   : > { %565 = vmatprep.subr.mxu0 %v544_v24  ;;  %738 = vmatprep.subr.mxu1 %v717_v25  ;;  %v897_v13 = vld [vmem:[#allocation2 + $0x4e0] sm:$0xff]  ;;  %v895_v15 = vld [vmem:[#allocation2 + $0x4d0] sm:$0xff]  ;;  %v894_v16 = vld [vmem:[#allocation2 + $0x4c8] sm:$0xff] }
  0x58   : > { %566 = vmatpush1.msra.mxu0 %v543_v26  ;;  %739 = vmatpush1.msra.mxu1 %v716_v27  ;;  %v893_v17 = vld [vmem:[#allocation2 + $0x4c0] sm:$0xff]  ;;  %v892_v18 = vld [vmem:[#allocation2 + $0x4b8] sm:$0xff]  ;;  %v891_v19 = vld [vmem:[#allocation2 + $0x4b0] sm:$0xff] }
  0x59   : > { %567 = vmatprep.subr.mxu0 %v542_v28  ;;  %740 = vmatprep.subr.mxu1 %v715_v29  ;;  %v890_v20 = vld [vmem:[#allocation2 + $0x4a8] sm:$0xff]  ;;  %v889_v21 = vld [vmem:[#allocation2 + $0x4a0] sm:$0xff]  ;;  %v888_v22 = vld [vmem:[#allocation2 + $0x498] sm:$0xff] }
  0x5a   : > { %458 = vmatprep.mubr.f32.mxu1 %v1353_v0  ;;  %568 = vmatpush1.msra.mxu0 %v541_v30  ;;  %v887_v23 = vld [vmem:[#allocation2 + $0x490] sm:$0xff]  ;;  %v886_v24 = vld [vmem:[#allocation2 + $0x488] sm:$0xff]  ;;  %v885_v25 = vld [vmem:[#allocation2 + $0x480] sm:$0xff] }
  0x5b   : > { %741 = vmatpush1.msra.mxu1 %v714_v31  ;;  %307 = vmatprep.mubr.f32.mxu0 %v1353_v0  ;;  %v884_v26 = vld [vmem:[#allocation2 + $0x478] sm:$0xff]  ;;  %v883_v27 = vld [vmem:[#allocation2 + $0x470] sm:$0xff]  ;;  %v882_v28 = vld [vmem:[#allocation2 + $0x468] sm:$0xff] }
  0x5c   : > { %459 = vmatmul.mubr.f32.gmra.mxu1 %v1450_v32  ;;  %569 = vmatprep.subr.mxu0 %v540_v33  ;;  %v881_v29 = vld [vmem:[#allocation2 + $0x460] sm:$0xff]  ;;  %v880_v30 = vld [vmem:[#allocation2 + $0x458] sm:$0xff]  ;;  %v879_v31 = vld [vmem:[#allocation2 + $0x450] sm:$0xff] }
  0x5d   : > { %742 = vmatprep.subr.mxu1 %v713_v34  ;;  %308 = vmatmul.mubr.f32.gmra.mxu0 %v1445_v12  ;;  %v878_v33 = vld [vmem:[#allocation2 + $0x448] sm:$0xff]  ;;  %v877_v34 = vld [vmem:[#allocation2 + $0x440] sm:$0xff] }
  0x5e   : > { %570 = vmatpush1.msra.mxu0 %v539_v35  ;;  %743 = vmatpush1.msra.mxu1 %v712_v36  ;;  %v876_v35 = vld [vmem:[#allocation2 + $0x438] sm:$0xff]  ;;  %v875_v36 = vld [vmem:[#allocation2 + $0x430] sm:$0xff] }
  0x5f   : > { %571 = vmatprep.subr.mxu0 %v538_v37  ;;  %744 = vmatprep.subr.mxu1 %v711_v38  ;;  %v874_v37 = vld [vmem:[#allocation2 + $0x428] sm:$0xff]  ;;  %v873_v38 = vld [vmem:[#allocation2 + $0x420] sm:$0xff] }
  0x60   : > { %464 = vmatprep.mubr.f32.mxu1 %v1353_v0  ;;  %572 = vmatpush1.msra.mxu0 %v537_v39  ;;  %v872_v39 = vld [vmem:[#allocation2 + $0x418] sm:$0xff] }
  0x61   : > { %745 = vmatpush1.msra.mxu1 %v710_v40  ;;  %313 = vmatprep.mubr.f32.mxu0 %v1353_v0  ;;  %v871_v40 = vld [vmem:[#allocation2 + $0x410] sm:$0xff] }
  0x62   : > { %465 = vmatmul.mubr.f32.gmra.mxu1 %v1457_v41  ;;  %573 = vmatprep.subr.mxu0 %v536_v42  ;;  %v870_v42 = vld [vmem:[#allocation2 + $0x408] sm:$0xff] }
  0x63   : > { %746 = vmatprep.subr.mxu1 %v709_v43  ;;  %314 = vmatmul.mubr.f32.gmra.mxu0 %v1450_v32  ;;  %v869_v43 = vld [vmem:[#allocation2 + $0x400] sm:$0xff] }
  0x64   : > { %574 = vmatpush1.msra.mxu0 %v535_v44  ;;  %747 = vmatpush1.msra.mxu1 %v708_v45  ;;  %v331_v44 = vlaneseq }
  0x65   : > { %575 = vmatprep.subr.mxu0 %v534_v46  ;;  %748 = vmatprep.subr.mxu1 %v707_v47 }
  0x66   : > { %470 = vmatprep.mubr.f32.mxu1 %v1353_v0  ;;  %576 = vmatpush1.msra.mxu0 %v533_v48  ;;  %v1502_v45 = vshrl.u32 %v331_v44, 7  ;;  %v204_v48 = vld [vmem:[#allocation4] sm:$0x3] }
  0x67   : > { %749 = vmatpush1.msra.mxu1 %v706_v49  ;;  %319 = vmatprep.mubr.f32.mxu0 %v1353_v0 }
  0x68   : > { %471 = vmatmul.mubr.f32.gmra.mxu1 %v1464_v50  ;;  %577 = vmatprep.subr.mxu0 %v532_v51  ;;  %v333_v46 = vsub.s32 0, %v1502_v45 }
  0x69   : > { %750 = vmatprep.subr.mxu1 %v705_v52  ;;  %320 = vmatmul.mubr.f32.gmra.mxu0 %v1457_v41 }
  0x6a   : > { %578 = vmatpush1.msra.mxu0 %v531_v53  ;;  %751 = vmatpush1.msra.mxu1 %v704_v54  ;;  %v334_v51 = vrot.slane %v204_v48, %v333_v46 }
  0x6b   : > { %579 = vmatprep.subr.mxu0 %v530_v55  ;;  %752 = vmatprep.subr.mxu1 %v703_v56 }
  0x6c   : > { %580 = vmatpush1.msra.mxu0 %v529_v57  ;;  %753 = vmatpush1.msra.mxu1 %v702_v58 }
  0x6d   : > { %325 = vmatprep.mubr.f32.mxu0 %v1353_v0  ;;  %581 = vmatprep.subr.mxu0 %v528_v59 }
  0x6e   : > { %754 = vmatprep.subr.mxu1 %v701_v60  ;;  %326 = vmatmul.mubr.f32.gmra.mxu0 %v1464_v50 }
  0x6f   : > { %582 = vmatpush1.msra.mxu0 %v527_v61  ;;  %755 = vmatpush1.msra.mxu1 %v700_v62 }
  0x70   : > { %583 = vmatprep.subr.mxu0 %v526_v63  ;;  %756 = vmatprep.subr.mxu1 %v699_v1 }
  0x71   : > { %584 = vmatpush1.msra.mxu0 %v525_v3  ;;  %757 = vmatpush1.msra.mxu1 %v698_v4 }
  0x72   : > { %585 = vmatprep.subr.mxu0 %v524_v5  ;;  %758 = vmatprep.subr.mxu1 %v697_v6 }
  0x73   : > { %586 = vmatpush1.msra.mxu0 %v523_v7  ;;  %619 = vmatprep.mubr.f32.mxu0 %v1353_v0 }
  0x74   : > { %759 = vmatpush1.msra.mxu1 %v696_v8  ;;  %792 = vmatprep.mubr.f32.mxu1 %v1353_v0 }
  0x75   : > { %620 = vmatmul.mubr.f32.vlgmr.msra.gmra.mxu0 %v1440_v2  ;;  %793 = vmatmul.mubr.f32.vlgmr.msra.gmra.mxu1 %v1440_v2 }
  0x76   : > { %901 = vmatprep.subr.mxu0 %v900_v9  ;;  %1200 = vmatprep.subr.mxu1 %v900_v9 }
  0x77   : > { %902 = vmatpush1.msra.mxu0 %v899_v10  ;;  %1216 = vmatpush1.msra.mxu1 %v899_v10 }
  0x78   : > { %903 = vmatprep.subr.mxu0 %v898_v11  ;;  %1201 = vmatprep.subr.mxu1 %v898_v11 }
  0x79   : > { %625 = vmatprep.mubr.f32.mxu0 %v1353_v0  ;;  %798 = vmatprep.mubr.f32.mxu1 %v1353_v0 }
  0x7a   : > { %904 = vmatpush1.msra.mxu0 %v897_v13  ;;  %1217 = vmatpush1.msra.mxu1 %v897_v13 }
  0x7b   : > { %626 = vmatmul.mubr.f32.gmra.mxu0 %v1445_v12  ;;  %799 = vmatmul.mubr.f32.gmra.mxu1 %v1445_v12 }
  0x7c   : > { %905 = vmatprep.subr.mxu0 %v896_v14  ;;  %1202 = vmatprep.subr.mxu1 %v896_v14 }
  0x7d   : > { %906 = vmatpush1.msra.mxu0 %v895_v15  ;;  %1218 = vmatpush1.msra.mxu1 %v895_v15 }
  0x7e   : > { %907 = vmatprep.subr.mxu0 %v894_v16  ;;  %1203 = vmatprep.subr.mxu1 %v894_v16 }
  0x7f   : > { %631 = vmatprep.mubr.f32.mxu0 %v1353_v0  ;;  %908 = vmatpush1.msra.mxu0 %v893_v17 }
  0x80   : > { %1219 = vmatpush1.msra.mxu1 %v893_v17  ;;  %632 = vmatmul.mubr.f32.gmra.mxu0 %v1450_v32 }
  0x81   : > { %909 = vmatprep.subr.mxu0 %v892_v18  ;;  %1204 = vmatprep.subr.mxu1 %v892_v18 }
  0x82   : > { %804 = vmatprep.mubr.f32.mxu1 %v1353_v0  ;;  %910 = vmatpush1.msra.mxu0 %v891_v19 }
  0x83   : > { %1220 = vmatpush1.msra.mxu1 %v891_v19  ;;  %911 = vmatprep.subr.mxu0 %v890_v20 }
  0x84   : > { %805 = vmatmul.mubr.f32.gmra.mxu1 %v1450_v32  ;;  %1205 = vmatprep.subr.mxu1 %v890_v20 }
  0x85   : > { %637 = vmatprep.mubr.f32.mxu0 %v1353_v0  ;;  %912 = vmatpush1.msra.mxu0 %v889_v21 }
  0x86   : > { %1221 = vmatpush1.msra.mxu1 %v889_v21  ;;  %638 = vmatmul.mubr.f32.gmra.mxu0 %v1457_v41 }
  0x87   : > { %913 = vmatprep.subr.mxu0 %v888_v22  ;;  %1206 = vmatprep.subr.mxu1 %v888_v22 }
  0x88   : > { %810 = vmatprep.mubr.f32.mxu1 %v1353_v0  ;;  %914 = vmatpush1.msra.mxu0 %v887_v23 }
  0x89   : > { %1222 = vmatpush1.msra.mxu1 %v887_v23  ;;  %915 = vmatprep.subr.mxu0 %v886_v24 }
  0x8a   : > { %811 = vmatmul.mubr.f32.gmra.mxu1 %v1457_v41  ;;  %1207 = vmatprep.subr.mxu1 %v886_v24 }
  0x8b   : > { %643 = vmatprep.mubr.f32.mxu0 %v1353_v0  ;;  %916 = vmatpush1.msra.mxu0 %v885_v25 }
  0x8c   : > { %1223 = vmatpush1.msra.mxu1 %v885_v25  ;;  %644 = vmatmul.mubr.f32.gmra.mxu0 %v1464_v50 }
  0x8d   : > { %917 = vmatprep.subr.mxu0 %v884_v26  ;;  %1208 = vmatprep.subr.mxu1 %v884_v26 }
  0x8e   : > { %816 = vmatprep.mubr.f32.mxu1 %v1353_v0  ;;  %918 = vmatpush1.msra.mxu0 %v883_v27 }
  0x8f   : > { %1224 = vmatpush1.msra.mxu1 %v883_v27  ;;  %919 = vmatprep.subr.mxu0 %v882_v28 }
  0x90   : > { %817 = vmatmul.mubr.f32.gmra.mxu1 %v1464_v50  ;;  %1209 = vmatprep.subr.mxu1 %v882_v28 }
  0x91   : > { %920 = vmatpush1.msra.mxu0 %v881_v29  ;;  %1225 = vmatpush1.msra.mxu1 %v881_v29 }
  0x92   : > { %921 = vmatprep.subr.mxu0 %v880_v30  ;;  %1210 = vmatprep.subr.mxu1 %v880_v30 }
  0x93   : > { %922 = vmatpush1.msra.mxu0 %v879_v31  ;;  %1226 = vmatpush1.msra.mxu1 %v879_v31 }
  0x94   : > { %923 = vmatprep.subr.mxu0 %v878_v33  ;;  %1211 = vmatprep.subr.mxu1 %v878_v33 }
  0x95   : > { %924 = vmatpush1.msra.mxu0 %v877_v34  ;;  %1227 = vmatpush1.msra.mxu1 %v877_v34 }
  0x96   : > { %925 = vmatprep.subr.mxu0 %v876_v35  ;;  %1212 = vmatprep.subr.mxu1 %v876_v35 }
  0x97   : > { %926 = vmatpush1.msra.mxu0 %v875_v36  ;;  %1228 = vmatpush1.msra.mxu1 %v875_v36 }
  0x98   : > { %927 = vmatprep.subr.mxu0 %v874_v37  ;;  %1213 = vmatprep.subr.mxu1 %v874_v37 }
  0x99   : > { %928 = vmatpush1.msra.mxu0 %v873_v38  ;;  %1229 = vmatpush1.msra.mxu1 %v873_v38 }
  0x9a   : > { %929 = vmatprep.subr.mxu0 %v872_v39  ;;  %1214 = vmatprep.subr.mxu1 %v872_v39 }
  0x9b   : > { %930 = vmatpush1.msra.mxu0 %v871_v40  ;;  %1230 = vmatpush1.msra.mxu1 %v871_v40 }
  0x9c   : > { %931 = vmatprep.subr.mxu0 %v870_v42  ;;  %1215 = vmatprep.subr.mxu1 %v870_v42  ;;  %v337_v42 = vsub.s32 1, %v1502_v45 }
  0x9d   : > { %932 = vmatpush1.msra.mxu0 %v869_v43  ;;  %1231 = vmatpush1.msra.mxu1 %v869_v43 }
  0x9e   : > { %965 = vmatprep.mubr.f32.mxu0 %v1353_v0  ;;  %983 = vmatprep.mubr.f32.mxu1 %v1353_v0 }
  0x9f   : > { %966 = vmatmul.mubr.f32.vlgmr.msra.gmra.mxu0 %v1440_v2  ;;  %984 = vmatmul.mubr.f32.vlgmr.msra.gmra.mxu1 %v1457_v41 }
  0xa0   : > { %971 = vmatprep.mubr.f32.mxu0 %v1353_v0  ;;  %989 = vmatprep.mubr.f32.mxu1 %v1353_v0 }
  0xa3   : > { %972 = vmatmul.mubr.f32.gmra.mxu0 %v1445_v12  ;;  %990 = vmatmul.mubr.f32.gmra.mxu1 %v1464_v50 }
  0xa4   : > { %977 = vmatprep.mubr.f32.mxu0 %v1353_v0 }
  0xa7   : > { %978 = vmatmul.mubr.f32.gmra.mxu0 %v1450_v32 }
 0x10b   : > { %v448_v47 = vpop.f32.mrf.mxu1  ;;  %v303_v52 = vpop.f32.mrf.mxu0 }
 0x10c   : > { %v488_v53 = vrot.slane %v448_v47, 1  ;;  %v341_v56 = vadd.f32 %v334_v51, %v303_v52 }
 0x10d   : > { %v1505_v49 = vpop.f32.mrf.mxu1  ;;  %v305_v59 = vpop.f32.mrf.mxu0 }
 0x10e   : > { %v491_v46 = vrot.slane %v1505_v49, 1 }
 0x111   : > { %v454_v54 = vpop.f32.mrf.mxu1 }
 0x112   : > { %v489_v55 = vrot.slane %v454_v54, 1 }
 0x113   : > { %v1510_v58 = vpop.f32.mrf.mxu1 }
 0x114   : > { %v490_v0 = vsel %vm487_vm0, %v488_v53, %v489_v55  ;;  %v492_v47 = vrot.slane %v1510_v58, 1 }
 0x115   : > { %v1508_v57 = vadd.f32 %v490_v0, %v341_v56 }
 0x11c   : > { %v460_v60 = vpop.f32.mrf.mxu1 }
 0x11d   : > { %v494_v61 = vrot.slane %v460_v60, 1  ;;  %v309_v62 = vpop.f32.mrf.mxu0 }
 0x11e   : > { %v343_v63 = vadd.f32 %v334_v51, %v309_v62  ;;  %v1512_v1 = vpop.f32.mrf.mxu1 }
 0x11f   : > { %v495_v3 = vsel %vm487_vm0, %v489_v55, %v494_v61  ;;  %v311_v4 = vpop.f32.mrf.mxu0  ;;  %v493_v55 = vsel %vm487_vm0, %v491_v46, %v492_v47 }
 0x120   : > { %v1515_v5 = vadd.f32 %v495_v3, %v343_v63  ;;  %v496_v63 = vrot.slane %v1512_v1, 1 }
 0x122   : > { %v466_v6 = vpop.f32.mrf.mxu1 }
 0x123   : > { %v498_v7 = vrot.slane %v466_v6, 1  ;;  %v315_v8 = vpop.f32.mrf.mxu0 }
 0x124   : > { %v345_v9 = vadd.f32 %v334_v51, %v315_v8  ;;  %v1517_v10 = vpop.f32.mrf.mxu1 }
 0x125   : > { %v499_v11 = vsel %vm487_vm0, %v494_v61, %v498_v7  ;;  %v317_v13 = vpop.f32.mrf.mxu0  ;;  %v500_v56 = vrot.slane %v1517_v10, 1 }
 0x126   : > { %v1520_v14 = vadd.f32 %v499_v11, %v345_v9 }
 0x128   : > { %v472_v15 = vpop.f32.mrf.mxu1 }
 0x129   : > { %v502_v16 = vrot.slane %v472_v15, 1  ;;  %v321_v17 = vpop.f32.mrf.mxu0 }
 0x12a   : > { %v347_v18 = vadd.f32 %v334_v51, %v321_v17  ;;  %v474_v25 = vpop.f32.mrf.mxu1  ;;  %v338_v51 = vrot.slane %v204_v48, %v337_v42 }
 0x12b   : > { %v503_v19 = vsel %vm487_vm0, %v498_v7, %v502_v16  ;;  %v323_v20 = vpop.f32.mrf.mxu0  ;;  %v504_v54 = vrot.slane %v474_v25, 1 }
 0x12c   : > { %v1523_v21 = vadd.f32 %v503_v19, %v347_v18  ;;  %v342_v45 = vadd.f32 %v338_v51, %v305_v59  ;;  %v348_v61 = vadd.f32 %v338_v51, %v323_v20  ;;  %v344_v6 = vadd.f32 %v338_v51, %v311_v4 }
 0x12d   : > { %v505_v49 = vsel %vm487_vm0, %v500_v56, %v504_v54  ;;  %v346_v15 = vadd.f32 %v338_v51, %v317_v13  ;;  %v497_v4 = vsel %vm487_vm0, %v492_v47, %v496_v63  ;;  %v501_v20 = vsel %vm487_vm0, %v496_v63, %v500_v56 }
 0x12e   : > { %v327_v22 = vpop.f32.mrf.mxu0  ;;  %v515_v48 = vadd.f32 %v493_v55, %v342_v45  ;;  %v521_v16 = vadd.f32 %v505_v49, %v348_v61 }
 0x12f   : > { %v519_v42 = vadd.f32 %v501_v20, %v346_v15 }
 0x130   : > { %v328_v23 = vpop.f32.mrf.mxu0 }
 0x135   : > { %v1525_v24 = vpop.f32.mrf.mxu0  ;;  %v1527_v27 = vpop.f32.mrf.mxu1 }
 0x137   : > { %v623_v26 = vpop.f32.mrf.mxu0  ;;  %v796_v29 = vpop.f32.mrf.mxu1 }
 0x138   : > { %v664_v3 = vrot.slane %v623_v26, 2  ;;  %v837_v1 = vrot.slane %v796_v29, 3 }
 0x13b   : > { %v1529_v28 = vpop.f32.mrf.mxu0  ;;  %v1531_v31 = vpop.f32.mrf.mxu1 }
 0x13d   : > { %v629_v30 = vpop.f32.mrf.mxu0  ;;  %v1535_v34 = vpop.f32.mrf.mxu1 }
 0x13e   : > { %v665_v0 = vrot.slane %v629_v30, 2  ;;  %v838_v17 = vrot.slane %v1535_v34, 3 }
 0x140   : > { %v1533_v33 = vpop.f32.mrf.mxu0  ;;  %v666_v9 = vsel %vm660_vm1, %v664_v3, %v665_v0  ;;  %v839_v46 = vsel %vm833_vm2, %v837_v1, %v838_v17 }
 0x141   : > { %v688_v23 = vadd.f32 %v666_v9, %v515_v48 }
 0x142   : > { %v635_v35 = vpop.f32.mrf.mxu0 }
 0x143   : > { %v669_v10 = vrot.slane %v635_v35, 2  ;;  %v861_v56 = vadd.f32 %v839_v46, %v688_v23 }
 0x144   : > { %v1537_v36 = vpop.f32.mrf.mxu1 }
 0x145   : > { %v670_v13 = vsel %vm660_vm1, %v665_v0, %v669_v10 }
 0x146   : > { %v1539_v37 = vpop.f32.mrf.mxu0  ;;  %v1541_v38 = vpop.f32.mrf.mxu1 }
 0x147   : > { %v842_v29 = vrot.slane %v1541_v38, 3 }
 0x148   : > { %v641_v39 = vpop.f32.mrf.mxu0 }
 0x149   : > { %v673_v58 = vrot.slane %v641_v39, 2  ;;  %v517_v39 = vadd.f32 %v497_v4, %v344_v6  ;;  %v843_v61 = vsel %vm833_vm2, %v838_v17, %v842_v29 }
 0x14a   : > { %v1543_v40 = vpop.f32.mrf.mxu1 }
 0x14b   : > { %v674_v34 = vsel %vm660_vm1, %v669_v10, %v673_v58 }
 0x14c   : > { %v1546_v43 = vpop.f32.mrf.mxu0  ;;  %v1548_v44 = vpop.f32.mrf.mxu1  ;;  %v692_v0 = vadd.f32 %v674_v34, %v519_v42 }
 0x14d   : > { %v846_v22 = vrot.slane %v1548_v44, 3 }
 0x14e   : > { %v647_v52 = vpop.f32.mrf.mxu0 }
 0x14f   : > { %v677_v60 = vrot.slane %v647_v52, 2 }
 0x150   : > { %v1552_v53 = vpop.f32.mrf.mxu1 }
 0x151   : > { %v678_v59 = vsel %vm660_vm1, %v673_v58, %v677_v60  ;;  %v690_v60 = vadd.f32 %v670_v13, %v517_v39 }
 0x152   : > { %v820_v62 = vpop.f32.mrf.mxu1  ;;  %v694_v25 = vadd.f32 %v678_v59, %v521_v16 }
 0x153   : > { %v850_v11 = vrot.slane %v820_v62, 3  ;;  %v847_v62 = vsel %vm833_vm2, %v842_v29, %v846_v22  ;;  %v863_v9 = vadd.f32 %v843_v61, %v690_v60  ;;  %v834_v60 = vrot.slane %v1527_v27, 3 }
 0x154   : > { %v865_v10 = vadd.f32 %v847_v62, %v692_v0  ;;  %v835_v0 = vrot.slane %v1531_v31, 3  ;;  %v667_v62 = vrot.slane %v1533_v33, 2  ;;  %v844_v31 = vrot.slane %v1543_v40, 3 }
 0x155   : > { %v851_v35 = vsel %vm833_vm2, %v846_v22, %v850_v11  ;;  %v840_v33 = vrot.slane %v1537_v36, 3 }
 0x156   : > { %v867_v45 = vadd.f32 %v851_v35, %v694_v25 }
 0x15f   : > { %v1558_v7 = vpop.f32.mrf.mxu0  ;;  %v1560_v8 = vpop.f32.mrf.mxu1 }
 0x161   : > { %v969_v18 = vpop.f32.mrf.mxu0  ;;  %v987_v19 = vpop.f32.mrf.mxu1 }
 0x162   : > { %v1010_v51 = vrot.slane %v969_v18, 4  ;;  %v1019_v52 = vrot.slane %v987_v19, 4 }
 0x163   : > { %v1568_v26 = vpop.f32.mrf.mxu0  ;;  %v1570_v30 = vpop.f32.mrf.mxu1 }
 0x165   : > { %v975_v44 = vpop.f32.mrf.mxu0  ;;  %v993_v47 = vpop.f32.mrf.mxu1 }
 0x166   : > { %v1011_v54 = vrot.slane %v975_v44, 4  ;;  %v1023_v55 = vrot.slane %v993_v47, 4 }
 0x167   : > { %v1577_v38 = vpop.f32.mrf.mxu0 }
 0x168   : > { %v1012_v63 = vsel %vm1006_vm3, %v1010_v51, %v1011_v54  ;;  %v1024_v49 = vsel %vm1006_vm3, %v1019_v52, %v1023_v55  ;;  %v662_v51 = vrot.slane %v1529_v28, 2  ;;  %v1013_v40 = vrot.slane %v1577_v38, 4 }
 0x169   : > { %v1583_v3 = vadd.f32 %v1012_v63, %v861_v56  ;;  %v1585_v58 = vadd.f32 %v1024_v49, %v867_v45  ;;  %v981_v48 = vpop.f32.mrf.mxu0  ;;  %v661_v56 = vrot.slane %v1525_v24, 2  ;;  %v671_v45 = vrot.slane %v1539_v37, 2 }
 0x16a   : > { %v1015_v6 = vrot.slane %v981_v48, 4  ;;  %v848_v63 = vrot.slane %v1552_v53, 3  ;;  %v1008_v24 = vrot.slane %v1568_v26, 4  ;;  %v1017_v49 = vrot.slane %v1560_v8, 4 }
 0x16b   : > { %v1041_v59 = vand.u32 2147483647, %v1583_v3  ;;  %v1044_v11 = vand.u32 2147483647, %v1585_v58  ;;  %v663_v61 = vsel %vm660_vm1, %v661_v56, %v662_v51  ;;  %v1021_v37 = vrot.slane %v1570_v30, 4 }
 0x16c   : > { %v1016_v15 = vsel %vm1006_vm3, %v1011_v54, %v1015_v6  ;;  %v1020_v16 = vsel %vm1006_vm3, %v1015_v6, %v1019_v52  ;;  %v675_v54 = vrot.slane %v1546_v43, 2  ;;  %v836_v43 = vsel %vm833_vm2, %v834_v60, %v835_v0 }
 0x16d   : > { %v1045_v1 = vsub.f32 0.0, %v1041_v59  ;;  %v1048_v17 = vsub.f32 0.0, %v1044_v11  ;;  %v1591_v18 = vadd.f32 %v1016_v15, %v863_v9  ;;  %v1593_v19 = vadd.f32 %v1020_v16, %v865_v10 }
 0x16e   : > { %v676_v28 = vsel %vm660_vm1, %v671_v45, %v675_v54  ;;  %v687_v27 = vadd.f32 %v663_v61, %v1508_v57  ;;  %v668_v48 = vsel %vm660_vm1, %v662_v51, %v667_v62  ;;  %v1007_v53 = vrot.slane %v1558_v7, 4 }
 0x16f   : > { %v1049_v4 = vmul.f32 1.442695, %v1045_v1  ;;  %v1055_v20 = vmul.f32 1.442695, %v1048_v17  ;;  %v1042_v22 = vand.u32 2147483647, %v1591_v18  ;;  %v693_v6 = vadd.f32 %v676_v28, %v1523_v21 }
 0x170   : > { %v1043_v23 = vand.u32 2147483647, %v1593_v19  ;;  %v672_v9 = vsel %vm660_vm1, %v667_v62, %v671_v45  ;;  %v849_v26 = vsel %vm833_vm2, %v844_v31, %v848_v63  ;;  %v1009_v57 = vsel %vm1006_vm3, %v1007_v53, %v1008_v24 }
 0x171   : > { %1265 = vpow2.f32 %v1049_v4  ;;  %v1046_v25 = vsub.f32 0.0, %v1042_v22  ;;  %v860_v8 = vadd.f32 %v836_v43, %v687_v27  ;;  %v689_v30 = vadd.f32 %v668_v48, %v1515_v5 }
 0x172   : > { %1267 = vpow2.f32 %v1055_v20  ;;  %v1047_v13 = vsub.f32 0.0, %v1043_v23  ;;  %v1022_v59 = vsel %vm1006_vm3, %v1017_v49, %v1021_v37  ;;  %v841_v21 = vsel %vm833_vm2, %v835_v0, %v840_v33 }
 0x173   : > { %v1051_v29 = vmul.f32 1.442695, %v1046_v25  ;;  %v691_v7 = vadd.f32 %v672_v9, %v1520_v14  ;;  %v866_v11 = vadd.f32 %v849_v26, %v693_v6  ;;  %v845_v16 = vsel %vm833_vm2, %v840_v33, %v844_v31 }
 0x174   : > { %v1053_v34 = vmul.f32 1.442695, %v1047_v13  ;;  %v1033_v1 = vadd.f32 %v1009_v57, %v860_v8  ;;  %vm1065_vm4 = vcmp.ge.f32.partialorder %v1583_v3, 0.0  ;;  %vm1068_vm5 = vcmp.ge.f32.partialorder %v1585_v58, 0.0 }
 0x175   : > { %1269 = vpow2.f32 %v1051_v29  ;;  %v1039_v17 = vadd.f32 %v1022_v59, %v866_v11  ;;  %v1014_v5 = vsel %vm1006_vm3, %v1008_v24, %v1013_v40  ;;  %v862_v22 = vadd.f32 %v841_v21, %v689_v30 }
 0x176   : > { %1271 = vpow2.f32 %v1053_v34  ;;  %v1018_v14 = vsel %vm1006_vm3, %v1013_v40, %v1017_v49  ;;  %v864_v29 = vadd.f32 %v845_v16, %v691_v7  ;;  %vm1066_vm6 = vcmp.ge.f32.partialorder %v1591_v18, 0.0 }
 0x177   : > { %v1035_v3 = vadd.f32 %v1014_v5, %v862_v22  ;;  %vm1067_vm7 = vcmp.ge.f32.partialorder %v1593_v19, 0.0 }
 0x17e   : > { %v1266_v35 = vpop.eup %1265 }
 0x17f   : > { %v1268_v39 = vpop.eup %1267  ;;  %v1057_v42 = vadd.f32 1.0, %v1266_v35 }
 0x180   : > { %v1060_v46 = vadd.f32 1.0, %v1268_v39 }
 0x181   : > { %1273 = vrcp.f32 %v1057_v42 }
 0x182   : > { %v1270_v44 = vpop.eup %1269  ;;  %1275 = vrcp.f32 %v1060_v46  ;;  %v1037_v46 = vadd.f32 %v1018_v14, %v864_v29 }
 0x183   : > { %v1272_v47 = vpop.eup %1271  ;;  %v1058_v52 = vadd.f32 1.0, %v1270_v44 }
 0x184   : > { %v1059_v55 = vadd.f32 1.0, %v1272_v47 }
 0x185   : > { %1277 = vrcp.f32 %v1058_v52 }
 0x186   : > { %1279 = vrcp.f32 %v1059_v55 }
 0x18e   : > { %v1274_v10 = vpop.eup %1273 }
 0x18f   : > { %v1276_v36 = vpop.eup %1275  ;;  %v1069_v15 = vmul.f32 %v1274_v10, %v1266_v35 }
 0x190   : > { %v1072_v38 = vmul.f32 %v1276_v36, %v1268_v39 }
 0x191   : > { %v1073_v4 = vsel %vm1065_vm4, %v1274_v10, %v1069_v15 }
 0x192   : > { %v1278_v20 = vpop.eup %1277  ;;  %v1077_v23 = vmul.f32 %v1073_v4, %v1033_v1  ;;  %v1076_v25 = vsel %vm1068_vm5, %v1276_v36, %v1072_v38 }
 0x193   : > { %v1280_v13 = vpop.eup %1279  ;;  %v1080_v34 = vmul.f32 %v1076_v25, %v1039_v17  ;;  %v1070_v35 = vmul.f32 %v1278_v20, %v1270_v44 }
 0x194   : > { %v1086_v42 = vrot.slane %v1077_v23, 6  ;;  %v1071_v39 = vmul.f32 %v1280_v13, %v1272_v47 }
 0x195   : > { %v1091_v58 = vrot.slane %v1080_v34, 6  ;;  %v1074_v51 = vsel %vm1066_vm6, %v1278_v20, %v1070_v35 }
 0x196   : > { %v1098_v52 = vadd.f32 %v1086_v42, %v1440_v2  ;;  %v1075_v54 = vsel %vm1067_vm7, %v1280_v13, %v1071_v39  ;;  %v1078_v55 = vmul.f32 %v1074_v51, %v1035_v3 }
 0x197   : > { %v1102_v44 = vadd.f32 %v1091_v58, %v1464_v50  ;;  %v1079_v56 = vmul.f32 %v1075_v54, %v1037_v46 }
 0x198   : > { %1103 = vst [vmem:[%s198_s8 - $0x2] sm:$0xfc] %v1098_v52  ;;  %v1087_v18 = vrot.slane %v1078_v55, 6 }
 0x199   : > { %1107 = vst [vmem:[%s198_s8 + $0x1e] sm:$0x3] %v1102_v44  ;;  %v1089_v47 = vrot.slane %v1079_v56, 6 }
 0x19a   : > { %v1088_v60 = vsel %vm1085_vm8, %v1086_v42, %v1087_v18 }
 0x19b   : > { %v1090_v0 = vsel %vm1085_vm8, %v1087_v18, %v1089_v47  ;;  %v1092_v45 = vsel %vm1085_vm8, %v1089_v47, %v1091_v58  ;;  %v1099_v61 = vadd.f32 %v1088_v60, %v1445_v12 }
 0x19c   : > { %v1100_v19 = vadd.f32 %v1090_v0, %v1450_v32  ;;  %v1101_v62 = vadd.f32 %v1092_v45, %v1457_v41 }
 0x19d   : > { %1104 = vst [vmem:[%s198_s8 + $0x6] sm:$0xff] %v1099_v61 }
 0x19e   : > { %1105 = vst [vmem:[%s198_s8 + $0xe] sm:$0xff] %v1100_v19  ;;  %1106 = vst [vmem:[%s198_s8 + $0x16] sm:$0xff] %v1101_v62 }
 0x19f PF: > { %s15_s12 = sadd.s32 1, %s1347_s12  }
 0x1a0   : > { %p12_p3 = scmp.ge.s32.totalorder %s15_s12, 4  }
 0x1a2   :  { %14 = sbr.rel (!%p12_p3) target bundleno = 2 (0x2), region = 75 }
 0x1a7   :  { %1129 = vsyncpa [#allocation3], 1 }
 0x1a8   :  { %1131 = vsyncpa [#allocation3 + $0x1], 1 }
 0x1a9   :  { %1132 = vsyncpa [#allocation5], 1 }

// kernel: mel_style_encoder_forward.11
= control target key start
LH: loop header
LB: loop body
LE: loop exit
PB: predicated region body
PF: predicated region fallthrough
CT: control target
= control target key end

     0   :  { %v148_v3 = vmov 0.0   ;;  %v49_v34 = vlaneseq  ;;  %s274_s1 = inlined_call_operand.vmem [shape: f32[128,256], index: 1, kind: input, shape index: {}]   ;;  %s275_s0 = inlined_call_operand.vmem [shape: f32[2,128], index: 0, kind: input, shape index: {}]   ;;  %s276_s2 = inlined_call_operand.vmem [shape: f32[1,256], index: 2, kind: input, shape index: {}]   ;;  %s277_s3 = inlined_call_operand.vmem [shape: f32[2,256], index: 3, kind: output, shape index: {}]  }
   0x1   :  { %v46_v0 = vld [vmem:[%s274_s1 + $0xf8] sm:$0xff]  ;;  %v45_v1 = vld [vmem:[%s274_s1 + $0xf0] sm:$0xff]  ;;  %v44_v2 = vld [vmem:[%s274_s1 + $0xe8] sm:$0xff]  ;;  %123 = vmatprep.mubr.f32.mxu0 %v148_v3 }
   0x2   :  { %59 = vmatprep.subr.mxu0 %v46_v0  ;;  %v43_v4 = vld [vmem:[%s274_s1 + $0xe0] sm:$0xff]  ;;  %v42_v5 = vld [vmem:[%s274_s1 + $0xd8] sm:$0xff]  ;;  %v41_v6 = vld [vmem:[%s274_s1 + $0xd0] sm:$0xff]  ;;  %v50_v35 = vshrl.u32 %v49_v34, 7 }
   0x3   :  { %60 = vmatpush1.msra.mxu0 %v45_v1  ;;  %v40_v7 = vld [vmem:[%s274_s1 + $0xc8] sm:$0xff]  ;;  %v39_v8 = vld [vmem:[%s274_s1 + $0xc0] sm:$0xff]  ;;  %v38_v9 = vld [vmem:[%s274_s1 + $0xb8] sm:$0xff] }
   0x4   :  { %61 = vmatprep.subr.mxu0 %v44_v2  ;;  %v37_v10 = vld [vmem:[%s274_s1 + $0xb0] sm:$0xff]  ;;  %v36_v11 = vld [vmem:[%s274_s1 + $0xa8] sm:$0xff]  ;;  %v35_v12 = vld [vmem:[%s274_s1 + $0xa0] sm:$0xff]  ;;  %v51_v36 = vsub.s32 0, %v50_v35  ;;  %v55_v37 = vsub.s32 1, %v50_v35 }
   0x5   :  { %62 = vmatpush1.msra.mxu0 %v43_v4  ;;  %v34_v13 = vld [vmem:[%s274_s1 + $0x98] sm:$0xff]  ;;  %v33_v14 = vld [vmem:[%s274_s1 + $0x90] sm:$0xff]  ;;  %v32_v15 = vld [vmem:[%s274_s1 + $0x88] sm:$0xff] }
   0x6   :  { %63 = vmatprep.subr.mxu0 %v42_v5  ;;  %v31_v16 = vld [vmem:[%s274_s1 + $0x80] sm:$0xff]  ;;  %v30_v17 = vld [vmem:[%s274_s1 + $0x78] sm:$0xff]  ;;  %v29_v18 = vld [vmem:[%s274_s1 + $0x70] sm:$0xff] }
   0x7   :  { %64 = vmatpush1.msra.mxu0 %v41_v6  ;;  %v28_v19 = vld [vmem:[%s274_s1 + $0x68] sm:$0xff]  ;;  %v27_v20 = vld [vmem:[%s274_s1 + $0x60] sm:$0xff]  ;;  %v26_v21 = vld [vmem:[%s274_s1 + $0x58] sm:$0xff] }
   0x8   :  { %65 = vmatprep.subr.mxu0 %v40_v7  ;;  %v25_v22 = vld [vmem:[%s274_s1 + $0x50] sm:$0xff]  ;;  %v24_v23 = vld [vmem:[%s274_s1 + $0x48] sm:$0xff]  ;;  %v23_v24 = vld [vmem:[%s274_s1 + $0x40] sm:$0xff] }
   0x9   :  { %66 = vmatpush1.msra.mxu0 %v39_v8  ;;  %v22_v25 = vld [vmem:[%s274_s1 + $0x38] sm:$0xff]  ;;  %v21_v26 = vld [vmem:[%s274_s1 + $0x30] sm:$0xff]  ;;  %v20_v27 = vld [vmem:[%s274_s1 + $0x28] sm:$0xff] }
   0xa   :  { %67 = vmatprep.subr.mxu0 %v38_v9  ;;  %v19_v28 = vld [vmem:[%s274_s1 + $0x20] sm:$0xff]  ;;  %v18_v29 = vld [vmem:[%s274_s1 + $0x18] sm:$0xff]  ;;  %v17_v30 = vld [vmem:[%s274_s1 + $0x10] sm:$0xff] }
   0xb   :  { %68 = vmatpush1.msra.mxu0 %v37_v10  ;;  %v16_v31 = vld [vmem:[%s274_s1 + $0x8] sm:$0xff]  ;;  %v15_v32 = vld [vmem:[%s274_s1] sm:$0xff] }
   0xc   :  { %69 = vmatprep.subr.mxu0 %v36_v11  ;;  %v14_v33 = vld [vmem:[%s275_s0] sm:$0x3] }
   0xd   :  { %70 = vmatpush1.msra.mxu0 %v35_v12  ;;  %v47_v38 = vld [vmem:[%s276_s2] sm:$0x3] }
   0xe   :  { %71 = vmatprep.subr.mxu0 %v34_v13  ;;  %v52_v39 = vrot.slane %v47_v38, %v51_v36  ;;  %v56_v40 = vrot.slane %v47_v38, %v55_v37 }
   0xf   :  { %72 = vmatpush1.msra.mxu0 %v33_v14 }
  0x10   :  { %73 = vmatprep.subr.mxu0 %v32_v15 }
  0x11   :  { %74 = vmatpush1.msra.mxu0 %v31_v16 }
  0x12   :  { %75 = vmatprep.subr.mxu0 %v30_v17 }
  0x13   :  { %76 = vmatpush1.msra.mxu0 %v29_v18 }
  0x14   :  { %77 = vmatprep.subr.mxu0 %v28_v19 }
  0x15   :  { %78 = vmatpush1.msra.mxu0 %v27_v20 }
  0x16   :  { %79 = vmatprep.subr.mxu0 %v26_v21 }
  0x17   :  { %80 = vmatpush1.msra.mxu0 %v25_v22 }
  0x18   :  { %81 = vmatprep.subr.mxu0 %v24_v23 }
  0x19   :  { %82 = vmatpush1.msra.mxu0 %v23_v24 }
  0x1a   :  { %83 = vmatprep.subr.mxu0 %v22_v25 }
  0x1b   :  { %84 = vmatpush1.msra.mxu0 %v21_v26 }
  0x1c   :  { %85 = vmatprep.subr.mxu0 %v20_v27 }
  0x1d   :  { %86 = vmatpush1.msra.mxu0 %v19_v28 }
  0x1e   :  { %87 = vmatprep.subr.mxu0 %v18_v29 }
  0x1f   :  { %88 = vmatpush1.msra.mxu0 %v17_v30 }
  0x20   :  { %89 = vmatprep.subr.mxu0 %v16_v31 }
  0x21   :  { %90 = vmatpush1.msra.mxu0 %v15_v32 }
  0x22   :  { %124 = vmatmul.mubr.f32.vlgmr.msra.gmra.mxu0 %v14_v33 }
  0xe2   :  { %v125_v41 = vpop.f32.mrf.mxu0 }
  0xe3   :  { %v126_v43 = vadd.f32 %v125_v41, %v52_v39 }
  0xe4   :  { %v127_v42 = vpop.f32.mrf.mxu0 }
  0xe5   :  { %v128_v44 = vadd.f32 %v127_v42, %v56_v40 }
  0xe7   :  { %v132_v45 = vcombine.low %v126_v43, %v128_v44 }
  0xe9   :  { %146 = vst.sshfl [vmem:[%s277_s3] sm:$0x33 pattern:$0x76325410] %v132_v45 }

// kernel: mel_style_encoder_forward.10
= control target key start
LH: loop header
LB: loop body
LE: loop exit
PB: predicated region body
PF: predicated region fallthrough
CT: control target
= control target key end

     0   :  { %s1238_s15 = smov 0   ;;  %s1461_s0 = inlined_call_operand.vmem [shape: f32[2,32,384], index: 0, kind: input, shape index: {}]   ;;  %s1462_s1 = inlined_call_operand.vmem [shape: f32[2,32,128], index: 1, kind: input, shape index: {}]   ;;  %s1463_s2 = inlined_call_operand.vmem [shape: f32[128,128], index: 2, kind: input, shape index: {}]   ;;  %s1464_s3 = inlined_call_operand.vmem [shape: f32[1,128], index: 3, kind: input, shape index: {}]   ;;  %s1465_s4 = inlined_call_operand.vmem [shape: f32[2,32,128], index: 4, kind: output, shape index: {}]  }
   0x1 LB: > { %s967_s16 = sadd.s32 4294967295, %s1210_s15   ;;  %p971_p0 = scmp.ge.s32.totalorder %s1210_s15, 1  ;;  %s1210_s15 = sphi %s1238_s15, %s14_s15  }
   0x2   : > { %p172_p1 = scmp.lt.s32.totalorder %s1210_s15, 3 }
   0x4   : > { %p173_p2 = pnand %p971_p0, %p172_p1 }
   0x5   : > { %p203_p3 = scmp.lt.s32.totalorder (!%p173_p2), %s967_s16, 1  ;;  %s1212_s21 = smov (!%p173_p2), 64  }
   0x6   : > { %176 = sbr.rel (%p173_p2) target bundleno = 1592 (0x638), region = 36 }
   0xb   : > { %s1467_s16 = smov (!%p203_p3, %s967_s16), 1  ;;  %vm234_vm0 = vcmask 523264   ;;  %vm344_vm1 = vcmask 261120  }
   0xc   : > { %s1152_s17 = smul.u32 96, %s1467_s16 }
   0xe   : > { %s1252_s20 = scalar_lea.vmem %s1461_s0, %s1152_s17 }
   0xf   : > { %v1255_v0 = vld [vmem:[%s1252_s20 + $0x50] sm:$0xff]  ;;  %v1258_v1 = vld [vmem:[%s1252_s20 + $0x38] sm:$0xff]  ;;  %v218_v2 = vld [vmem:[%s1252_s20] sm:$0xff] }
  0x10   : > { %1058 = vmatprep.subr.msk.mxu1 %vm234_vm0, %v1255_v0  ;;  %v1265_v3 = vmul.f32 0.088388346, %v218_v2  ;;  %v1270_v4 = vld [vmem:[%s1252_s20 + $0x20] sm:$0xff]  ;;  %v1279_v5 = vld [vmem:[%s1252_s20 + $0x8] sm:$0xff]  ;;  %v221_v6 = vld [vmem:[%s1252_s20 + $0x18] sm:$0xff] }
  0x11   : > { %1059 = vmatpush3.xpose.msk.msra.mxu1 %vm234_vm0, %v1255_v0  ;;  %v224_v7 = vld [vmem:[%s1252_s20 + $0x30] sm:$0xff]  ;;  %v1287_v8 = vmul.f32 0.088388346, %v221_v6  ;;  %v227_v10 = vld [vmem:[%s1252_s20 + $0x48] sm:$0xff]  ;;  %v1311_v40 = vld [vmem:[%s1252_s20 + $0x58] sm:$0xff] }
  0x12   : > { %1060 = vmatprep.subr.msk.mxu1 %vm234_vm0, %v1258_v1  ;;  %1066 = vmatprep.mubr.msk.f32.mxu1 %vm234_vm0, %v1265_v3  ;;  %v1291_v9 = vmul.f32 0.088388346, %v224_v7  ;;  %v1296_v11 = vmul.f32 0.088388346, %v227_v10  ;;  %v1316_v41 = vld [vmem:[%s1252_s20 + $0x40] sm:$0xff]  ;;  %v1323_v42 = vld [vmem:[%s1252_s20 + $0x28] sm:$0xff] }
  0x13   : > { %v1330_v43 = vld [vmem:[%s1252_s20 + $0x10] sm:$0xff] }
  0x15   : > { %1061 = vmatpush3.xpose.msk.msra.mxu1 %vm234_vm0, %v1258_v1 }
  0x16   : > { %1062 = vmatprep.subr.msk.mxu1 %vm234_vm0, %v1270_v4 }
  0x19   : > { %1063 = vmatpush3.xpose.msk.msra.mxu1 %vm234_vm0, %v1270_v4 }
  0x1a   : > { %1064 = vmatprep.subr.msk.mxu1 %vm234_vm0, %v1279_v5 }
  0x1d   : > { %1065 = vmatpush3.xpose.msk.msra.mxu1 %vm234_vm0, %v1279_v5 }
  0x1e   : > { %1072 = vmatprep.subr.mxu1 %v1311_v40 }
  0x20   : > { %1067 = vmatmul.mubr.msk.f32.vlgmr.msra.gmra.mxu1 %vm234_vm0, %v1287_v8 }
  0x21   : > { %1069 = vmatprep.mubr.msk.f32.mxu1 %vm234_vm0, %v1291_v9  ;;  %1073 = vmatpush3.msra.mxu1 %v1311_v40 }
  0x22   : > { %1074 = vmatprep.subr.mxu1 %v1316_v41 }
  0x23   : > { %1075 = vmatpush3.msra.mxu1 %v1316_v41 }
  0x24   : > { %1070 = vmatmul.mubr.msk.f32.gmra.mxu1 %vm234_vm0, %v1296_v11  ;;  %1076 = vmatprep.subr.mxu1 %v1323_v42 }
  0x25   : > { %1077 = vmatpush3.msra.mxu1 %v1323_v42 }
  0x26   : > { %1078 = vmatprep.subr.mxu1 %v1330_v43 }
  0x27   : > { %1079 = vmatpush3.msra.mxu1 %v1330_v43 }
  0xe0   : > { %v1068_v12 = vpop.f32.mrf.mxu1 }
  0xe1   : > { %v348_v17 = vsel %vm344_vm1, %v1068_v12, -inf }
  0xe2   : > { %v325_v13 = vpop.f32.mrf.mxu1 }
  0xe3   : > { %v345_v14 = vsel %vm344_vm1, %v325_v13, -inf }
  0xe4   : > { %346 = vmax.xlane.f32.xlu0 %v345_v14  ;;  %v1071_v15 = vpop.f32.mrf.mxu1 }
  0xe5   : > { %v354_v19 = vsel %vm344_vm1, %v1071_v15, -inf }
  0xe6   : > { %v335_v16 = vpop.f32.mrf.mxu1 }
  0xe7   : > { %v351_v18 = vsel %vm344_vm1, %v335_v16, -inf }
  0xe8   : > { %349 = vmax.xlane.f32.xlu0 %v348_v17  ;;  %352 = vmax.xlane.f32.xlu1 %v351_v18 }
  0xec   : > { %355 = vmax.xlane.f32.xlu1 %v354_v19 }
 0x16d   : > { %v347_v20 = vpop.xlane.xlu0 %346 }
 0x16e   : > { %v357_v21 = vsub.f32 %v325_v13, %v347_v20 }
 0x170   : > { %v361_v22 = vmul.f32 1.442695, %v357_v21 }
 0x171   : > { %v350_v23 = vpop.xlane.xlu0 %349  ;;  %v353_v24 = vpop.xlane.xlu1 %352 }
 0x172   : > { %1172 = vpow2.f32 %v361_v22  ;;  %v358_v25 = vsub.f32 %v1068_v12, %v350_v23  ;;  %v359_v26 = vsub.f32 %v335_v16, %v353_v24 }
 0x174   : > { %v363_v27 = vmul.f32 1.442695, %v358_v25  ;;  %v365_v28 = vmul.f32 1.442695, %v359_v26 }
 0x175   : > { %v356_v29 = vpop.xlane.xlu1 %355 }
 0x176   : > { %1174 = vpow2.f32 %v363_v27  ;;  %v360_v30 = vsub.f32 %v1071_v15, %v356_v29 }
 0x177   : > { %1176 = vpow2.f32 %v365_v28 }
 0x178   : > { %v367_v31 = vmul.f32 1.442695, %v360_v30 }
 0x17a   : > { %1178 = vpow2.f32 %v367_v31 }
 0x17f   : > { %v1173_v32 = vpop.eup %1172 }
 0x180   : > { %v369_v33 = vsel %vm344_vm1, %v1173_v32, 0.0 }
 0x181   : > { %370 = vadd.xlane.f32.xlu0 %v369_v33 }
 0x183   : > { %v1175_v34 = vpop.eup %1174 }
 0x184   : > { %v1177_v35 = vpop.eup %1176  ;;  %v372_v36 = vsel %vm344_vm1, %v1175_v34, 0.0 }
 0x185   : > { %373 = vadd.xlane.f32.xlu1 %v372_v36  ;;  %v375_v37 = vsel %vm344_vm1, %v1177_v35, 0.0 }
 0x186   : > { %376 = vadd.xlane.f32.xlu0 %v375_v37 }
 0x187   : > { %v1179_v38 = vpop.eup %1178 }
 0x188   : > { %v378_v39 = vsel %vm344_vm1, %v1179_v38, 0.0 }
 0x189   : > { %379 = vadd.xlane.f32.xlu1 %v378_v39 }
 0x19a   : > { %498 = vrot.lane.b32.xlu1 %v1258_v1, %s1212_s21 }
 0x19c   : > { %500 = vrot.lane.b32.xlu0 %v1255_v0, %s1212_s21 }
 0x19e   : > { %496 = vrot.lane.b32.xlu1 %v1270_v4, %s1212_s21 }
 0x1a0   : > { %486 = vrot.lane.b32.xlu0 %v1265_v3, %s1212_s21 }
 0x1a2   : > { %494 = vrot.lane.b32.xlu1 %v1279_v5, %s1212_s21 }
 0x1a4   : > { %490 = vrot.lane.b32.xlu0 %v1291_v9, %s1212_s21 }
 0x1a6   : > { %488 = vrot.lane.b32.xlu1 %v1287_v8, %s1212_s21 }
 0x1aa   : > { %492 = vrot.lane.b32.xlu1 %v1296_v11, %s1212_s21 }
 0x20a   : > { %v371_v44 = vpop.xlane.xlu0 %370 }
 0x20b   : > { %1180 = vrcp.f32 %v371_v44 }
 0x20e   : > { %v374_v45 = vpop.xlane.xlu1 %373 }
 0x20f   : > { %v377_v46 = vpop.xlane.xlu0 %376  ;;  %1182 = vrcp.f32 %v374_v45 }
 0x210   : > { %1184 = vrcp.f32 %v377_v46 }
 0x212   : > { %v380_v47 = vpop.xlane.xlu1 %379 }
 0x213   : > { %1186 = vrcp.f32 %v380_v47  ;;  %v501_v48 = vpop.permute.xlu0 %500 }
 0x214   : > { %1086 = vmatprep.subr.msk.mxu1 %vm234_vm0, %v501_v48 }
 0x216   : > { %v499_v50 = vpop.permute.xlu1 %498 }
 0x217   : > { %v487_v59 = vpop.permute.xlu0 %486 }
 0x218   : > { %v1181_v49 = vpop.eup %1180 }
 0x219   : > { %v385_v51 = vmul.f32 %v1181_v49, %v1173_v32  ;;  %v794_v49 = vld [vmem:[%s1463_s2 + $0x70] sm:$0xff] }
 0x21a   : > { %v497_v56 = vpop.permute.xlu1 %496 }
 0x21b   : > { %1080 = vmatprep.mubr.msk.f32.mxu1 %vm344_vm1, %v385_v51  ;;  %v491_v62 = vpop.permute.xlu0 %490  ;;  %v792_v51 = vld [vmem:[%s1463_s2 + $0x60] sm:$0xff] }
 0x21c   : > { %v1183_v52 = vpop.eup %1182 }
 0x21d   : > { %v1185_v53 = vpop.eup %1184  ;;  %v386_v54 = vmul.f32 %v1183_v52, %v1175_v34  ;;  %v791_v52 = vld [vmem:[%s1463_s2 + $0x58] sm:$0xff] }
 0x21e   : > { %v387_v55 = vmul.f32 %v1185_v53, %v1177_v35  ;;  %v495_v60 = vpop.permute.xlu1 %494  ;;  %v790_v53 = vld [vmem:[%s1463_s2 + $0x50] sm:$0xff] }
 0x21f   : > { %1081 = vmatmul.mubr.msk.f32.vlgmr.msra.gmra.mxu1 %vm344_vm1, %v386_v54  ;;  %v789_v54 = vld [vmem:[%s1463_s2 + $0x48] sm:$0xff] }
 0x220   : > { %v1187_v57 = vpop.eup %1186  ;;  %1087 = vmatpush3.xpose.msk.msra.mxu1 %vm234_vm0, %v501_v48  ;;  %1083 = vmatprep.mubr.msk.f32.mxu1 %vm344_vm1, %v387_v55  ;;  %v795_v48 = vld [vmem:[%s1463_s2 + $0x78] sm:$0xff]  ;;  %v788_v55 = vld [vmem:[%s1463_s2 + $0x40] sm:$0xff] }
 0x221   : > { %1088 = vmatprep.subr.msk.mxu1 %vm234_vm0, %v499_v50  ;;  %v388_v58 = vmul.f32 %v1187_v57, %v1179_v38  ;;  %v786_v57 = vld [vmem:[%s1463_s2 + $0x30] sm:$0xff] }
 0x222   : > { %v489_v61 = vpop.permute.xlu1 %488 }
 0x223   : > { %1084 = vmatmul.mubr.msk.f32.gmra.mxu1 %vm344_vm1, %v388_v58  ;;  %v785_v58 = vld [vmem:[%s1463_s2 + $0x28] sm:$0xff] }
 0x224   : > { %1089 = vmatpush3.xpose.msk.msra.mxu1 %vm234_vm0, %v499_v50  ;;  %1094 = vmatprep.mubr.msk.f32.mxu1 %vm234_vm0, %v487_v59  ;;  %v793_v50 = vld [vmem:[%s1463_s2 + $0x68] sm:$0xff]  ;;  %v784_v59 = vld [vmem:[%s1463_s2 + $0x20] sm:$0xff] }
 0x225   : > { %1090 = vmatprep.subr.msk.mxu1 %vm234_vm0, %v497_v56 }
 0x226   : > { %v493_v63 = vpop.permute.xlu1 %492 }
 0x228   : > { %1091 = vmatpush3.xpose.msk.msra.mxu1 %vm234_vm0, %v497_v56  ;;  %v787_v56 = vld [vmem:[%s1463_s2 + $0x38] sm:$0xff] }
 0x229   : > { %1092 = vmatprep.subr.msk.mxu1 %vm234_vm0, %v495_v60 }
 0x22c   : > { %1093 = vmatpush3.xpose.msk.msra.mxu1 %vm234_vm0, %v495_v60  ;;  %v783_v60 = vld [vmem:[%s1463_s2 + $0x18] sm:$0xff] }
 0x22f   : > { %1095 = vmatmul.mubr.msk.f32.vlgmr.msra.gmra.mxu1 %vm234_vm0, %v489_v61  ;;  %v782_v61 = vld [vmem:[%s1463_s2 + $0x10] sm:$0xff] }
 0x230   : > { %1097 = vmatprep.mubr.msk.f32.mxu1 %vm234_vm0, %v491_v62  ;;  %v781_v62 = vld [vmem:[%s1463_s2 + $0x8] sm:$0xff] }
 0x233   : > { %1098 = vmatmul.mubr.msk.f32.gmra.mxu1 %vm234_vm0, %v493_v63  ;;  %v780_v63 = vld [vmem:[%s1463_s2] sm:$0xff] }
 0x2df   : > { %v1362_v0 = vpop.f32.mrf.mxu1 }
 0x2e1   : > { %v1364_v1 = vpop.f32.mrf.mxu1 }
 0x2e3   : > { %v1366_v2 = vpop.f32.mrf.mxu1 }
 0x2e5   : > { %v1368_v3 = vpop.f32.mrf.mxu1 }
 0x2ef   : > { %v1096_v4 = vpop.f32.mrf.mxu1 }
 0x2f0   : > { %v606_v5 = vsel %vm344_vm1, %v1096_v4, -inf }
 0x2f1   : > { %607 = vmax.xlane.f32.xlu1 %v606_v5  ;;  %v584_v6 = vpop.f32.mrf.mxu1 }
 0x2f2   : > { %v603_v7 = vsel %vm344_vm1, %v584_v6, -inf }
 0x2f3   : > { %604 = vmax.xlane.f32.xlu0 %v603_v7  ;;  %v1099_v8 = vpop.f32.mrf.mxu1 }
 0x2f4   : > { %v612_v11 = vsel %vm344_vm1, %v1099_v8, -inf }
 0x2f5   : > { %v594_v9 = vpop.f32.mrf.mxu1 }
 0x2f6   : > { %v609_v10 = vsel %vm344_vm1, %v594_v9, -inf }
 0x2f7   : > { %610 = vmax.xlane.f32.xlu0 %v609_v10 }
 0x2fb   : > { %613 = vmax.xlane.f32.xlu0 %v612_v11 }
 0x37a   : > { %v608_v12 = vpop.xlane.xlu1 %607 }
 0x37b   : > { %v616_v13 = vsub.f32 %v1096_v4, %v608_v12 }
 0x37c   : > { %v605_v14 = vpop.xlane.xlu0 %604 }
 0x37d   : > { %v621_v15 = vmul.f32 1.442695, %v616_v13  ;;  %v615_v16 = vsub.f32 %v584_v6, %v605_v14 }
 0x37f   : > { %1188 = vpow2.f32 %v621_v15  ;;  %v619_v17 = vmul.f32 1.442695, %v615_v16 }
 0x380   : > { %v611_v18 = vpop.xlane.xlu0 %610 }
 0x381   : > { %1190 = vpow2.f32 %v619_v17  ;;  %v617_v19 = vsub.f32 %v594_v9, %v611_v18 }
 0x383   : > { %v623_v20 = vmul.f32 1.442695, %v617_v19 }
 0x384   : > { %v614_v21 = vpop.xlane.xlu0 %613 }
 0x385   : > { %1192 = vpow2.f32 %v623_v20  ;;  %v618_v22 = vsub.f32 %v1099_v8, %v614_v21 }
 0x387   : > { %v625_v23 = vmul.f32 1.442695, %v618_v22 }
 0x389   : > { %1194 = vpow2.f32 %v625_v23 }
 0x38c   : > { %v1189_v24 = vpop.eup %1188 }
 0x38d   : > { %v630_v25 = vsel %vm344_vm1, %v1189_v24, 0.0 }
 0x38e   : > { %v1191_v26 = vpop.eup %1190  ;;  %631 = vadd.xlane.f32.xlu1 %v630_v25 }
 0x38f   : > { %v627_v27 = vsel %vm344_vm1, %v1191_v26, 0.0 }
 0x390   : > { %628 = vadd.xlane.f32.xlu0 %v627_v27 }
 0x392   : > { %v1193_v28 = vpop.eup %1192 }
 0x393   : > { %v633_v29 = vsel %vm344_vm1, %v1193_v28, 0.0 }
 0x394   : > { %634 = vadd.xlane.f32.xlu0 %v633_v29 }
 0x396   : > { %v1195_v30 = vpop.eup %1194 }
 0x397   : > { %v636_v31 = vsel %vm344_vm1, %v1195_v30, 0.0 }
 0x398   : > { %637 = vadd.xlane.f32.xlu1 %v636_v31 }
 0x3a9   : > { %655 = vrot.lane.b32.xlu1 %v1316_v41, %s1212_s21 }
 0x3aa   : > { %657 = vrot.lane.b32.xlu0 %v1311_v40, %s1212_s21 }
 0x3ad   : > { %653 = vrot.lane.b32.xlu1 %v1323_v42, %s1212_s21 }
 0x3b1   : > { %651 = vrot.lane.b32.xlu1 %v1330_v43, %s1212_s21 }
 0x417   : > { %v632_v33 = vpop.xlane.xlu1 %631 }
 0x419   : > { %v629_v32 = vpop.xlane.xlu0 %628 }
 0x41a   : > { %1196 = vrcp.f32 %v629_v32 }
 0x41b   : > { %1198 = vrcp.f32 %v632_v33 }
 0x41d   : > { %v635_v34 = vpop.xlane.xlu0 %634 }
 0x41e   : > { %1200 = vrcp.f32 %v635_v34 }
 0x421   : > { %v638_v35 = vpop.xlane.xlu1 %637  ;;  %v658_v36 = vpop.permute.xlu0 %657 }
 0x422   : > { %1202 = vrcp.f32 %v638_v35  ;;  %1100 = vmatprep.subr.mxu0 %v658_v36 }
 0x423   : > { %1101 = vmatpush3.msra.mxu0 %v658_v36 }
 0x425   : > { %v656_v37 = vpop.permute.xlu1 %655 }
 0x426   : > { %1102 = vmatprep.subr.mxu0 %v656_v37 }
 0x427   : > { %v1197_v38 = vpop.eup %1196  ;;  %1103 = vmatpush3.msra.mxu0 %v656_v37 }
 0x428   : > { %v643_v39 = vmul.f32 %v1197_v38, %v1191_v26  ;;  %v1199_v41 = vpop.eup %1198 }
 0x429   : > { %v654_v40 = vpop.permute.xlu1 %653  ;;  %v644_v44 = vmul.f32 %v1199_v41, %v1189_v24 }
 0x42a   : > { %1104 = vmatprep.subr.mxu0 %v654_v40  ;;  %1108 = vmatprep.mubr.msk.f32.mxu0 %vm344_vm1, %v643_v39 }
 0x42b   : > { %1105 = vmatpush3.msra.mxu0 %v654_v40  ;;  %v1201_v42 = vpop.eup %1200 }
 0x42c   : > { %v645_v46 = vmul.f32 %v1201_v42, %v1193_v28 }
 0x42d   : > { %v652_v43 = vpop.permute.xlu1 %651 }
 0x42e   : > { %1106 = vmatprep.subr.mxu0 %v652_v43 }
 0x42f   : > { %v1203_v45 = vpop.eup %1202  ;;  %1107 = vmatpush3.msra.mxu0 %v652_v43 }
 0x430   : > { %1109 = vmatmul.mubr.msk.f32.vlgmr.msra.gmra.mxu0 %vm344_vm1, %v644_v44  ;;  %v646_v47 = vmul.f32 %v1203_v45, %v1195_v30  ;;  %1114 = vmatprep.subr.mxu0 %v795_v48 }
 0x431   : > { %1111 = vmatprep.mubr.msk.f32.mxu0 %vm344_vm1, %v645_v46  ;;  %1115 = vmatpush3.msra.mxu0 %v795_v48 }
 0x432   : > { %1116 = vmatprep.subr.mxu0 %v794_v49 }
 0x433   : > { %1117 = vmatpush3.msra.mxu0 %v794_v49 }
 0x434   : > { %1112 = vmatmul.mubr.msk.f32.gmra.mxu0 %vm344_vm1, %v646_v47  ;;  %1118 = vmatprep.subr.mxu0 %v793_v50 }
 0x435   : > { %1119 = vmatpush3.msra.mxu0 %v793_v50 }
 0x436   : > { %1120 = vmatprep.subr.mxu0 %v792_v51 }
 0x437   : > { %1121 = vmatpush3.msra.mxu0 %v792_v51 }
 0x438   : > { %1122 = vmatprep.subr.mxu0 %v791_v52 }
 0x439   : > { %1123 = vmatpush3.msra.mxu0 %v791_v52 }
 0x43a   : > { %1124 = vmatprep.subr.mxu0 %v790_v53 }
 0x43b   : > { %1125 = vmatpush3.msra.mxu0 %v790_v53 }
 0x43c   : > { %1126 = vmatprep.subr.mxu0 %v789_v54 }
 0x43d   : > { %1127 = vmatpush3.msra.mxu0 %v789_v54 }
 0x43e   : > { %1128 = vmatprep.subr.mxu0 %v788_v55 }
 0x43f   : > { %1129 = vmatpush3.msra.mxu0 %v788_v55 }
 0x440   : > { %1130 = vmatprep.subr.mxu0 %v787_v56 }
 0x441   : > { %1131 = vmatpush3.msra.mxu0 %v787_v56 }
 0x442   : > { %1132 = vmatprep.subr.mxu0 %v786_v57 }
 0x443   : > { %1133 = vmatpush3.msra.mxu0 %v786_v57 }
 0x444   : > { %1134 = vmatprep.subr.mxu0 %v785_v58 }
 0x445   : > { %1135 = vmatpush3.msra.mxu0 %v785_v58 }
 0x446   : > { %1136 = vmatprep.subr.mxu0 %v784_v59 }
 0x447   : > { %1137 = vmatpush3.msra.mxu0 %v784_v59 }
 0x448   : > { %1138 = vmatprep.subr.mxu0 %v783_v60 }
 0x449   : > { %1139 = vmatpush3.msra.mxu0 %v783_v60 }
 0x44a   : > { %1140 = vmatprep.subr.mxu0 %v782_v61 }
 0x44b   : > { %1141 = vmatpush3.msra.mxu0 %v782_v61 }
 0x44c   : > { %1142 = vmatprep.subr.mxu0 %v781_v62 }
 0x44d   : > { %1143 = vmatpush3.msra.mxu0 %v781_v62 }
 0x44e   : > { %1144 = vmatprep.subr.mxu0 %v780_v63 }
 0x44f   : > { %1145 = vmatpush3.msra.mxu0 %v780_v63 }
 0x4f0   : > { %v1110_v4 = vpop.f32.mrf.mxu0 }
 0x4f2   : > { %v741_v5 = vpop.f32.mrf.mxu0 }
 0x4f3   : > { %v1162_v6 = vpack.i.bf16 %v1110_v4, %v741_v5 }
 0x4f4   : > { %v1113_v7 = vpop.f32.mrf.mxu0 }
 0x4f5   : > { %1163 = vrot.lane.b32.xlu0 %v1162_v6, %s1212_s21 }
 0x4f6   : > { %v751_v8 = vpop.f32.mrf.mxu0 }
 0x4f7   : > { %v1167_v9 = vpack.i.bf16 %v1113_v7, %v751_v8 }
 0x4f9   : > { %1168 = vrot.lane.b32.xlu1 %v1167_v9, %s1212_s21  ;;  %s1004_s21 = sshll.u32 %s1467_s16, 5 }
 0x4fa   : > { %s212_s7 = scalar_lea.vmem %s1462_s1, %s1004_s21  ;;  %s217_s12 = scalar_lea.vmem %s1465_s4, %s1004_s21 }
 0x4fb   : > { %v889_v20 = vld [vmem:[%s212_s7 + $0x8] sm:$0xff]  ;;  %v891_v25 = vld [vmem:[%s212_s7 + $0x18] sm:$0xff]  ;;  %v890_v29 = vld [vmem:[%s212_s7 + $0x10] sm:$0xff] }
 0x567   : > { %v1164_v10 = vpop.permute.xlu0 %1163 }
 0x568   : > { %v1166_v11 = vunpack.i.h.bf16 %v1164_v10  ;;  %v1165_v12 = vunpack.i.l.bf16 %v1164_v10 }
 0x56a   : > { %v777_v13 = vsel %vm234_vm0, %v1362_v0, %v1166_v11  ;;  %v776_v14 = vsel %vm234_vm0, %v1364_v1, %v1165_v12  ;;  %v1001_v0 = vld [vmem:[%s1464_s3] ss:$0 sm:$0xff] }
 0x56b   : > { %1146 = vmatprep.mubr.f32.mxu0 %v776_v14  ;;  %v1169_v15 = vpop.permute.xlu1 %1168 }
 0x56c   : > { %v1171_v16 = vunpack.i.h.bf16 %v1169_v15  ;;  %v1170_v17 = vunpack.i.l.bf16 %v1169_v15  ;;  %1147 = vmatmul.mubr.f32.vlgmr.msra.gmra.mxu0 %v777_v13 }
 0x56e   : > { %v778_v18 = vsel %vm234_vm0, %v1368_v3, %v1170_v17  ;;  %v779_v19 = vsel %vm234_vm0, %v1366_v2, %v1171_v16  ;;  %v888_v2 = vld [vmem:[%s212_s7] sm:$0xff] }
 0x56f   : > { %1149 = vmatprep.mubr.f32.mxu0 %v778_v18 }
 0x570   : > { %1150 = vmatmul.mubr.f32.gmra.mxu0 %v779_v19 }
 0x62c   : > { %v1148_v1 = vpop.f32.mrf.mxu0 }
 0x62d   : > { %v875_v21 = vadd.f32 %v1148_v1, %v1001_v0 }
 0x62e   : > { %v869_v3 = vpop.f32.mrf.mxu0 }
 0x62f   : > { %v893_v22 = vadd.f32 %v889_v20, %v875_v21  ;;  %v870_v23 = vadd.f32 %v1001_v0, %v869_v3 }
 0x630   : > { %v1151_v24 = vpop.f32.mrf.mxu0 }
 0x631   : > { %897 = vst [vmem:[%s217_s12 + $0x8] sm:$0xff] %v893_v22  ;;  %v892_v26 = vadd.f32 %v888_v2, %v870_v23  ;;  %v885_v27 = vadd.f32 %v1151_v24, %v1001_v0 }
 0x632   : > { %v879_v28 = vpop.f32.mrf.mxu0 }
 0x633   : > { %896 = vst [vmem:[%s217_s12] sm:$0xff] %v892_v26  ;;  %v895_v30 = vadd.f32 %v891_v25, %v885_v27  ;;  %v880_v31 = vadd.f32 %v1001_v0, %v879_v28 }
 0x635   : > { %899 = vst [vmem:[%s217_s12 + $0x18] sm:$0xff] %v895_v30  ;;  %v894_v32 = vadd.f32 %v890_v29, %v880_v31 }
 0x637   : > { %898 = vst [vmem:[%s217_s12 + $0x10] sm:$0xff] %v894_v32 }
 0x638 PF: > { %s14_s15 = sadd.s32 1, %s1210_s15  }
 0x639   : > { %p11_p4 = scmp.ge.s32.totalorder %s14_s15, 4  }
 0x63b   :  { %13 = sbr.rel (!%p11_p4) target bundleno = 1 (0x1), region = 69 }

</bundles_post_ra>
